<compile_context>
chip_gen: v5e
topology: v5e:2x2
jax: 0.10.0
libtpu: 0.0.40
codegen_flags: <defaults>
</compile_context>

<pallas_src>
import jax
import jax.numpy as jnp
from jax.experimental import pallas as pl
from jax.experimental.pallas import tpu as pltpu

SEQ_LEN = 64   # DNA token sequence length (module reshapes to (1, 64))
PAD_DIM = 128  # nucleotide one-hot dim (4) padded to a full lane width


def _ph_kernel(w_ref, v_ref, deaths_ref, d_ref):
    f32 = jnp.float32
    n = w_ref.shape[1]        # number of real points (64)
    pad = w_ref.shape[0]      # lane-padded width (128)
    inf = f32(jnp.inf)

    # --- chaos-game 4D representation as one matmul: P = W_pad @ V ---------
    # Rows n..pad-1 of W_pad are zero, so those "points" are the origin and
    # their lanes are masked to +inf below.
    p = jnp.dot(w_ref[...], v_ref[0], preferred_element_type=f32)    # (pad, PAD_DIM)
    p64 = p[0:n, :]                                                   # sublane-aligned slice

    # --- pairwise squared distances: rows = 64 real points, 128 lanes -------
    # TODO(synk): norms_row could come from an XLU transpose of norms_col
    # instead of this one-shot MXU pass; kept on the MXU for lowering safety.
    q = p * p
    norms_col = jnp.sum(p64 * p64, axis=1, keepdims=True)            # (n, 1)   |p_i|^2
    ones_row = jnp.ones((1, pad), f32)
    norms_row = jax.lax.dot_general(                                  # (1, pad) |p_j|^2
        ones_row, q, (((1,), (1,)), ((), ())), preferred_element_type=f32)
    gram = jax.lax.dot_general(                                       # (n, pad) p_i . p_j
        p64, p, (((1,), (1,)), ((), ())), preferred_element_type=f32)
    d2 = jnp.maximum(norms_col + norms_row - 2.0 * gram, 0.0)
    lane = jax.lax.broadcasted_iota(jnp.int32, (n, pad), 1)
    d2 = jnp.where(lane < n, d2, inf)        # padded lanes never selectable
    d_ref[...] = d2                          # stage once for O(1) row gathers

    # --- H0 persistence deaths == MST edge weights (Prim, fully unrolled) --
    idx = jax.lax.broadcasted_iota(jnp.int32, (1, pad), 1)
    in_tree0 = jnp.logical_or(idx == 0, idx >= n)
    min_dist0 = d2[0:1, :]
    deaths0 = jnp.zeros((1, pad), f32)
    key_mask = jnp.int32(-128)               # 0xFFFFFF80: drop low 7 mantissa bits

    def body(t, carry):
        min_dist, in_tree, deaths = carry
        masked = jnp.where(in_tree, inf, min_dist)            # nonnegative f32 / +inf
        # Packed value|index key: one cross-lane reduce gives min AND argmin.
        key = (pltpu.bitcast(masked, jnp.int32) & key_mask) | idx
        kmin = jnp.min(key)                                   # single XLU reduce
        new_node = key == kmin                                 # exactly one lane set
        j = kmin & jnp.int32(0x7F)                             # scalar new-node id (< n)
        deaths = jnp.where(new_node, min_dist, deaths)         # exact value, off crit path
        in_tree = jnp.logical_or(in_tree, new_node)
        row = d_ref[pl.ds(j, 1), :]                            # (1, pad): one dynamic load
        min_dist = jnp.minimum(min_dist, row)
        return (min_dist, in_tree, deaths)

    _, _, deaths = jax.lax.fori_loop(
        1, n, body, (min_dist0, in_tree0, deaths0), unroll=True)

    deaths = jnp.sqrt(deaths)                  # one sqrt pass on a single vreg row
    deaths = jnp.where(idx == 0, inf, deaths)  # ripser's H0 has one infinite bar
    deaths_ref[0] = deaths


@jax.jit
def persistent_homology_forward(dna_tokens):
    """JAX/Pallas equivalent of PersistentHomologyLayer.forward.

    dna_tokens: (SEQ_LEN,) or (B, SEQ_LEN) int32 token ids; valid nucleotides
    are 28..31.
    Returns (dgm0, coverage):
      dgm0: (..., SEQ_LEN, 2) f32, col 0 = births (0), col 1 = deaths sorted
            ascending (last entry = +inf), matching ripser's H0 diagram.
      coverage: (...,) f32 = (# CGR points) / sequence length.
    """
    squeeze = dna_tokens.ndim == 1
    toks = jnp.atleast_2d(dna_tokens)                        # (B, n)
    b, n = toks.shape
    valid = jnp.logical_and(toks >= 28, toks <= 31)
    # TODO(synk): invalid nucleotides are zero-encoded here instead of being
    # skipped (variable-length point cloud has no static-shape equivalent);
    # the synthetic input below only contains valid tokens so semantics match.
    v = jax.nn.one_hot(toks - 28, PAD_DIM, dtype=jnp.float32)
    v = v * valid[..., None].astype(jnp.float32)             # (B, n, 128)

    # Lower-triangular CGR recurrence matrix, zero-padded to 128 rows so the
    # kernel's point cloud / distance matrix is lane-dense:
    #   p_t = 0.5^t v_0 + sum_{k=1}^{t} 0.5^(t-k+1) v_k   =>   P = W @ V
    t_idx = jnp.arange(n, dtype=jnp.float32)[:, None]
    k_idx = jnp.arange(n, dtype=jnp.float32)[None, :]
    w = jnp.where(
        k_idx == 0,
        0.5 ** t_idx,
        jnp.where(k_idx <= t_idx, 0.5 ** (t_idx - k_idx + 1.0), 0.0),
    ).astype(jnp.float32)
    w_pad = jnp.concatenate(
        [w, jnp.zeros((PAD_DIM - n, n), jnp.float32)], axis=0)          # (128, n)

    deaths = pl.pallas_call(
        _ph_kernel,
        out_shape=jax.ShapeDtypeStruct((b, 1, PAD_DIM), jnp.float32),
        grid_spec=pltpu.PrefetchScalarGridSpec(
            num_scalar_prefetch=0,
            grid=(b,),
            in_specs=[
                pl.BlockSpec((PAD_DIM, n), lambda i: (0, 0)),       # W: resident
                pl.BlockSpec((1, n, PAD_DIM), lambda i: (i, 0, 0)),  # V: per sequence
            ],
            out_specs=pl.BlockSpec((1, 1, PAD_DIM), lambda i: (i, 0, 0)),
            scratch_shapes=[pltpu.VMEM((n, PAD_DIM), jnp.float32)],
        ),
        compiler_params=pltpu.CompilerParams(
            dimension_semantics=("parallel",)),
    )(w_pad, v)                                               # (B, 1, 128)

    deaths_sorted = jnp.sort(deaths[:, 0, :n], axis=-1)       # (B, n)
    births = jnp.zeros((b, n), jnp.float32)
    dgm0 = jnp.stack([births, deaths_sorted], axis=-1)        # (B, n, 2)
    # Reference always keeps point 0 (zero vector if invalid) and skips later
    # invalid tokens, so: len(points) = 1 + #valid tokens after position 0.
    coverage = (1.0 + jnp.sum(valid[:, 1:], axis=-1).astype(jnp.float32)) / jnp.float32(n)

    if squeeze:
        return dgm0[0], coverage[0]
    return dgm0, coverage


if __name__ == "__main__":
    key = jax.random.PRNGKey(0)
    BATCH = 2
    # tokens in {28, 29, 30, 31} == the module's nucleotide vocabulary
    dna_tokens = jax.random.randint(key, (BATCH, SEQ_LEN), 28, 32, dtype=jnp.int32)

    dgm0, coverage = persistent_homology_forward(dna_tokens)
    jax.block_until_ready((dgm0, coverage))
    print("KERNEL_OK")
</pallas_src>

<mosaic_0001>
module attributes {stable_mosaic.version = 11 : i64} {
  func.func @_ph_kernel(%arg0: i32, %arg1: memref<128x64xf32, #tpu.memory_space<vmem>>, %arg2: memref<1x64x128xf32, #tpu.memory_space<vmem>>, %arg3: memref<1x1x128xf32, #tpu.memory_space<vmem>>, %arg4: memref<64x128xf32, #tpu.memory_space<vmem>>) attributes {dimension_semantics = [#tpu.dimension_semantics<parallel>], iteration_bounds = array<i64: 2>, scalar_prefetch = 0 : i64, scratch_operands = 1 : i64, tpu.core_type = #tpu.core_type<tc>, window_params = [{pipeline_mode = #tpu.pipeline_mode<synchronous>, transform_indices = @transform_0, window_bounds = array<i64: 128, 64>}, {transform_indices = @transform_1, window_bounds = array<i64: 1, 64, 128>}, {transform_indices = @transform_2, window_bounds = array<i64: 1, 1, 128>}]} {
    %c0 = arith.constant 0 : index
    %c0_0 = arith.constant 0 : index
    %0 = vector.load %arg1[%c0, %c0_0] : memref<128x64xf32, #tpu.memory_space<vmem>>, vector<128x64xf32>
    %c0_1 = arith.constant 0 : index
    %c0_2 = arith.constant 0 : index
    %c0_3 = arith.constant 0 : index
    %1 = vector.load %arg2[%c0_1, %c0_2, %c0_3] : memref<1x64x128xf32, #tpu.memory_space<vmem>>, vector<1x64x128xf32>
    %2 = vector.shape_cast %1 : vector<1x64x128xf32> to vector<64x128xf32>
    %cst = arith.constant dense<0.000000e+00> : vector<128x128xf32>
    %3 = tpu.matmul %0, %2, %cst {dimension_numbers = #tpu.dot_dimension_numbers<[1], [0], [0], [1], [0, 0, 1, 1], [], []>} : vector<128x64xf32>, vector<64x128xf32>, vector<128x128xf32> -> vector<128x128xf32>
    %4 = vector.extract_strided_slice %3 {offsets = [0, 0], sizes = [64, 128], strides = [1, 1]} : vector<128x128xf32> to vector<64x128xf32>
    %5 = arith.mulf %3, %3 : vector<128x128xf32>
    %6 = arith.mulf %4, %4 : vector<64x128xf32>
    %cst_4 = arith.constant dense<0.000000e+00> : vector<64xf32>
    %7 = vector.multi_reduction <add>, %6, %cst_4 [1] : vector<64x128xf32> to vector<64xf32>
    %8 = vector.shape_cast %7 : vector<64xf32> to vector<64x1xf32>
    %cst_5 = arith.constant 1.000000e+00 : f32
    %9 = vector.broadcast %cst_5 : f32 to vector<1x128xf32>
    %cst_6 = arith.constant dense<0.000000e+00> : vector<1x128xf32>
    %10 = tpu.matmul %9, %5, %cst_6 {dimension_numbers = #tpu.dot_dimension_numbers<[1], [1], [0], [0], [0, 0, 1, 0], [], []>} : vector<1x128xf32>, vector<128x128xf32>, vector<1x128xf32> -> vector<1x128xf32>
    %cst_7 = arith.constant dense<0.000000e+00> : vector<64x128xf32>
    %11 = tpu.matmul %4, %3, %cst_7 {dimension_numbers = #tpu.dot_dimension_numbers<[1], [1], [0], [0], [0, 0, 1, 0], [], []>} : vector<64x128xf32>, vector<128x128xf32>, vector<64x128xf32> -> vector<64x128xf32>
    %12 = vector.broadcast %8 : vector<64x1xf32> to vector<64x128xf32>
    %13 = vector.broadcast %10 : vector<1x128xf32> to vector<64x128xf32>
    %14 = arith.addf %12, %13 : vector<64x128xf32>
    %cst_8 = arith.constant 2.000000e+00 : f32
    %15 = vector.broadcast %cst_8 : f32 to vector<64x128xf32>
    %16 = arith.mulf %15, %11 : vector<64x128xf32>
    %17 = arith.subf %14, %16 : vector<64x128xf32>
    %cst_9 = arith.constant 0.000000e+00 : f32
    %18 = vector.broadcast %cst_9 : f32 to vector<64x128xf32>
    %19 = arith.maximumf %17, %18 : vector<64x128xf32>
    %20 = tpu.iota {dimensions = array<i32: 1>} : vector<64x128xi32>
    %c64_i32 = arith.constant 64 : i32
    %21 = vector.broadcast %c64_i32 : i32 to vector<64x128xi32>
    %22 = arith.cmpi slt, %20, %21 : vector<64x128xi32>
    %cst_10 = arith.constant 0x7F800000 : f32
    %23 = vector.broadcast %cst_10 : f32 to vector<64x128xf32>
    %24 = arith.select %22, %19, %23 : vector<64x128xi1>, vector<64x128xf32>
    %c0_11 = arith.constant 0 : index
    %c0_12 = arith.constant 0 : index
    %25 = vector.load %arg4[%c0_11, %c0_12] : memref<64x128xf32, #tpu.memory_space<vmem>>, vector<64x128xf32>
    tpu.vector_store %arg4[%c0_11, %c0_12], %24 {strides = array<i32>} : memref<64x128xf32, #tpu.memory_space<vmem>>, vector<64x128xf32>,
    %26 = tpu.iota {dimensions = array<i32: 1>} : vector<1x128xi32>
    %c0_i32 = arith.constant 0 : i32
    %27 = vector.broadcast %c0_i32 : i32 to vector<1x128xi32>
    %28 = arith.cmpi eq, %26, %27 : vector<1x128xi32>
    %c64_i32_13 = arith.constant 64 : i32
    %29 = vector.broadcast %c64_i32_13 : i32 to vector<1x128xi32>
    %30 = arith.cmpi sge, %26, %29 : vector<1x128xi32>
    %31 = arith.ori %28, %30 : vector<1x128xi1>
    %32 = vector.extract_strided_slice %24 {offsets = [0, 0], sizes = [1, 128], strides = [1, 1]} : vector<64x128xf32> to vector<1x128xf32>
    %cst_14 = arith.constant 0.000000e+00 : f32
    %33 = vector.broadcast %cst_14 : f32 to vector<1x128xf32>
    %cst_15 = arith.constant 0x7F800000 : f32
    %c-128_i32 = arith.constant -128 : i32
    %c0_i32_16 = arith.constant 0 : i32
    %34 = vector.broadcast %cst_15 : f32 to vector<1x128xf32>
    %35 = arith.select %31, %34, %32 : vector<1x128xi1>, vector<1x128xf32>
    %36 = tpu.bitcast %35 : vector<1x128xf32> -> vector<1x128xi32>
    %37 = vector.broadcast %c-128_i32 : i32 to vector<1x128xi32>
    %38 = arith.andi %36, %37 : vector<1x128xi32>
    %39 = arith.ori %38, %26 : vector<1x128xi32>
    %40 = vector.shape_cast %39 : vector<1x128xi32> to vector<1x1x128xi32>
    %cst_17 = arith.constant dense<2147483647> : vector<1xi32>
    %41 = vector.multi_reduction <minsi>, %40, %cst_17 [1, 2] : vector<1x1x128xi32> to vector<1xi32>
    %42 = vector.shape_cast %41 : vector<1xi32> to vector<1x1x1xi32>
    %43 = vector.extract %42[0, 0, 0] : i32 from vector<1x1x1xi32>
    %44 = vector.broadcast %43 : i32 to vector<1x128xi32>
    %45 = arith.cmpi eq, %39, %44 : vector<1x128xi32>
    %c127_i32 = arith.constant 127 : i32
    %46 = arith.andi %43, %c127_i32 : i32
    %47 = arith.select %45, %32, %33 : vector<1x128xi1>, vector<1x128xf32>
    %48 = arith.ori %31, %45 : vector<1x128xi1>
    %49 = arith.index_cast %46 : i32 to index
    %c0_18 = arith.constant 0 : index
    %50 = vector.load %arg4[%49, %c0_18] : memref<64x128xf32, #tpu.memory_space<vmem>>, vector<1x128xf32>
    %51 = arith.minimumf %32, %50 : vector<1x128xf32>
    %c1_i32 = arith.constant 1 : i32
    %52 = vector.broadcast %cst_15 : f32 to vector<1x128xf32>
    %53 = arith.select %48, %52, %51 : vector<1x128xi1>, vector<1x128xf32>
    %54 = tpu.bitcast %53 : vector<1x128xf32> -> vector<1x128xi32>
    %55 = vector.broadcast %c-128_i32 : i32 to vector<1x128xi32>
    %56 = arith.andi %54, %55 : vector<1x128xi32>
    %57 = arith.ori %56, %26 : vector<1x128xi32>
    %58 = vector.shape_cast %57 : vector<1x128xi32> to vector<1x1x128xi32>
    %cst_19 = arith.constant dense<2147483647> : vector<1xi32>
    %59 = vector.multi_reduction <minsi>, %58, %cst_19 [1, 2] : vector<1x1x128xi32> to vector<1xi32>
    %60 = vector.shape_cast %59 : vector<1xi32> to vector<1x1x1xi32>
    %61 = vector.extract %60[0, 0, 0] : i32 from vector<1x1x1xi32>
    %62 = vector.broadcast %61 : i32 to vector<1x128xi32>
    %63 = arith.cmpi eq, %57, %62 : vector<1x128xi32>
    %c127_i32_20 = arith.constant 127 : i32
    %64 = arith.andi %61, %c127_i32_20 : i32
    %65 = arith.select %63, %51, %47 : vector<1x128xi1>, vector<1x128xf32>
    %66 = arith.ori %48, %63 : vector<1x128xi1>
    %67 = arith.index_cast %64 : i32 to index
    %c0_21 = arith.constant 0 : index
    %68 = vector.load %arg4[%67, %c0_21] : memref<64x128xf32, #tpu.memory_space<vmem>>, vector<1x128xf32>
    %69 = arith.minimumf %51, %68 : vector<1x128xf32>
    %c2_i32 = arith.constant 2 : i32
    %70 = vector.broadcast %cst_15 : f32 to vector<1x128xf32>
    %71 = arith.select %66, %70, %69 : vector<1x128xi1>, vector<1x128xf32>
    %72 = tpu.bitcast %71 : vector<1x128xf32> -> vector<1x128xi32>
    %73 = vector.broadcast %c-128_i32 : i32 to vector<1x128xi32>
    %74 = arith.andi %72, %73 : vector<1x128xi32>
    %75 = arith.ori %74, %26 : vector<1x128xi32>
    %76 = vector.shape_cast %75 : vector<1x128xi32> to vector<1x1x128xi32>
    %cst_22 = arith.constant dense<2147483647> : vector<1xi32>
    %77 = vector.multi_reduction <minsi>, %76, %cst_22 [1, 2] : vector<1x1x128xi32> to vector<1xi32>
    %78 = vector.shape_cast %77 : vector<1xi32> to vector<1x1x1xi32>
    %79 = vector.extract %78[0, 0, 0] : i32 from vector<1x1x1xi32>
    %80 = vector.broadcast %79 : i32 to vector<1x128xi32>
    %81 = arith.cmpi eq, %75, %80 : vector<1x128xi32>
    %c127_i32_23 = arith.constant 127 : i32
    %82 = arith.andi %79, %c127_i32_23 : i32
    %83 = arith.select %81, %69, %65 : vector<1x128xi1>, vector<1x128xf32>
    %84 = arith.ori %66, %81 : vector<1x128xi1>
    %85 = arith.index_cast %82 : i32 to index
    %c0_24 = arith.constant 0 : index
    %86 = vector.load %arg4[%85, %c0_24] : memref<64x128xf32, #tpu.memory_space<vmem>>, vector<1x128xf32>
    %87 = arith.minimumf %69, %86 : vector<1x128xf32>
    %c3_i32 = arith.constant 3 : i32
    %88 = vector.broadcast %cst_15 : f32 to vector<1x128xf32>
    %89 = arith.select %84, %88, %87 : vector<1x128xi1>, vector<1x128xf32>
    %90 = tpu.bitcast %89 : vector<1x128xf32> -> vector<1x128xi32>
    %91 = vector.broadcast %c-128_i32 : i32 to vector<1x128xi32>
    %92 = arith.andi %90, %91 : vector<1x128xi32>
    %93 = arith.ori %92, %26 : vector<1x128xi32>
    %94 = vector.shape_cast %93 : vector<1x128xi32> to vector<1x1x128xi32>
    %cst_25 = arith.constant dense<2147483647> : vector<1xi32>
    %95 = vector.multi_reduction <minsi>, %94, %cst_25 [1, 2] : vector<1x1x128xi32> to vector<1xi32>
    %96 = vector.shape_cast %95 : vector<1xi32> to vector<1x1x1xi32>
    %97 = vector.extract %96[0, 0, 0] : i32 from vector<1x1x1xi32>
    %98 = vector.broadcast %97 : i32 to vector<1x128xi32>
    %99 = arith.cmpi eq, %93, %98 : vector<1x128xi32>
    %c127_i32_26 = arith.constant 127 : i32
    %100 = arith.andi %97, %c127_i32_26 : i32
    %101 = arith.select %99, %87, %83 : vector<1x128xi1>, vector<1x128xf32>
    %102 = arith.ori %84, %99 : vector<1x128xi1>
    %103 = arith.index_cast %100 : i32 to index
    %c0_27 = arith.constant 0 : index
    %104 = vector.load %arg4[%103, %c0_27] : memref<64x128xf32, #tpu.memory_space<vmem>>, vector<1x128xf32>
    %105 = arith.minimumf %87, %104 : vector<1x128xf32>
    %c4_i32 = arith.constant 4 : i32
    %106 = vector.broadcast %cst_15 : f32 to vector<1x128xf32>
    %107 = arith.select %102, %106, %105 : vector<1x128xi1>, vector<1x128xf32>
    %108 = tpu.bitcast %107 : vector<1x128xf32> -> vector<1x128xi32>
    %109 = vector.broadcast %c-128_i32 : i32 to vector<1x128xi32>
    %110 = arith.andi %108, %109 : vector<1x128xi32>
    %111 = arith.ori %110, %26 : vector<1x128xi32>
    %112 = vector.shape_cast %111 : vector<1x128xi32> to vector<1x1x128xi32>
    %cst_28 = arith.constant dense<2147483647> : vector<1xi32>
    %113 = vector.multi_reduction <minsi>, %112, %cst_28 [1, 2] : vector<1x1x128xi32> to vector<1xi32>
    %114 = vector.shape_cast %113 : vector<1xi32> to vector<1x1x1xi32>
    %115 = vector.extract %114[0, 0, 0] : i32 from vector<1x1x1xi32>
    %116 = vector.broadcast %115 : i32 to vector<1x128xi32>
    %117 = arith.cmpi eq, %111, %116 : vector<1x128xi32>
    %c127_i32_29 = arith.constant 127 : i32
    %118 = arith.andi %115, %c127_i32_29 : i32
    %119 = arith.select %117, %105, %101 : vector<1x128xi1>, vector<1x128xf32>
    %120 = arith.ori %102, %117 : vector<1x128xi1>
    %121 = arith.index_cast %118 : i32 to index
    %c0_30 = arith.constant 0 : index
    %122 = vector.load %arg4[%121, %c0_30] : memref<64x128xf32, #tpu.memory_space<vmem>>, vector<1x128xf32>
    %123 = arith.minimumf %105, %122 : vector<1x128xf32>
    %c5_i32 = arith.constant 5 : i32
    %124 = vector.broadcast %cst_15 : f32 to vector<1x128xf32>
    %125 = arith.select %120, %124, %123 : vector<1x128xi1>, vector<1x128xf32>
    %126 = tpu.bitcast %125 : vector<1x128xf32> -> vector<1x128xi32>
    %127 = vector.broadcast %c-128_i32 : i32 to vector<1x128xi32>
    %128 = arith.andi %126, %127 : vector<1x128xi32>
    %129 = arith.ori %128, %26 : vector<1x128xi32>
    %130 = vector.shape_cast %129 : vector<1x128xi32> to vector<1x1x128xi32>
    %cst_31 = arith.constant dense<2147483647> : vector<1xi32>
    %131 = vector.multi_reduction <minsi>, %130, %cst_31 [1, 2] : vector<1x1x128xi32> to vector<1xi32>
    %132 = vector.shape_cast %131 : vector<1xi32> to vector<1x1x1xi32>
    %133 = vector.extract %132[0, 0, 0] : i32 from vector<1x1x1xi32>
    %134 = vector.broadcast %133 : i32 to vector<1x128xi32>
    %135 = arith.cmpi eq, %129, %134 : vector<1x128xi32>
    %c127_i32_32 = arith.constant 127 : i32
    %136 = arith.andi %133, %c127_i32_32 : i32
    %137 = arith.select %135, %123, %119 : vector<1x128xi1>, vector<1x128xf32>
    %138 = arith.ori %120, %135 : vector<1x128xi1>
    %139 = arith.index_cast %136 : i32 to index
    %c0_33 = arith.constant 0 : index
    %140 = vector.load %arg4[%139, %c0_33] : memref<64x128xf32, #tpu.memory_space<vmem>>, vector<1x128xf32>
    %141 = arith.minimumf %123, %140 : vector<1x128xf32>
    %c6_i32 = arith.constant 6 : i32
    %142 = vector.broadcast %cst_15 : f32 to vector<1x128xf32>
    %143 = arith.select %138, %142, %141 : vector<1x128xi1>, vector<1x128xf32>
    %144 = tpu.bitcast %143 : vector<1x128xf32> -> vector<1x128xi32>
    %145 = vector.broadcast %c-128_i32 : i32 to vector<1x128xi32>
    %146 = arith.andi %144, %145 : vector<1x128xi32>
    %147 = arith.ori %146, %26 : vector<1x128xi32>
    %148 = vector.shape_cast %147 : vector<1x128xi32> to vector<1x1x128xi32>
    %cst_34 = arith.constant dense<2147483647> : vector<1xi32>
    %149 = vector.multi_reduction <minsi>, %148, %cst_34 [1, 2] : vector<1x1x128xi32> to vector<1xi32>
    %150 = vector.shape_cast %149 : vector<1xi32> to vector<1x1x1xi32>
    %151 = vector.extract %150[0, 0, 0] : i32 from vector<1x1x1xi32>
    %152 = vector.broadcast %151 : i32 to vector<1x128xi32>
    %153 = arith.cmpi eq, %147, %152 : vector<1x128xi32>
    %c127_i32_35 = arith.constant 127 : i32
    %154 = arith.andi %151, %c127_i32_35 : i32
    %155 = arith.select %153, %141, %137 : vector<1x128xi1>, vector<1x128xf32>
    %156 = arith.ori %138, %153 : vector<1x128xi1>
    %157 = arith.index_cast %154 : i32 to index
    %c0_36 = arith.constant 0 : index
    %158 = vector.load %arg4[%157, %c0_36] : memref<64x128xf32, #tpu.memory_space<vmem>>, vector<1x128xf32>
    %159 = arith.minimumf %141, %158 : vector<1x128xf32>
    %c7_i32 = arith.constant 7 : i32
    %160 = vector.broadcast %cst_15 : f32 to vector<1x128xf32>
    %161 = arith.select %156, %160, %159 : vector<1x128xi1>, vector<1x128xf32>
    %162 = tpu.bitcast %161 : vector<1x128xf32> -> vector<1x128xi32>
    %163 = vector.broadcast %c-128_i32 : i32 to vector<1x128xi32>
    %164 = arith.andi %162, %163 : vector<1x128xi32>
    %165 = arith.ori %164, %26 : vector<1x128xi32>
    %166 = vector.shape_cast %165 : vector<1x128xi32> to vector<1x1x128xi32>
    %cst_37 = arith.constant dense<2147483647> : vector<1xi32>
    %167 = vector.multi_reduction <minsi>, %166, %cst_37 [1, 2] : vector<1x1x128xi32> to vector<1xi32>
    %168 = vector.shape_cast %167 : vector<1xi32> to vector<1x1x1xi32>
    %169 = vector.extract %168[0, 0, 0] : i32 from vector<1x1x1xi32>
    %170 = vector.broadcast %169 : i32 to vector<1x128xi32>
    %171 = arith.cmpi eq, %165, %170 : vector<1x128xi32>
    %c127_i32_38 = arith.constant 127 : i32
    %172 = arith.andi %169, %c127_i32_38 : i32
    %173 = arith.select %171, %159, %155 : vector<1x128xi1>, vector<1x128xf32>
    %174 = arith.ori %156, %171 : vector<1x128xi1>
    %175 = arith.index_cast %172 : i32 to index
    %c0_39 = arith.constant 0 : index
    %176 = vector.load %arg4[%175, %c0_39] : memref<64x128xf32, #tpu.memory_space<vmem>>, vector<1x128xf32>
    %177 = arith.minimumf %159, %176 : vector<1x128xf32>
    %c8_i32 = arith.constant 8 : i32
    %178 = vector.broadcast %cst_15 : f32 to vector<1x128xf32>
    %179 = arith.select %174, %178, %177 : vector<1x128xi1>, vector<1x128xf32>
    %180 = tpu.bitcast %179 : vector<1x128xf32> -> vector<1x128xi32>
    %181 = vector.broadcast %c-128_i32 : i32 to vector<1x128xi32>
    %182 = arith.andi %180, %181 : vector<1x128xi32>
    %183 = arith.ori %182, %26 : vector<1x128xi32>
    %184 = vector.shape_cast %183 : vector<1x128xi32> to vector<1x1x128xi32>
    %cst_40 = arith.constant dense<2147483647> : vector<1xi32>
    %185 = vector.multi_reduction <minsi>, %184, %cst_40 [1, 2] : vector<1x1x128xi32> to vector<1xi32>
    %186 = vector.shape_cast %185 : vector<1xi32> to vector<1x1x1xi32>
    %187 = vector.extract %186[0, 0, 0] : i32 from vector<1x1x1xi32>
    %188 = vector.broadcast %187 : i32 to vector<1x128xi32>
    %189 = arith.cmpi eq, %183, %188 : vector<1x128xi32>
    %c127_i32_41 = arith.constant 127 : i32
    %190 = arith.andi %187, %c127_i32_41 : i32
    %191 = arith.select %189, %177, %173 : vector<1x128xi1>, vector<1x128xf32>
    %192 = arith.ori %174, %189 : vector<1x128xi1>
    %193 = arith.index_cast %190 : i32 to index
    %c0_42 = arith.constant 0 : index
    %194 = vector.load %arg4[%193, %c0_42] : memref<64x128xf32, #tpu.memory_space<vmem>>, vector<1x128xf32>
    %195 = arith.minimumf %177, %194 : vector<1x128xf32>
    %c9_i32 = arith.constant 9 : i32
    %196 = vector.broadcast %cst_15 : f32 to vector<1x128xf32>
    %197 = arith.select %192, %196, %195 : vector<1x128xi1>, vector<1x128xf32>
    %198 = tpu.bitcast %197 : vector<1x128xf32> -> vector<1x128xi32>
    %199 = vector.broadcast %c-128_i32 : i32 to vector<1x128xi32>
    %200 = arith.andi %198, %199 : vector<1x128xi32>
    %201 = arith.ori %200, %26 : vector<1x128xi32>
    %202 = vector.shape_cast %201 : vector<1x128xi32> to vector<1x1x128xi32>
    %cst_43 = arith.constant dense<2147483647> : vector<1xi32>
    %203 = vector.multi_reduction <minsi>, %202, %cst_43 [1, 2] : vector<1x1x128xi32> to vector<1xi32>
    %204 = vector.shape_cast %203 : vector<1xi32> to vector<1x1x1xi32>
    %205 = vector.extract %204[0, 0, 0] : i32 from vector<1x1x1xi32>
    %206 = vector.broadcast %205 : i32 to vector<1x128xi32>
    %207 = arith.cmpi eq, %201, %206 : vector<1x128xi32>
    %c127_i32_44 = arith.constant 127 : i32
    %208 = arith.andi %205, %c127_i32_44 : i32
    %209 = arith.select %207, %195, %191 : vector<1x128xi1>, vector<1x128xf32>
    %210 = arith.ori %192, %207 : vector<1x128xi1>
    %211 = arith.index_cast %208 : i32 to index
    %c0_45 = arith.constant 0 : index
    %212 = vector.load %arg4[%211, %c0_45] : memref<64x128xf32, #tpu.memory_space<vmem>>, vector<1x128xf32>
    %213 = arith.minimumf %195, %212 : vector<1x128xf32>
    %c10_i32 = arith.constant 10 : i32
    %214 = vector.broadcast %cst_15 : f32 to vector<1x128xf32>
    %215 = arith.select %210, %214, %213 : vector<1x128xi1>, vector<1x128xf32>
    %216 = tpu.bitcast %215 : vector<1x128xf32> -> vector<1x128xi32>
    %217 = vector.broadcast %c-128_i32 : i32 to vector<1x128xi32>
    %218 = arith.andi %216, %217 : vector<1x128xi32>
    %219 = arith.ori %218, %26 : vector<1x128xi32>
    %220 = vector.shape_cast %219 : vector<1x128xi32> to vector<1x1x128xi32>
    %cst_46 = arith.constant dense<2147483647> : vector<1xi32>
    %221 = vector.multi_reduction <minsi>, %220, %cst_46 [1, 2] : vector<1x1x128xi32> to vector<1xi32>
    %222 = vector.shape_cast %221 : vector<1xi32> to vector<1x1x1xi32>
    %223 = vector.extract %222[0, 0, 0] : i32 from vector<1x1x1xi32>
    %224 = vector.broadcast %223 : i32 to vector<1x128xi32>
    %225 = arith.cmpi eq, %219, %224 : vector<1x128xi32>
    %c127_i32_47 = arith.constant 127 : i32
    %226 = arith.andi %223, %c127_i32_47 : i32
    %227 = arith.select %225, %213, %209 : vector<1x128xi1>, vector<1x128xf32>
    %228 = arith.ori %210, %225 : vector<1x128xi1>
    %229 = arith.index_cast %226 : i32 to index
    %c0_48 = arith.constant 0 : index
    %230 = vector.load %arg4[%229, %c0_48] : memref<64x128xf32, #tpu.memory_space<vmem>>, vector<1x128xf32>
    %231 = arith.minimumf %213, %230 : vector<1x128xf32>
    %c11_i32 = arith.constant 11 : i32
    %232 = vector.broadcast %cst_15 : f32 to vector<1x128xf32>
    %233 = arith.select %228, %232, %231 : vector<1x128xi1>, vector<1x128xf32>
    %234 = tpu.bitcast %233 : vector<1x128xf32> -> vector<1x128xi32>
    %235 = vector.broadcast %c-128_i32 : i32 to vector<1x128xi32>
    %236 = arith.andi %234, %235 : vector<1x128xi32>
    %237 = arith.ori %236, %26 : vector<1x128xi32>
    %238 = vector.shape_cast %237 : vector<1x128xi32> to vector<1x1x128xi32>
    %cst_49 = arith.constant dense<2147483647> : vector<1xi32>
    %239 = vector.multi_reduction <minsi>, %238, %cst_49 [1, 2] : vector<1x1x128xi32> to vector<1xi32>
    %240 = vector.shape_cast %239 : vector<1xi32> to vector<1x1x1xi32>
    %241 = vector.extract %240[0, 0, 0] : i32 from vector<1x1x1xi32>
    %242 = vector.broadcast %241 : i32 to vector<1x128xi32>
    %243 = arith.cmpi eq, %237, %242 : vector<1x128xi32>
    %c127_i32_50 = arith.constant 127 : i32
    %244 = arith.andi %241, %c127_i32_50 : i32
    %245 = arith.select %243, %231, %227 : vector<1x128xi1>, vector<1x128xf32>
    %246 = arith.ori %228, %243 : vector<1x128xi1>
    %247 = arith.index_cast %244 : i32 to index
    %c0_51 = arith.constant 0 : index
    %248 = vector.load %arg4[%247, %c0_51] : memref<64x128xf32, #tpu.memory_space<vmem>>, vector<1x128xf32>
    %249 = arith.minimumf %231, %248 : vector<1x128xf32>
    %c12_i32 = arith.constant 12 : i32
    %250 = vector.broadcast %cst_15 : f32 to vector<1x128xf32>
    %251 = arith.select %246, %250, %249 : vector<1x128xi1>, vector<1x128xf32>
    %252 = tpu.bitcast %251 : vector<1x128xf32> -> vector<1x128xi32>
    %253 = vector.broadcast %c-128_i32 : i32 to vector<1x128xi32>
    %254 = arith.andi %252, %253 : vector<1x128xi32>
    %255 = arith.ori %254, %26 : vector<1x128xi32>
    %256 = vector.shape_cast %255 : vector<1x128xi32> to vector<1x1x128xi32>
    %cst_52 = arith.constant dense<2147483647> : vector<1xi32>
    %257 = vector.multi_reduction <minsi>, %256, %cst_52 [1, 2] : vector<1x1x128xi32> to vector<1xi32>
    %258 = vector.shape_cast %257 : vector<1xi32> to vector<1x1x1xi32>
    %259 = vector.extract %258[0, 0, 0] : i32 from vector<1x1x1xi32>
    %260 = vector.broadcast %259 : i32 to vector<1x128xi32>
    %261 = arith.cmpi eq, %255, %260 : vector<1x128xi32>
    %c127_i32_53 = arith.constant 127 : i32
    %262 = arith.andi %259, %c127_i32_53 : i32
    %263 = arith.select %261, %249, %245 : vector<1x128xi1>, vector<1x128xf32>
    %264 = arith.ori %246, %261 : vector<1x128xi1>
    %265 = arith.index_cast %262 : i32 to index
    %c0_54 = arith.constant 0 : index
    %266 = vector.load %arg4[%265, %c0_54] : memref<64x128xf32, #tpu.memory_space<vmem>>, vector<1x128xf32>
    %267 = arith.minimumf %249, %266 : vector<1x128xf32>
    %c13_i32 = arith.constant 13 : i32
    %268 = vector.broadcast %cst_15 : f32 to vector<1x128xf32>
    %269 = arith.select %264, %268, %267 : vector<1x128xi1>, vector<1x128xf32>
    %270 = tpu.bitcast %269 : vector<1x128xf32> -> vector<1x128xi32>
    %271 = vector.broadcast %c-128_i32 : i32 to vector<1x128xi32>
    %272 = arith.andi %270, %271 : vector<1x128xi32>
    %273 = arith.ori %272, %26 : vector<1x128xi32>
    %274 = vector.shape_cast %273 : vector<1x128xi32> to vector<1x1x128xi32>
    %cst_55 = arith.constant dense<2147483647> : vector<1xi32>
    %275 = vector.multi_reduction <minsi>, %274, %cst_55 [1, 2] : vector<1x1x128xi32> to vector<1xi32>
    %276 = vector.shape_cast %275 : vector<1xi32> to vector<1x1x1xi32>
    %277 = vector.extract %276[0, 0, 0] : i32 from vector<1x1x1xi32>
    %278 = vector.broadcast %277 : i32 to vector<1x128xi32>
    %279 = arith.cmpi eq, %273, %278 : vector<1x128xi32>
    %c127_i32_56 = arith.constant 127 : i32
    %280 = arith.andi %277, %c127_i32_56 : i32
    %281 = arith.select %279, %267, %263 : vector<1x128xi1>, vector<1x128xf32>
    %282 = arith.ori %264, %279 : vector<1x128xi1>
    %283 = arith.index_cast %280 : i32 to index
    %c0_57 = arith.constant 0 : index
    %284 = vector.load %arg4[%283, %c0_57] : memref<64x128xf32, #tpu.memory_space<vmem>>, vector<1x128xf32>
    %285 = arith.minimumf %267, %284 : vector<1x128xf32>
    %c14_i32 = arith.constant 14 : i32
    %286 = vector.broadcast %cst_15 : f32 to vector<1x128xf32>
    %287 = arith.select %282, %286, %285 : vector<1x128xi1>, vector<1x128xf32>
    %288 = tpu.bitcast %287 : vector<1x128xf32> -> vector<1x128xi32>
    %289 = vector.broadcast %c-128_i32 : i32 to vector<1x128xi32>
    %290 = arith.andi %288, %289 : vector<1x128xi32>
    %291 = arith.ori %290, %26 : vector<1x128xi32>
    %292 = vector.shape_cast %291 : vector<1x128xi32> to vector<1x1x128xi32>
    %cst_58 = arith.constant dense<2147483647> : vector<1xi32>
    %293 = vector.multi_reduction <minsi>, %292, %cst_58 [1, 2] : vector<1x1x128xi32> to vector<1xi32>
    %294 = vector.shape_cast %293 : vector<1xi32> to vector<1x1x1xi32>
    %295 = vector.extract %294[0, 0, 0] : i32 from vector<1x1x1xi32>
    %296 = vector.broadcast %295 : i32 to vector<1x128xi32>
    %297 = arith.cmpi eq, %291, %296 : vector<1x128xi32>
    %c127_i32_59 = arith.constant 127 : i32
    %298 = arith.andi %295, %c127_i32_59 : i32
    %299 = arith.select %297, %285, %281 : vector<1x128xi1>, vector<1x128xf32>
    %300 = arith.ori %282, %297 : vector<1x128xi1>
    %301 = arith.index_cast %298 : i32 to index
    %c0_60 = arith.constant 0 : index
    %302 = vector.load %arg4[%301, %c0_60] : memref<64x128xf32, #tpu.memory_space<vmem>>, vector<1x128xf32>
    %303 = arith.minimumf %285, %302 : vector<1x128xf32>
    %c15_i32 = arith.constant 15 : i32
    %304 = vector.broadcast %cst_15 : f32 to vector<1x128xf32>
    %305 = arith.select %300, %304, %303 : vector<1x128xi1>, vector<1x128xf32>
    %306 = tpu.bitcast %305 : vector<1x128xf32> -> vector<1x128xi32>
    %307 = vector.broadcast %c-128_i32 : i32 to vector<1x128xi32>
    %308 = arith.andi %306, %307 : vector<1x128xi32>
    %309 = arith.ori %308, %26 : vector<1x128xi32>
    %310 = vector.shape_cast %309 : vector<1x128xi32> to vector<1x1x128xi32>
    %cst_61 = arith.constant dense<2147483647> : vector<1xi32>
    %311 = vector.multi_reduction <minsi>, %310, %cst_61 [1, 2] : vector<1x1x128xi32> to vector<1xi32>
    %312 = vector.shape_cast %311 : vector<1xi32> to vector<1x1x1xi32>
    %313 = vector.extract %312[0, 0, 0] : i32 from vector<1x1x1xi32>
    %314 = vector.broadcast %313 : i32 to vector<1x128xi32>
    %315 = arith.cmpi eq, %309, %314 : vector<1x128xi32>
    %c127_i32_62 = arith.constant 127 : i32
    %316 = arith.andi %313, %c127_i32_62 : i32
    %317 = arith.select %315, %303, %299 : vector<1x128xi1>, vector<1x128xf32>
    %318 = arith.ori %300, %315 : vector<1x128xi1>
    %319 = arith.index_cast %316 : i32 to index
    %c0_63 = arith.constant 0 : index
    %320 = vector.load %arg4[%319, %c0_63] : memref<64x128xf32, #tpu.memory_space<vmem>>, vector<1x128xf32>
    %321 = arith.minimumf %303, %320 : vector<1x128xf32>
    %c16_i32 = arith.constant 16 : i32
    %322 = vector.broadcast %cst_15 : f32 to vector<1x128xf32>
    %323 = arith.select %318, %322, %321 : vector<1x128xi1>, vector<1x128xf32>
    %324 = tpu.bitcast %323 : vector<1x128xf32> -> vector<1x128xi32>
    %325 = vector.broadcast %c-128_i32 : i32 to vector<1x128xi32>
    %326 = arith.andi %324, %325 : vector<1x128xi32>
    %327 = arith.ori %326, %26 : vector<1x128xi32>
    %328 = vector.shape_cast %327 : vector<1x128xi32> to vector<1x1x128xi32>
    %cst_64 = arith.constant dense<2147483647> : vector<1xi32>
    %329 = vector.multi_reduction <minsi>, %328, %cst_64 [1, 2] : vector<1x1x128xi32> to vector<1xi32>
    %330 = vector.shape_cast %329 : vector<1xi32> to vector<1x1x1xi32>
    %331 = vector.extract %330[0, 0, 0] : i32 from vector<1x1x1xi32>
    %332 = vector.broadcast %331 : i32 to vector<1x128xi32>
    %333 = arith.cmpi eq, %327, %332 : vector<1x128xi32>
    %c127_i32_65 = arith.constant 127 : i32
    %334 = arith.andi %331, %c127_i32_65 : i32
    %335 = arith.select %333, %321, %317 : vector<1x128xi1>, vector<1x128xf32>
    %336 = arith.ori %318, %333 : vector<1x128xi1>
    %337 = arith.index_cast %334 : i32 to index
    %c0_66 = arith.constant 0 : index
    %338 = vector.load %arg4[%337, %c0_66] : memref<64x128xf32, #tpu.memory_space<vmem>>, vector<1x128xf32>
    %339 = arith.minimumf %321, %338 : vector<1x128xf32>
    %c17_i32 = arith.constant 17 : i32
    %340 = vector.broadcast %cst_15 : f32 to vector<1x128xf32>
    %341 = arith.select %336, %340, %339 : vector<1x128xi1>, vector<1x128xf32>
    %342 = tpu.bitcast %341 : vector<1x128xf32> -> vector<1x128xi32>
    %343 = vector.broadcast %c-128_i32 : i32 to vector<1x128xi32>
    %344 = arith.andi %342, %343 : vector<1x128xi32>
    %345 = arith.ori %344, %26 : vector<1x128xi32>
    %346 = vector.shape_cast %345 : vector<1x128xi32> to vector<1x1x128xi32>
    %cst_67 = arith.constant dense<2147483647> : vector<1xi32>
    %347 = vector.multi_reduction <minsi>, %346, %cst_67 [1, 2] : vector<1x1x128xi32> to vector<1xi32>
    %348 = vector.shape_cast %347 : vector<1xi32> to vector<1x1x1xi32>
    %349 = vector.extract %348[0, 0, 0] : i32 from vector<1x1x1xi32>
    %350 = vector.broadcast %349 : i32 to vector<1x128xi32>
    %351 = arith.cmpi eq, %345, %350 : vector<1x128xi32>
    %c127_i32_68 = arith.constant 127 : i32
    %352 = arith.andi %349, %c127_i32_68 : i32
    %353 = arith.select %351, %339, %335 : vector<1x128xi1>, vector<1x128xf32>
    %354 = arith.ori %336, %351 : vector<1x128xi1>
    %355 = arith.index_cast %352 : i32 to index
    %c0_69 = arith.constant 0 : index
    %356 = vector.load %arg4[%355, %c0_69] : memref<64x128xf32, #tpu.memory_space<vmem>>, vector<1x128xf32>
    %357 = arith.minimumf %339, %356 : vector<1x128xf32>
    %c18_i32 = arith.constant 18 : i32
    %358 = vector.broadcast %cst_15 : f32 to vector<1x128xf32>
    %359 = arith.select %354, %358, %357 : vector<1x128xi1>, vector<1x128xf32>
    %360 = tpu.bitcast %359 : vector<1x128xf32> -> vector<1x128xi32>
    %361 = vector.broadcast %c-128_i32 : i32 to vector<1x128xi32>
    %362 = arith.andi %360, %361 : vector<1x128xi32>
    %363 = arith.ori %362, %26 : vector<1x128xi32>
    %364 = vector.shape_cast %363 : vector<1x128xi32> to vector<1x1x128xi32>
    %cst_70 = arith.constant dense<2147483647> : vector<1xi32>
    %365 = vector.multi_reduction <minsi>, %364, %cst_70 [1, 2] : vector<1x1x128xi32> to vector<1xi32>
    %366 = vector.shape_cast %365 : vector<1xi32> to vector<1x1x1xi32>
    %367 = vector.extract %366[0, 0, 0] : i32 from vector<1x1x1xi32>
    %368 = vector.broadcast %367 : i32 to vector<1x128xi32>
    %369 = arith.cmpi eq, %363, %368 : vector<1x128xi32>
    %c127_i32_71 = arith.constant 127 : i32
    %370 = arith.andi %367, %c127_i32_71 : i32
    %371 = arith.select %369, %357, %353 : vector<1x128xi1>, vector<1x128xf32>
    %372 = arith.ori %354, %369 : vector<1x128xi1>
    %373 = arith.index_cast %370 : i32 to index
    %c0_72 = arith.constant 0 : index
    %374 = vector.load %arg4[%373, %c0_72] : memref<64x128xf32, #tpu.memory_space<vmem>>, vector<1x128xf32>
    %375 = arith.minimumf %357, %374 : vector<1x128xf32>
    %c19_i32 = arith.constant 19 : i32
    %376 = vector.broadcast %cst_15 : f32 to vector<1x128xf32>
    %377 = arith.select %372, %376, %375 : vector<1x128xi1>, vector<1x128xf32>
    %378 = tpu.bitcast %377 : vector<1x128xf32> -> vector<1x128xi32>
    %379 = vector.broadcast %c-128_i32 : i32 to vector<1x128xi32>
    %380 = arith.andi %378, %379 : vector<1x128xi32>
    %381 = arith.ori %380, %26 : vector<1x128xi32>
    %382 = vector.shape_cast %381 : vector<1x128xi32> to vector<1x1x128xi32>
    %cst_73 = arith.constant dense<2147483647> : vector<1xi32>
    %383 = vector.multi_reduction <minsi>, %382, %cst_73 [1, 2] : vector<1x1x128xi32> to vector<1xi32>
    %384 = vector.shape_cast %383 : vector<1xi32> to vector<1x1x1xi32>
    %385 = vector.extract %384[0, 0, 0] : i32 from vector<1x1x1xi32>
    %386 = vector.broadcast %385 : i32 to vector<1x128xi32>
    %387 = arith.cmpi eq, %381, %386 : vector<1x128xi32>
    %c127_i32_74 = arith.constant 127 : i32
    %388 = arith.andi %385, %c127_i32_74 : i32
    %389 = arith.select %387, %375, %371 : vector<1x128xi1>, vector<1x128xf32>
    %390 = arith.ori %372, %387 : vector<1x128xi1>
    %391 = arith.index_cast %388 : i32 to index
    %c0_75 = arith.constant 0 : index
    %392 = vector.load %arg4[%391, %c0_75] : memref<64x128xf32, #tpu.memory_space<vmem>>, vector<1x128xf32>
    %393 = arith.minimumf %375, %392 : vector<1x128xf32>
    %c20_i32 = arith.constant 20 : i32
    %394 = vector.broadcast %cst_15 : f32 to vector<1x128xf32>
    %395 = arith.select %390, %394, %393 : vector<1x128xi1>, vector<1x128xf32>
    %396 = tpu.bitcast %395 : vector<1x128xf32> -> vector<1x128xi32>
    %397 = vector.broadcast %c-128_i32 : i32 to vector<1x128xi32>
    %398 = arith.andi %396, %397 : vector<1x128xi32>
    %399 = arith.ori %398, %26 : vector<1x128xi32>
    %400 = vector.shape_cast %399 : vector<1x128xi32> to vector<1x1x128xi32>
    %cst_76 = arith.constant dense<2147483647> : vector<1xi32>
    %401 = vector.multi_reduction <minsi>, %400, %cst_76 [1, 2] : vector<1x1x128xi32> to vector<1xi32>
    %402 = vector.shape_cast %401 : vector<1xi32> to vector<1x1x1xi32>
    %403 = vector.extract %402[0, 0, 0] : i32 from vector<1x1x1xi32>
    %404 = vector.broadcast %403 : i32 to vector<1x128xi32>
    %405 = arith.cmpi eq, %399, %404 : vector<1x128xi32>
    %c127_i32_77 = arith.constant 127 : i32
    %406 = arith.andi %403, %c127_i32_77 : i32
    %407 = arith.select %405, %393, %389 : vector<1x128xi1>, vector<1x128xf32>
    %408 = arith.ori %390, %405 : vector<1x128xi1>
    %409 = arith.index_cast %406 : i32 to index
    %c0_78 = arith.constant 0 : index
    %410 = vector.load %arg4[%409, %c0_78] : memref<64x128xf32, #tpu.memory_space<vmem>>, vector<1x128xf32>
    %411 = arith.minimumf %393, %410 : vector<1x128xf32>
    %c21_i32 = arith.constant 21 : i32
    %412 = vector.broadcast %cst_15 : f32 to vector<1x128xf32>
    %413 = arith.select %408, %412, %411 : vector<1x128xi1>, vector<1x128xf32>
    %414 = tpu.bitcast %413 : vector<1x128xf32> -> vector<1x128xi32>
    %415 = vector.broadcast %c-128_i32 : i32 to vector<1x128xi32>
    %416 = arith.andi %414, %415 : vector<1x128xi32>
    %417 = arith.ori %416, %26 : vector<1x128xi32>
    %418 = vector.shape_cast %417 : vector<1x128xi32> to vector<1x1x128xi32>
    %cst_79 = arith.constant dense<2147483647> : vector<1xi32>
    %419 = vector.multi_reduction <minsi>, %418, %cst_79 [1, 2] : vector<1x1x128xi32> to vector<1xi32>
    %420 = vector.shape_cast %419 : vector<1xi32> to vector<1x1x1xi32>
    %421 = vector.extract %420[0, 0, 0] : i32 from vector<1x1x1xi32>
    %422 = vector.broadcast %421 : i32 to vector<1x128xi32>
    %423 = arith.cmpi eq, %417, %422 : vector<1x128xi32>
    %c127_i32_80 = arith.constant 127 : i32
    %424 = arith.andi %421, %c127_i32_80 : i32
    %425 = arith.select %423, %411, %407 : vector<1x128xi1>, vector<1x128xf32>
    %426 = arith.ori %408, %423 : vector<1x128xi1>
    %427 = arith.index_cast %424 : i32 to index
    %c0_81 = arith.constant 0 : index
    %428 = vector.load %arg4[%427, %c0_81] : memref<64x128xf32, #tpu.memory_space<vmem>>, vector<1x128xf32>
    %429 = arith.minimumf %411, %428 : vector<1x128xf32>
    %c22_i32 = arith.constant 22 : i32
    %430 = vector.broadcast %cst_15 : f32 to vector<1x128xf32>
    %431 = arith.select %426, %430, %429 : vector<1x128xi1>, vector<1x128xf32>
    %432 = tpu.bitcast %431 : vector<1x128xf32> -> vector<1x128xi32>
    %433 = vector.broadcast %c-128_i32 : i32 to vector<1x128xi32>
    %434 = arith.andi %432, %433 : vector<1x128xi32>
    %435 = arith.ori %434, %26 : vector<1x128xi32>
    %436 = vector.shape_cast %435 : vector<1x128xi32> to vector<1x1x128xi32>
    %cst_82 = arith.constant dense<2147483647> : vector<1xi32>
    %437 = vector.multi_reduction <minsi>, %436, %cst_82 [1, 2] : vector<1x1x128xi32> to vector<1xi32>
    %438 = vector.shape_cast %437 : vector<1xi32> to vector<1x1x1xi32>
    %439 = vector.extract %438[0, 0, 0] : i32 from vector<1x1x1xi32>
    %440 = vector.broadcast %439 : i32 to vector<1x128xi32>
    %441 = arith.cmpi eq, %435, %440 : vector<1x128xi32>
    %c127_i32_83 = arith.constant 127 : i32
    %442 = arith.andi %439, %c127_i32_83 : i32
    %443 = arith.select %441, %429, %425 : vector<1x128xi1>, vector<1x128xf32>
    %444 = arith.ori %426, %441 : vector<1x128xi1>
    %445 = arith.index_cast %442 : i32 to index
    %c0_84 = arith.constant 0 : index
    %446 = vector.load %arg4[%445, %c0_84] : memref<64x128xf32, #tpu.memory_space<vmem>>, vector<1x128xf32>
    %447 = arith.minimumf %429, %446 : vector<1x128xf32>
    %c23_i32 = arith.constant 23 : i32
    %448 = vector.broadcast %cst_15 : f32 to vector<1x128xf32>
    %449 = arith.select %444, %448, %447 : vector<1x128xi1>, vector<1x128xf32>
    %450 = tpu.bitcast %449 : vector<1x128xf32> -> vector<1x128xi32>
    %451 = vector.broadcast %c-128_i32 : i32 to vector<1x128xi32>
    %452 = arith.andi %450, %451 : vector<1x128xi32>
    %453 = arith.ori %452, %26 : vector<1x128xi32>
    %454 = vector.shape_cast %453 : vector<1x128xi32> to vector<1x1x128xi32>
    %cst_85 = arith.constant dense<2147483647> : vector<1xi32>
    %455 = vector.multi_reduction <minsi>, %454, %cst_85 [1, 2] : vector<1x1x128xi32> to vector<1xi32>
    %456 = vector.shape_cast %455 : vector<1xi32> to vector<1x1x1xi32>
    %457 = vector.extract %456[0, 0, 0] : i32 from vector<1x1x1xi32>
    %458 = vector.broadcast %457 : i32 to vector<1x128xi32>
    %459 = arith.cmpi eq, %453, %458 : vector<1x128xi32>
    %c127_i32_86 = arith.constant 127 : i32
    %460 = arith.andi %457, %c127_i32_86 : i32
    %461 = arith.select %459, %447, %443 : vector<1x128xi1>, vector<1x128xf32>
    %462 = arith.ori %444, %459 : vector<1x128xi1>
    %463 = arith.index_cast %460 : i32 to index
    %c0_87 = arith.constant 0 : index
    %464 = vector.load %arg4[%463, %c0_87] : memref<64x128xf32, #tpu.memory_space<vmem>>, vector<1x128xf32>
    %465 = arith.minimumf %447, %464 : vector<1x128xf32>
    %c24_i32 = arith.constant 24 : i32
    %466 = vector.broadcast %cst_15 : f32 to vector<1x128xf32>
    %467 = arith.select %462, %466, %465 : vector<1x128xi1>, vector<1x128xf32>
    %468 = tpu.bitcast %467 : vector<1x128xf32> -> vector<1x128xi32>
    %469 = vector.broadcast %c-128_i32 : i32 to vector<1x128xi32>
    %470 = arith.andi %468, %469 : vector<1x128xi32>
    %471 = arith.ori %470, %26 : vector<1x128xi32>
    %472 = vector.shape_cast %471 : vector<1x128xi32> to vector<1x1x128xi32>
    %cst_88 = arith.constant dense<2147483647> : vector<1xi32>
    %473 = vector.multi_reduction <minsi>, %472, %cst_88 [1, 2] : vector<1x1x128xi32> to vector<1xi32>
    %474 = vector.shape_cast %473 : vector<1xi32> to vector<1x1x1xi32>
    %475 = vector.extract %474[0, 0, 0] : i32 from vector<1x1x1xi32>
    %476 = vector.broadcast %475 : i32 to vector<1x128xi32>
    %477 = arith.cmpi eq, %471, %476 : vector<1x128xi32>
    %c127_i32_89 = arith.constant 127 : i32
    %478 = arith.andi %475, %c127_i32_89 : i32
    %479 = arith.select %477, %465, %461 : vector<1x128xi1>, vector<1x128xf32>
    %480 = arith.ori %462, %477 : vector<1x128xi1>
    %481 = arith.index_cast %478 : i32 to index
    %c0_90 = arith.constant 0 : index
    %482 = vector.load %arg4[%481, %c0_90] : memref<64x128xf32, #tpu.memory_space<vmem>>, vector<1x128xf32>
    %483 = arith.minimumf %465, %482 : vector<1x128xf32>
    %c25_i32 = arith.constant 25 : i32
    %484 = vector.broadcast %cst_15 : f32 to vector<1x128xf32>
    %485 = arith.select %480, %484, %483 : vector<1x128xi1>, vector<1x128xf32>
    %486 = tpu.bitcast %485 : vector<1x128xf32> -> vector<1x128xi32>
    %487 = vector.broadcast %c-128_i32 : i32 to vector<1x128xi32>
    %488 = arith.andi %486, %487 : vector<1x128xi32>
    %489 = arith.ori %488, %26 : vector<1x128xi32>
    %490 = vector.shape_cast %489 : vector<1x128xi32> to vector<1x1x128xi32>
    %cst_91 = arith.constant dense<2147483647> : vector<1xi32>
    %491 = vector.multi_reduction <minsi>, %490, %cst_91 [1, 2] : vector<1x1x128xi32> to vector<1xi32>
    %492 = vector.shape_cast %491 : vector<1xi32> to vector<1x1x1xi32>
    %493 = vector.extract %492[0, 0, 0] : i32 from vector<1x1x1xi32>
    %494 = vector.broadcast %493 : i32 to vector<1x128xi32>
    %495 = arith.cmpi eq, %489, %494 : vector<1x128xi32>
    %c127_i32_92 = arith.constant 127 : i32
    %496 = arith.andi %493, %c127_i32_92 : i32
    %497 = arith.select %495, %483, %479 : vector<1x128xi1>, vector<1x128xf32>
    %498 = arith.ori %480, %495 : vector<1x128xi1>
    %499 = arith.index_cast %496 : i32 to index
    %c0_93 = arith.constant 0 : index
    %500 = vector.load %arg4[%499, %c0_93] : memref<64x128xf32, #tpu.memory_space<vmem>>, vector<1x128xf32>
    %501 = arith.minimumf %483, %500 : vector<1x128xf32>
    %c26_i32 = arith.constant 26 : i32
    %502 = vector.broadcast %cst_15 : f32 to vector<1x128xf32>
    %503 = arith.select %498, %502, %501 : vector<1x128xi1>, vector<1x128xf32>
    %504 = tpu.bitcast %503 : vector<1x128xf32> -> vector<1x128xi32>
    %505 = vector.broadcast %c-128_i32 : i32 to vector<1x128xi32>
    %506 = arith.andi %504, %505 : vector<1x128xi32>
    %507 = arith.ori %506, %26 : vector<1x128xi32>
    %508 = vector.shape_cast %507 : vector<1x128xi32> to vector<1x1x128xi32>
    %cst_94 = arith.constant dense<2147483647> : vector<1xi32>
    %509 = vector.multi_reduction <minsi>, %508, %cst_94 [1, 2] : vector<1x1x128xi32> to vector<1xi32>
    %510 = vector.shape_cast %509 : vector<1xi32> to vector<1x1x1xi32>
    %511 = vector.extract %510[0, 0, 0] : i32 from vector<1x1x1xi32>
    %512 = vector.broadcast %511 : i32 to vector<1x128xi32>
    %513 = arith.cmpi eq, %507, %512 : vector<1x128xi32>
    %c127_i32_95 = arith.constant 127 : i32
    %514 = arith.andi %511, %c127_i32_95 : i32
    %515 = arith.select %513, %501, %497 : vector<1x128xi1>, vector<1x128xf32>
    %516 = arith.ori %498, %513 : vector<1x128xi1>
    %517 = arith.index_cast %514 : i32 to index
    %c0_96 = arith.constant 0 : index
    %518 = vector.load %arg4[%517, %c0_96] : memref<64x128xf32, #tpu.memory_space<vmem>>, vector<1x128xf32>
    %519 = arith.minimumf %501, %518 : vector<1x128xf32>
    %c27_i32 = arith.constant 27 : i32
    %520 = vector.broadcast %cst_15 : f32 to vector<1x128xf32>
    %521 = arith.select %516, %520, %519 : vector<1x128xi1>, vector<1x128xf32>
    %522 = tpu.bitcast %521 : vector<1x128xf32> -> vector<1x128xi32>
    %523 = vector.broadcast %c-128_i32 : i32 to vector<1x128xi32>
    %524 = arith.andi %522, %523 : vector<1x128xi32>
    %525 = arith.ori %524, %26 : vector<1x128xi32>
    %526 = vector.shape_cast %525 : vector<1x128xi32> to vector<1x1x128xi32>
    %cst_97 = arith.constant dense<2147483647> : vector<1xi32>
    %527 = vector.multi_reduction <minsi>, %526, %cst_97 [1, 2] : vector<1x1x128xi32> to vector<1xi32>
    %528 = vector.shape_cast %527 : vector<1xi32> to vector<1x1x1xi32>
    %529 = vector.extract %528[0, 0, 0] : i32 from vector<1x1x1xi32>
    %530 = vector.broadcast %529 : i32 to vector<1x128xi32>
    %531 = arith.cmpi eq, %525, %530 : vector<1x128xi32>
    %c127_i32_98 = arith.constant 127 : i32
    %532 = arith.andi %529, %c127_i32_98 : i32
    %533 = arith.select %531, %519, %515 : vector<1x128xi1>, vector<1x128xf32>
    %534 = arith.ori %516, %531 : vector<1x128xi1>
    %535 = arith.index_cast %532 : i32 to index
    %c0_99 = arith.constant 0 : index
    %536 = vector.load %arg4[%535, %c0_99] : memref<64x128xf32, #tpu.memory_space<vmem>>, vector<1x128xf32>
    %537 = arith.minimumf %519, %536 : vector<1x128xf32>
    %c28_i32 = arith.constant 28 : i32
    %538 = vector.broadcast %cst_15 : f32 to vector<1x128xf32>
    %539 = arith.select %534, %538, %537 : vector<1x128xi1>, vector<1x128xf32>
    %540 = tpu.bitcast %539 : vector<1x128xf32> -> vector<1x128xi32>
    %541 = vector.broadcast %c-128_i32 : i32 to vector<1x128xi32>
    %542 = arith.andi %540, %541 : vector<1x128xi32>
    %543 = arith.ori %542, %26 : vector<1x128xi32>
    %544 = vector.shape_cast %543 : vector<1x128xi32> to vector<1x1x128xi32>
    %cst_100 = arith.constant dense<2147483647> : vector<1xi32>
    %545 = vector.multi_reduction <minsi>, %544, %cst_100 [1, 2] : vector<1x1x128xi32> to vector<1xi32>
    %546 = vector.shape_cast %545 : vector<1xi32> to vector<1x1x1xi32>
    %547 = vector.extract %546[0, 0, 0] : i32 from vector<1x1x1xi32>
    %548 = vector.broadcast %547 : i32 to vector<1x128xi32>
    %549 = arith.cmpi eq, %543, %548 : vector<1x128xi32>
    %c127_i32_101 = arith.constant 127 : i32
    %550 = arith.andi %547, %c127_i32_101 : i32
    %551 = arith.select %549, %537, %533 : vector<1x128xi1>, vector<1x128xf32>
    %552 = arith.ori %534, %549 : vector<1x128xi1>
    %553 = arith.index_cast %550 : i32 to index
    %c0_102 = arith.constant 0 : index
    %554 = vector.load %arg4[%553, %c0_102] : memref<64x128xf32, #tpu.memory_space<vmem>>, vector<1x128xf32>
    %555 = arith.minimumf %537, %554 : vector<1x128xf32>
    %c29_i32 = arith.constant 29 : i32
    %556 = vector.broadcast %cst_15 : f32 to vector<1x128xf32>
    %557 = arith.select %552, %556, %555 : vector<1x128xi1>, vector<1x128xf32>
    %558 = tpu.bitcast %557 : vector<1x128xf32> -> vector<1x128xi32>
    %559 = vector.broadcast %c-128_i32 : i32 to vector<1x128xi32>
    %560 = arith.andi %558, %559 : vector<1x128xi32>
    %561 = arith.ori %560, %26 : vector<1x128xi32>
    %562 = vector.shape_cast %561 : vector<1x128xi32> to vector<1x1x128xi32>
    %cst_103 = arith.constant dense<2147483647> : vector<1xi32>
    %563 = vector.multi_reduction <minsi>, %562, %cst_103 [1, 2] : vector<1x1x128xi32> to vector<1xi32>
    %564 = vector.shape_cast %563 : vector<1xi32> to vector<1x1x1xi32>
    %565 = vector.extract %564[0, 0, 0] : i32 from vector<1x1x1xi32>
    %566 = vector.broadcast %565 : i32 to vector<1x128xi32>
    %567 = arith.cmpi eq, %561, %566 : vector<1x128xi32>
    %c127_i32_104 = arith.constant 127 : i32
    %568 = arith.andi %565, %c127_i32_104 : i32
    %569 = arith.select %567, %555, %551 : vector<1x128xi1>, vector<1x128xf32>
    %570 = arith.ori %552, %567 : vector<1x128xi1>
    %571 = arith.index_cast %568 : i32 to index
    %c0_105 = arith.constant 0 : index
    %572 = vector.load %arg4[%571, %c0_105] : memref<64x128xf32, #tpu.memory_space<vmem>>, vector<1x128xf32>
    %573 = arith.minimumf %555, %572 : vector<1x128xf32>
    %c30_i32 = arith.constant 30 : i32
    %574 = vector.broadcast %cst_15 : f32 to vector<1x128xf32>
    %575 = arith.select %570, %574, %573 : vector<1x128xi1>, vector<1x128xf32>
    %576 = tpu.bitcast %575 : vector<1x128xf32> -> vector<1x128xi32>
    %577 = vector.broadcast %c-128_i32 : i32 to vector<1x128xi32>
    %578 = arith.andi %576, %577 : vector<1x128xi32>
    %579 = arith.ori %578, %26 : vector<1x128xi32>
    %580 = vector.shape_cast %579 : vector<1x128xi32> to vector<1x1x128xi32>
    %cst_106 = arith.constant dense<2147483647> : vector<1xi32>
    %581 = vector.multi_reduction <minsi>, %580, %cst_106 [1, 2] : vector<1x1x128xi32> to vector<1xi32>
    %582 = vector.shape_cast %581 : vector<1xi32> to vector<1x1x1xi32>
    %583 = vector.extract %582[0, 0, 0] : i32 from vector<1x1x1xi32>
    %584 = vector.broadcast %583 : i32 to vector<1x128xi32>
    %585 = arith.cmpi eq, %579, %584 : vector<1x128xi32>
    %c127_i32_107 = arith.constant 127 : i32
    %586 = arith.andi %583, %c127_i32_107 : i32
    %587 = arith.select %585, %573, %569 : vector<1x128xi1>, vector<1x128xf32>
    %588 = arith.ori %570, %585 : vector<1x128xi1>
    %589 = arith.index_cast %586 : i32 to index
    %c0_108 = arith.constant 0 : index
    %590 = vector.load %arg4[%589, %c0_108] : memref<64x128xf32, #tpu.memory_space<vmem>>, vector<1x128xf32>
    %591 = arith.minimumf %573, %590 : vector<1x128xf32>
    %c31_i32 = arith.constant 31 : i32
    %592 = vector.broadcast %cst_15 : f32 to vector<1x128xf32>
    %593 = arith.select %588, %592, %591 : vector<1x128xi1>, vector<1x128xf32>
    %594 = tpu.bitcast %593 : vector<1x128xf32> -> vector<1x128xi32>
    %595 = vector.broadcast %c-128_i32 : i32 to vector<1x128xi32>
    %596 = arith.andi %594, %595 : vector<1x128xi32>
    %597 = arith.ori %596, %26 : vector<1x128xi32>
    %598 = vector.shape_cast %597 : vector<1x128xi32> to vector<1x1x128xi32>
    %cst_109 = arith.constant dense<2147483647> : vector<1xi32>
    %599 = vector.multi_reduction <minsi>, %598, %cst_109 [1, 2] : vector<1x1x128xi32> to vector<1xi32>
    %600 = vector.shape_cast %599 : vector<1xi32> to vector<1x1x1xi32>
    %601 = vector.extract %600[0, 0, 0] : i32 from vector<1x1x1xi32>
    %602 = vector.broadcast %601 : i32 to vector<1x128xi32>
    %603 = arith.cmpi eq, %597, %602 : vector<1x128xi32>
    %c127_i32_110 = arith.constant 127 : i32
    %604 = arith.andi %601, %c127_i32_110 : i32
    %605 = arith.select %603, %591, %587 : vector<1x128xi1>, vector<1x128xf32>
    %606 = arith.ori %588, %603 : vector<1x128xi1>
    %607 = arith.index_cast %604 : i32 to index
    %c0_111 = arith.constant 0 : index
    %608 = vector.load %arg4[%607, %c0_111] : memref<64x128xf32, #tpu.memory_space<vmem>>, vector<1x128xf32>
    %609 = arith.minimumf %591, %608 : vector<1x128xf32>
    %c32_i32 = arith.constant 32 : i32
    %610 = vector.broadcast %cst_15 : f32 to vector<1x128xf32>
    %611 = arith.select %606, %610, %609 : vector<1x128xi1>, vector<1x128xf32>
    %612 = tpu.bitcast %611 : vector<1x128xf32> -> vector<1x128xi32>
    %613 = vector.broadcast %c-128_i32 : i32 to vector<1x128xi32>
    %614 = arith.andi %612, %613 : vector<1x128xi32>
    %615 = arith.ori %614, %26 : vector<1x128xi32>
    %616 = vector.shape_cast %615 : vector<1x128xi32> to vector<1x1x128xi32>
    %cst_112 = arith.constant dense<2147483647> : vector<1xi32>
    %617 = vector.multi_reduction <minsi>, %616, %cst_112 [1, 2] : vector<1x1x128xi32> to vector<1xi32>
    %618 = vector.shape_cast %617 : vector<1xi32> to vector<1x1x1xi32>
    %619 = vector.extract %618[0, 0, 0] : i32 from vector<1x1x1xi32>
    %620 = vector.broadcast %619 : i32 to vector<1x128xi32>
    %621 = arith.cmpi eq, %615, %620 : vector<1x128xi32>
    %c127_i32_113 = arith.constant 127 : i32
    %622 = arith.andi %619, %c127_i32_113 : i32
    %623 = arith.select %621, %609, %605 : vector<1x128xi1>, vector<1x128xf32>
    %624 = arith.ori %606, %621 : vector<1x128xi1>
    %625 = arith.index_cast %622 : i32 to index
    %c0_114 = arith.constant 0 : index
    %626 = vector.load %arg4[%625, %c0_114] : memref<64x128xf32, #tpu.memory_space<vmem>>, vector<1x128xf32>
    %627 = arith.minimumf %609, %626 : vector<1x128xf32>
    %c33_i32 = arith.constant 33 : i32
    %628 = vector.broadcast %cst_15 : f32 to vector<1x128xf32>
    %629 = arith.select %624, %628, %627 : vector<1x128xi1>, vector<1x128xf32>
    %630 = tpu.bitcast %629 : vector<1x128xf32> -> vector<1x128xi32>
    %631 = vector.broadcast %c-128_i32 : i32 to vector<1x128xi32>
    %632 = arith.andi %630, %631 : vector<1x128xi32>
    %633 = arith.ori %632, %26 : vector<1x128xi32>
    %634 = vector.shape_cast %633 : vector<1x128xi32> to vector<1x1x128xi32>
    %cst_115 = arith.constant dense<2147483647> : vector<1xi32>
    %635 = vector.multi_reduction <minsi>, %634, %cst_115 [1, 2] : vector<1x1x128xi32> to vector<1xi32>
    %636 = vector.shape_cast %635 : vector<1xi32> to vector<1x1x1xi32>
    %637 = vector.extract %636[0, 0, 0] : i32 from vector<1x1x1xi32>
    %638 = vector.broadcast %637 : i32 to vector<1x128xi32>
    %639 = arith.cmpi eq, %633, %638 : vector<1x128xi32>
    %c127_i32_116 = arith.constant 127 : i32
    %640 = arith.andi %637, %c127_i32_116 : i32
    %641 = arith.select %639, %627, %623 : vector<1x128xi1>, vector<1x128xf32>
    %642 = arith.ori %624, %639 : vector<1x128xi1>
    %643 = arith.index_cast %640 : i32 to index
    %c0_117 = arith.constant 0 : index
    %644 = vector.load %arg4[%643, %c0_117] : memref<64x128xf32, #tpu.memory_space<vmem>>, vector<1x128xf32>
    %645 = arith.minimumf %627, %644 : vector<1x128xf32>
    %c34_i32 = arith.constant 34 : i32
    %646 = vector.broadcast %cst_15 : f32 to vector<1x128xf32>
    %647 = arith.select %642, %646, %645 : vector<1x128xi1>, vector<1x128xf32>
    %648 = tpu.bitcast %647 : vector<1x128xf32> -> vector<1x128xi32>
    %649 = vector.broadcast %c-128_i32 : i32 to vector<1x128xi32>
    %650 = arith.andi %648, %649 : vector<1x128xi32>
    %651 = arith.ori %650, %26 : vector<1x128xi32>
    %652 = vector.shape_cast %651 : vector<1x128xi32> to vector<1x1x128xi32>
    %cst_118 = arith.constant dense<2147483647> : vector<1xi32>
    %653 = vector.multi_reduction <minsi>, %652, %cst_118 [1, 2] : vector<1x1x128xi32> to vector<1xi32>
    %654 = vector.shape_cast %653 : vector<1xi32> to vector<1x1x1xi32>
    %655 = vector.extract %654[0, 0, 0] : i32 from vector<1x1x1xi32>
    %656 = vector.broadcast %655 : i32 to vector<1x128xi32>
    %657 = arith.cmpi eq, %651, %656 : vector<1x128xi32>
    %c127_i32_119 = arith.constant 127 : i32
    %658 = arith.andi %655, %c127_i32_119 : i32
    %659 = arith.select %657, %645, %641 : vector<1x128xi1>, vector<1x128xf32>
    %660 = arith.ori %642, %657 : vector<1x128xi1>
    %661 = arith.index_cast %658 : i32 to index
    %c0_120 = arith.constant 0 : index
    %662 = vector.load %arg4[%661, %c0_120] : memref<64x128xf32, #tpu.memory_space<vmem>>, vector<1x128xf32>
    %663 = arith.minimumf %645, %662 : vector<1x128xf32>
    %c35_i32 = arith.constant 35 : i32
    %664 = vector.broadcast %cst_15 : f32 to vector<1x128xf32>
    %665 = arith.select %660, %664, %663 : vector<1x128xi1>, vector<1x128xf32>
    %666 = tpu.bitcast %665 : vector<1x128xf32> -> vector<1x128xi32>
    %667 = vector.broadcast %c-128_i32 : i32 to vector<1x128xi32>
    %668 = arith.andi %666, %667 : vector<1x128xi32>
    %669 = arith.ori %668, %26 : vector<1x128xi32>
    %670 = vector.shape_cast %669 : vector<1x128xi32> to vector<1x1x128xi32>
    %cst_121 = arith.constant dense<2147483647> : vector<1xi32>
    %671 = vector.multi_reduction <minsi>, %670, %cst_121 [1, 2] : vector<1x1x128xi32> to vector<1xi32>
    %672 = vector.shape_cast %671 : vector<1xi32> to vector<1x1x1xi32>
    %673 = vector.extract %672[0, 0, 0] : i32 from vector<1x1x1xi32>
    %674 = vector.broadcast %673 : i32 to vector<1x128xi32>
    %675 = arith.cmpi eq, %669, %674 : vector<1x128xi32>
    %c127_i32_122 = arith.constant 127 : i32
    %676 = arith.andi %673, %c127_i32_122 : i32
    %677 = arith.select %675, %663, %659 : vector<1x128xi1>, vector<1x128xf32>
    %678 = arith.ori %660, %675 : vector<1x128xi1>
    %679 = arith.index_cast %676 : i32 to index
    %c0_123 = arith.constant 0 : index
    %680 = vector.load %arg4[%679, %c0_123] : memref<64x128xf32, #tpu.memory_space<vmem>>, vector<1x128xf32>
    %681 = arith.minimumf %663, %680 : vector<1x128xf32>
    %c36_i32 = arith.constant 36 : i32
    %682 = vector.broadcast %cst_15 : f32 to vector<1x128xf32>
    %683 = arith.select %678, %682, %681 : vector<1x128xi1>, vector<1x128xf32>
    %684 = tpu.bitcast %683 : vector<1x128xf32> -> vector<1x128xi32>
    %685 = vector.broadcast %c-128_i32 : i32 to vector<1x128xi32>
    %686 = arith.andi %684, %685 : vector<1x128xi32>
    %687 = arith.ori %686, %26 : vector<1x128xi32>
    %688 = vector.shape_cast %687 : vector<1x128xi32> to vector<1x1x128xi32>
    %cst_124 = arith.constant dense<2147483647> : vector<1xi32>
    %689 = vector.multi_reduction <minsi>, %688, %cst_124 [1, 2] : vector<1x1x128xi32> to vector<1xi32>
    %690 = vector.shape_cast %689 : vector<1xi32> to vector<1x1x1xi32>
    %691 = vector.extract %690[0, 0, 0] : i32 from vector<1x1x1xi32>
    %692 = vector.broadcast %691 : i32 to vector<1x128xi32>
    %693 = arith.cmpi eq, %687, %692 : vector<1x128xi32>
    %c127_i32_125 = arith.constant 127 : i32
    %694 = arith.andi %691, %c127_i32_125 : i32
    %695 = arith.select %693, %681, %677 : vector<1x128xi1>, vector<1x128xf32>
    %696 = arith.ori %678, %693 : vector<1x128xi1>
    %697 = arith.index_cast %694 : i32 to index
    %c0_126 = arith.constant 0 : index
    %698 = vector.load %arg4[%697, %c0_126] : memref<64x128xf32, #tpu.memory_space<vmem>>, vector<1x128xf32>
    %699 = arith.minimumf %681, %698 : vector<1x128xf32>
    %c37_i32 = arith.constant 37 : i32
    %700 = vector.broadcast %cst_15 : f32 to vector<1x128xf32>
    %701 = arith.select %696, %700, %699 : vector<1x128xi1>, vector<1x128xf32>
    %702 = tpu.bitcast %701 : vector<1x128xf32> -> vector<1x128xi32>
    %703 = vector.broadcast %c-128_i32 : i32 to vector<1x128xi32>
    %704 = arith.andi %702, %703 : vector<1x128xi32>
    %705 = arith.ori %704, %26 : vector<1x128xi32>
    %706 = vector.shape_cast %705 : vector<1x128xi32> to vector<1x1x128xi32>
    %cst_127 = arith.constant dense<2147483647> : vector<1xi32>
    %707 = vector.multi_reduction <minsi>, %706, %cst_127 [1, 2] : vector<1x1x128xi32> to vector<1xi32>
    %708 = vector.shape_cast %707 : vector<1xi32> to vector<1x1x1xi32>
    %709 = vector.extract %708[0, 0, 0] : i32 from vector<1x1x1xi32>
    %710 = vector.broadcast %709 : i32 to vector<1x128xi32>
    %711 = arith.cmpi eq, %705, %710 : vector<1x128xi32>
    %c127_i32_128 = arith.constant 127 : i32
    %712 = arith.andi %709, %c127_i32_128 : i32
    %713 = arith.select %711, %699, %695 : vector<1x128xi1>, vector<1x128xf32>
    %714 = arith.ori %696, %711 : vector<1x128xi1>
    %715 = arith.index_cast %712 : i32 to index
    %c0_129 = arith.constant 0 : index
    %716 = vector.load %arg4[%715, %c0_129] : memref<64x128xf32, #tpu.memory_space<vmem>>, vector<1x128xf32>
    %717 = arith.minimumf %699, %716 : vector<1x128xf32>
    %c38_i32 = arith.constant 38 : i32
    %718 = vector.broadcast %cst_15 : f32 to vector<1x128xf32>
    %719 = arith.select %714, %718, %717 : vector<1x128xi1>, vector<1x128xf32>
    %720 = tpu.bitcast %719 : vector<1x128xf32> -> vector<1x128xi32>
    %721 = vector.broadcast %c-128_i32 : i32 to vector<1x128xi32>
    %722 = arith.andi %720, %721 : vector<1x128xi32>
    %723 = arith.ori %722, %26 : vector<1x128xi32>
    %724 = vector.shape_cast %723 : vector<1x128xi32> to vector<1x1x128xi32>
    %cst_130 = arith.constant dense<2147483647> : vector<1xi32>
    %725 = vector.multi_reduction <minsi>, %724, %cst_130 [1, 2] : vector<1x1x128xi32> to vector<1xi32>
    %726 = vector.shape_cast %725 : vector<1xi32> to vector<1x1x1xi32>
    %727 = vector.extract %726[0, 0, 0] : i32 from vector<1x1x1xi32>
    %728 = vector.broadcast %727 : i32 to vector<1x128xi32>
    %729 = arith.cmpi eq, %723, %728 : vector<1x128xi32>
    %c127_i32_131 = arith.constant 127 : i32
    %730 = arith.andi %727, %c127_i32_131 : i32
    %731 = arith.select %729, %717, %713 : vector<1x128xi1>, vector<1x128xf32>
    %732 = arith.ori %714, %729 : vector<1x128xi1>
    %733 = arith.index_cast %730 : i32 to index
    %c0_132 = arith.constant 0 : index
    %734 = vector.load %arg4[%733, %c0_132] : memref<64x128xf32, #tpu.memory_space<vmem>>, vector<1x128xf32>
    %735 = arith.minimumf %717, %734 : vector<1x128xf32>
    %c39_i32 = arith.constant 39 : i32
    %736 = vector.broadcast %cst_15 : f32 to vector<1x128xf32>
    %737 = arith.select %732, %736, %735 : vector<1x128xi1>, vector<1x128xf32>
    %738 = tpu.bitcast %737 : vector<1x128xf32> -> vector<1x128xi32>
    %739 = vector.broadcast %c-128_i32 : i32 to vector<1x128xi32>
    %740 = arith.andi %738, %739 : vector<1x128xi32>
    %741 = arith.ori %740, %26 : vector<1x128xi32>
    %742 = vector.shape_cast %741 : vector<1x128xi32> to vector<1x1x128xi32>
    %cst_133 = arith.constant dense<2147483647> : vector<1xi32>
    %743 = vector.multi_reduction <minsi>, %742, %cst_133 [1, 2] : vector<1x1x128xi32> to vector<1xi32>
    %744 = vector.shape_cast %743 : vector<1xi32> to vector<1x1x1xi32>
    %745 = vector.extract %744[0, 0, 0] : i32 from vector<1x1x1xi32>
    %746 = vector.broadcast %745 : i32 to vector<1x128xi32>
    %747 = arith.cmpi eq, %741, %746 : vector<1x128xi32>
    %c127_i32_134 = arith.constant 127 : i32
    %748 = arith.andi %745, %c127_i32_134 : i32
    %749 = arith.select %747, %735, %731 : vector<1x128xi1>, vector<1x128xf32>
    %750 = arith.ori %732, %747 : vector<1x128xi1>
    %751 = arith.index_cast %748 : i32 to index
    %c0_135 = arith.constant 0 : index
    %752 = vector.load %arg4[%751, %c0_135] : memref<64x128xf32, #tpu.memory_space<vmem>>, vector<1x128xf32>
    %753 = arith.minimumf %735, %752 : vector<1x128xf32>
    %c40_i32 = arith.constant 40 : i32
    %754 = vector.broadcast %cst_15 : f32 to vector<1x128xf32>
    %755 = arith.select %750, %754, %753 : vector<1x128xi1>, vector<1x128xf32>
    %756 = tpu.bitcast %755 : vector<1x128xf32> -> vector<1x128xi32>
    %757 = vector.broadcast %c-128_i32 : i32 to vector<1x128xi32>
    %758 = arith.andi %756, %757 : vector<1x128xi32>
    %759 = arith.ori %758, %26 : vector<1x128xi32>
    %760 = vector.shape_cast %759 : vector<1x128xi32> to vector<1x1x128xi32>
    %cst_136 = arith.constant dense<2147483647> : vector<1xi32>
    %761 = vector.multi_reduction <minsi>, %760, %cst_136 [1, 2] : vector<1x1x128xi32> to vector<1xi32>
    %762 = vector.shape_cast %761 : vector<1xi32> to vector<1x1x1xi32>
    %763 = vector.extract %762[0, 0, 0] : i32 from vector<1x1x1xi32>
    %764 = vector.broadcast %763 : i32 to vector<1x128xi32>
    %765 = arith.cmpi eq, %759, %764 : vector<1x128xi32>
    %c127_i32_137 = arith.constant 127 : i32
    %766 = arith.andi %763, %c127_i32_137 : i32
    %767 = arith.select %765, %753, %749 : vector<1x128xi1>, vector<1x128xf32>
    %768 = arith.ori %750, %765 : vector<1x128xi1>
    %769 = arith.index_cast %766 : i32 to index
    %c0_138 = arith.constant 0 : index
    %770 = vector.load %arg4[%769, %c0_138] : memref<64x128xf32, #tpu.memory_space<vmem>>, vector<1x128xf32>
    %771 = arith.minimumf %753, %770 : vector<1x128xf32>
    %c41_i32 = arith.constant 41 : i32
    %772 = vector.broadcast %cst_15 : f32 to vector<1x128xf32>
    %773 = arith.select %768, %772, %771 : vector<1x128xi1>, vector<1x128xf32>
    %774 = tpu.bitcast %773 : vector<1x128xf32> -> vector<1x128xi32>
    %775 = vector.broadcast %c-128_i32 : i32 to vector<1x128xi32>
    %776 = arith.andi %774, %775 : vector<1x128xi32>
    %777 = arith.ori %776, %26 : vector<1x128xi32>
    %778 = vector.shape_cast %777 : vector<1x128xi32> to vector<1x1x128xi32>
    %cst_139 = arith.constant dense<2147483647> : vector<1xi32>
    %779 = vector.multi_reduction <minsi>, %778, %cst_139 [1, 2] : vector<1x1x128xi32> to vector<1xi32>
    %780 = vector.shape_cast %779 : vector<1xi32> to vector<1x1x1xi32>
    %781 = vector.extract %780[0, 0, 0] : i32 from vector<1x1x1xi32>
    %782 = vector.broadcast %781 : i32 to vector<1x128xi32>
    %783 = arith.cmpi eq, %777, %782 : vector<1x128xi32>
    %c127_i32_140 = arith.constant 127 : i32
    %784 = arith.andi %781, %c127_i32_140 : i32
    %785 = arith.select %783, %771, %767 : vector<1x128xi1>, vector<1x128xf32>
    %786 = arith.ori %768, %783 : vector<1x128xi1>
    %787 = arith.index_cast %784 : i32 to index
    %c0_141 = arith.constant 0 : index
    %788 = vector.load %arg4[%787, %c0_141] : memref<64x128xf32, #tpu.memory_space<vmem>>, vector<1x128xf32>
    %789 = arith.minimumf %771, %788 : vector<1x128xf32>
    %c42_i32 = arith.constant 42 : i32
    %790 = vector.broadcast %cst_15 : f32 to vector<1x128xf32>
    %791 = arith.select %786, %790, %789 : vector<1x128xi1>, vector<1x128xf32>
    %792 = tpu.bitcast %791 : vector<1x128xf32> -> vector<1x128xi32>
    %793 = vector.broadcast %c-128_i32 : i32 to vector<1x128xi32>
    %794 = arith.andi %792, %793 : vector<1x128xi32>
    %795 = arith.ori %794, %26 : vector<1x128xi32>
    %796 = vector.shape_cast %795 : vector<1x128xi32> to vector<1x1x128xi32>
    %cst_142 = arith.constant dense<2147483647> : vector<1xi32>
    %797 = vector.multi_reduction <minsi>, %796, %cst_142 [1, 2] : vector<1x1x128xi32> to vector<1xi32>
    %798 = vector.shape_cast %797 : vector<1xi32> to vector<1x1x1xi32>
    %799 = vector.extract %798[0, 0, 0] : i32 from vector<1x1x1xi32>
    %800 = vector.broadcast %799 : i32 to vector<1x128xi32>
    %801 = arith.cmpi eq, %795, %800 : vector<1x128xi32>
    %c127_i32_143 = arith.constant 127 : i32
    %802 = arith.andi %799, %c127_i32_143 : i32
    %803 = arith.select %801, %789, %785 : vector<1x128xi1>, vector<1x128xf32>
    %804 = arith.ori %786, %801 : vector<1x128xi1>
    %805 = arith.index_cast %802 : i32 to index
    %c0_144 = arith.constant 0 : index
    %806 = vector.load %arg4[%805, %c0_144] : memref<64x128xf32, #tpu.memory_space<vmem>>, vector<1x128xf32>
    %807 = arith.minimumf %789, %806 : vector<1x128xf32>
    %c43_i32 = arith.constant 43 : i32
    %808 = vector.broadcast %cst_15 : f32 to vector<1x128xf32>
    %809 = arith.select %804, %808, %807 : vector<1x128xi1>, vector<1x128xf32>
    %810 = tpu.bitcast %809 : vector<1x128xf32> -> vector<1x128xi32>
    %811 = vector.broadcast %c-128_i32 : i32 to vector<1x128xi32>
    %812 = arith.andi %810, %811 : vector<1x128xi32>
    %813 = arith.ori %812, %26 : vector<1x128xi32>
    %814 = vector.shape_cast %813 : vector<1x128xi32> to vector<1x1x128xi32>
    %cst_145 = arith.constant dense<2147483647> : vector<1xi32>
    %815 = vector.multi_reduction <minsi>, %814, %cst_145 [1, 2] : vector<1x1x128xi32> to vector<1xi32>
    %816 = vector.shape_cast %815 : vector<1xi32> to vector<1x1x1xi32>
    %817 = vector.extract %816[0, 0, 0] : i32 from vector<1x1x1xi32>
    %818 = vector.broadcast %817 : i32 to vector<1x128xi32>
    %819 = arith.cmpi eq, %813, %818 : vector<1x128xi32>
    %c127_i32_146 = arith.constant 127 : i32
    %820 = arith.andi %817, %c127_i32_146 : i32
    %821 = arith.select %819, %807, %803 : vector<1x128xi1>, vector<1x128xf32>
    %822 = arith.ori %804, %819 : vector<1x128xi1>
    %823 = arith.index_cast %820 : i32 to index
    %c0_147 = arith.constant 0 : index
    %824 = vector.load %arg4[%823, %c0_147] : memref<64x128xf32, #tpu.memory_space<vmem>>, vector<1x128xf32>
    %825 = arith.minimumf %807, %824 : vector<1x128xf32>
    %c44_i32 = arith.constant 44 : i32
    %826 = vector.broadcast %cst_15 : f32 to vector<1x128xf32>
    %827 = arith.select %822, %826, %825 : vector<1x128xi1>, vector<1x128xf32>
    %828 = tpu.bitcast %827 : vector<1x128xf32> -> vector<1x128xi32>
    %829 = vector.broadcast %c-128_i32 : i32 to vector<1x128xi32>
    %830 = arith.andi %828, %829 : vector<1x128xi32>
    %831 = arith.ori %830, %26 : vector<1x128xi32>
    %832 = vector.shape_cast %831 : vector<1x128xi32> to vector<1x1x128xi32>
    %cst_148 = arith.constant dense<2147483647> : vector<1xi32>
    %833 = vector.multi_reduction <minsi>, %832, %cst_148 [1, 2] : vector<1x1x128xi32> to vector<1xi32>
    %834 = vector.shape_cast %833 : vector<1xi32> to vector<1x1x1xi32>
    %835 = vector.extract %834[0, 0, 0] : i32 from vector<1x1x1xi32>
    %836 = vector.broadcast %835 : i32 to vector<1x128xi32>
    %837 = arith.cmpi eq, %831, %836 : vector<1x128xi32>
    %c127_i32_149 = arith.constant 127 : i32
    %838 = arith.andi %835, %c127_i32_149 : i32
    %839 = arith.select %837, %825, %821 : vector<1x128xi1>, vector<1x128xf32>
    %840 = arith.ori %822, %837 : vector<1x128xi1>
    %841 = arith.index_cast %838 : i32 to index
    %c0_150 = arith.constant 0 : index
    %842 = vector.load %arg4[%841, %c0_150] : memref<64x128xf32, #tpu.memory_space<vmem>>, vector<1x128xf32>
    %843 = arith.minimumf %825, %842 : vector<1x128xf32>
    %c45_i32 = arith.constant 45 : i32
    %844 = vector.broadcast %cst_15 : f32 to vector<1x128xf32>
    %845 = arith.select %840, %844, %843 : vector<1x128xi1>, vector<1x128xf32>
    %846 = tpu.bitcast %845 : vector<1x128xf32> -> vector<1x128xi32>
    %847 = vector.broadcast %c-128_i32 : i32 to vector<1x128xi32>
    %848 = arith.andi %846, %847 : vector<1x128xi32>
    %849 = arith.ori %848, %26 : vector<1x128xi32>
    %850 = vector.shape_cast %849 : vector<1x128xi32> to vector<1x1x128xi32>
    %cst_151 = arith.constant dense<2147483647> : vector<1xi32>
    %851 = vector.multi_reduction <minsi>, %850, %cst_151 [1, 2] : vector<1x1x128xi32> to vector<1xi32>
    %852 = vector.shape_cast %851 : vector<1xi32> to vector<1x1x1xi32>
    %853 = vector.extract %852[0, 0, 0] : i32 from vector<1x1x1xi32>
    %854 = vector.broadcast %853 : i32 to vector<1x128xi32>
    %855 = arith.cmpi eq, %849, %854 : vector<1x128xi32>
    %c127_i32_152 = arith.constant 127 : i32
    %856 = arith.andi %853, %c127_i32_152 : i32
    %857 = arith.select %855, %843, %839 : vector<1x128xi1>, vector<1x128xf32>
    %858 = arith.ori %840, %855 : vector<1x128xi1>
    %859 = arith.index_cast %856 : i32 to index
    %c0_153 = arith.constant 0 : index
    %860 = vector.load %arg4[%859, %c0_153] : memref<64x128xf32, #tpu.memory_space<vmem>>, vector<1x128xf32>
    %861 = arith.minimumf %843, %860 : vector<1x128xf32>
    %c46_i32 = arith.constant 46 : i32
    %862 = vector.broadcast %cst_15 : f32 to vector<1x128xf32>
    %863 = arith.select %858, %862, %861 : vector<1x128xi1>, vector<1x128xf32>
    %864 = tpu.bitcast %863 : vector<1x128xf32> -> vector<1x128xi32>
    %865 = vector.broadcast %c-128_i32 : i32 to vector<1x128xi32>
    %866 = arith.andi %864, %865 : vector<1x128xi32>
    %867 = arith.ori %866, %26 : vector<1x128xi32>
    %868 = vector.shape_cast %867 : vector<1x128xi32> to vector<1x1x128xi32>
    %cst_154 = arith.constant dense<2147483647> : vector<1xi32>
    %869 = vector.multi_reduction <minsi>, %868, %cst_154 [1, 2] : vector<1x1x128xi32> to vector<1xi32>
    %870 = vector.shape_cast %869 : vector<1xi32> to vector<1x1x1xi32>
    %871 = vector.extract %870[0, 0, 0] : i32 from vector<1x1x1xi32>
    %872 = vector.broadcast %871 : i32 to vector<1x128xi32>
    %873 = arith.cmpi eq, %867, %872 : vector<1x128xi32>
    %c127_i32_155 = arith.constant 127 : i32
    %874 = arith.andi %871, %c127_i32_155 : i32
    %875 = arith.select %873, %861, %857 : vector<1x128xi1>, vector<1x128xf32>
    %876 = arith.ori %858, %873 : vector<1x128xi1>
    %877 = arith.index_cast %874 : i32 to index
    %c0_156 = arith.constant 0 : index
    %878 = vector.load %arg4[%877, %c0_156] : memref<64x128xf32, #tpu.memory_space<vmem>>, vector<1x128xf32>
    %879 = arith.minimumf %861, %878 : vector<1x128xf32>
    %c47_i32 = arith.constant 47 : i32
    %880 = vector.broadcast %cst_15 : f32 to vector<1x128xf32>
    %881 = arith.select %876, %880, %879 : vector<1x128xi1>, vector<1x128xf32>
    %882 = tpu.bitcast %881 : vector<1x128xf32> -> vector<1x128xi32>
    %883 = vector.broadcast %c-128_i32 : i32 to vector<1x128xi32>
    %884 = arith.andi %882, %883 : vector<1x128xi32>
    %885 = arith.ori %884, %26 : vector<1x128xi32>
    %886 = vector.shape_cast %885 : vector<1x128xi32> to vector<1x1x128xi32>
    %cst_157 = arith.constant dense<2147483647> : vector<1xi32>
    %887 = vector.multi_reduction <minsi>, %886, %cst_157 [1, 2] : vector<1x1x128xi32> to vector<1xi32>
    %888 = vector.shape_cast %887 : vector<1xi32> to vector<1x1x1xi32>
    %889 = vector.extract %888[0, 0, 0] : i32 from vector<1x1x1xi32>
    %890 = vector.broadcast %889 : i32 to vector<1x128xi32>
    %891 = arith.cmpi eq, %885, %890 : vector<1x128xi32>
    %c127_i32_158 = arith.constant 127 : i32
    %892 = arith.andi %889, %c127_i32_158 : i32
    %893 = arith.select %891, %879, %875 : vector<1x128xi1>, vector<1x128xf32>
    %894 = arith.ori %876, %891 : vector<1x128xi1>
    %895 = arith.index_cast %892 : i32 to index
    %c0_159 = arith.constant 0 : index
    %896 = vector.load %arg4[%895, %c0_159] : memref<64x128xf32, #tpu.memory_space<vmem>>, vector<1x128xf32>
    %897 = arith.minimumf %879, %896 : vector<1x128xf32>
    %c48_i32 = arith.constant 48 : i32
    %898 = vector.broadcast %cst_15 : f32 to vector<1x128xf32>
    %899 = arith.select %894, %898, %897 : vector<1x128xi1>, vector<1x128xf32>
    %900 = tpu.bitcast %899 : vector<1x128xf32> -> vector<1x128xi32>
    %901 = vector.broadcast %c-128_i32 : i32 to vector<1x128xi32>
    %902 = arith.andi %900, %901 : vector<1x128xi32>
    %903 = arith.ori %902, %26 : vector<1x128xi32>
    %904 = vector.shape_cast %903 : vector<1x128xi32> to vector<1x1x128xi32>
    %cst_160 = arith.constant dense<2147483647> : vector<1xi32>
    %905 = vector.multi_reduction <minsi>, %904, %cst_160 [1, 2] : vector<1x1x128xi32> to vector<1xi32>
    %906 = vector.shape_cast %905 : vector<1xi32> to vector<1x1x1xi32>
    %907 = vector.extract %906[0, 0, 0] : i32 from vector<1x1x1xi32>
    %908 = vector.broadcast %907 : i32 to vector<1x128xi32>
    %909 = arith.cmpi eq, %903, %908 : vector<1x128xi32>
    %c127_i32_161 = arith.constant 127 : i32
    %910 = arith.andi %907, %c127_i32_161 : i32
    %911 = arith.select %909, %897, %893 : vector<1x128xi1>, vector<1x128xf32>
    %912 = arith.ori %894, %909 : vector<1x128xi1>
    %913 = arith.index_cast %910 : i32 to index
    %c0_162 = arith.constant 0 : index
    %914 = vector.load %arg4[%913, %c0_162] : memref<64x128xf32, #tpu.memory_space<vmem>>, vector<1x128xf32>
    %915 = arith.minimumf %897, %914 : vector<1x128xf32>
    %c49_i32 = arith.constant 49 : i32
    %916 = vector.broadcast %cst_15 : f32 to vector<1x128xf32>
    %917 = arith.select %912, %916, %915 : vector<1x128xi1>, vector<1x128xf32>
    %918 = tpu.bitcast %917 : vector<1x128xf32> -> vector<1x128xi32>
    %919 = vector.broadcast %c-128_i32 : i32 to vector<1x128xi32>
    %920 = arith.andi %918, %919 : vector<1x128xi32>
    %921 = arith.ori %920, %26 : vector<1x128xi32>
    %922 = vector.shape_cast %921 : vector<1x128xi32> to vector<1x1x128xi32>
    %cst_163 = arith.constant dense<2147483647> : vector<1xi32>
    %923 = vector.multi_reduction <minsi>, %922, %cst_163 [1, 2] : vector<1x1x128xi32> to vector<1xi32>
    %924 = vector.shape_cast %923 : vector<1xi32> to vector<1x1x1xi32>
    %925 = vector.extract %924[0, 0, 0] : i32 from vector<1x1x1xi32>
    %926 = vector.broadcast %925 : i32 to vector<1x128xi32>
    %927 = arith.cmpi eq, %921, %926 : vector<1x128xi32>
    %c127_i32_164 = arith.constant 127 : i32
    %928 = arith.andi %925, %c127_i32_164 : i32
    %929 = arith.select %927, %915, %911 : vector<1x128xi1>, vector<1x128xf32>
    %930 = arith.ori %912, %927 : vector<1x128xi1>
    %931 = arith.index_cast %928 : i32 to index
    %c0_165 = arith.constant 0 : index
    %932 = vector.load %arg4[%931, %c0_165] : memref<64x128xf32, #tpu.memory_space<vmem>>, vector<1x128xf32>
    %933 = arith.minimumf %915, %932 : vector<1x128xf32>
    %c50_i32 = arith.constant 50 : i32
    %934 = vector.broadcast %cst_15 : f32 to vector<1x128xf32>
    %935 = arith.select %930, %934, %933 : vector<1x128xi1>, vector<1x128xf32>
    %936 = tpu.bitcast %935 : vector<1x128xf32> -> vector<1x128xi32>
    %937 = vector.broadcast %c-128_i32 : i32 to vector<1x128xi32>
    %938 = arith.andi %936, %937 : vector<1x128xi32>
    %939 = arith.ori %938, %26 : vector<1x128xi32>
    %940 = vector.shape_cast %939 : vector<1x128xi32> to vector<1x1x128xi32>
    %cst_166 = arith.constant dense<2147483647> : vector<1xi32>
    %941 = vector.multi_reduction <minsi>, %940, %cst_166 [1, 2] : vector<1x1x128xi32> to vector<1xi32>
    %942 = vector.shape_cast %941 : vector<1xi32> to vector<1x1x1xi32>
    %943 = vector.extract %942[0, 0, 0] : i32 from vector<1x1x1xi32>
    %944 = vector.broadcast %943 : i32 to vector<1x128xi32>
    %945 = arith.cmpi eq, %939, %944 : vector<1x128xi32>
    %c127_i32_167 = arith.constant 127 : i32
    %946 = arith.andi %943, %c127_i32_167 : i32
    %947 = arith.select %945, %933, %929 : vector<1x128xi1>, vector<1x128xf32>
    %948 = arith.ori %930, %945 : vector<1x128xi1>
    %949 = arith.index_cast %946 : i32 to index
    %c0_168 = arith.constant 0 : index
    %950 = vector.load %arg4[%949, %c0_168] : memref<64x128xf32, #tpu.memory_space<vmem>>, vector<1x128xf32>
    %951 = arith.minimumf %933, %950 : vector<1x128xf32>
    %c51_i32 = arith.constant 51 : i32
    %952 = vector.broadcast %cst_15 : f32 to vector<1x128xf32>
    %953 = arith.select %948, %952, %951 : vector<1x128xi1>, vector<1x128xf32>
    %954 = tpu.bitcast %953 : vector<1x128xf32> -> vector<1x128xi32>
    %955 = vector.broadcast %c-128_i32 : i32 to vector<1x128xi32>
    %956 = arith.andi %954, %955 : vector<1x128xi32>
    %957 = arith.ori %956, %26 : vector<1x128xi32>
    %958 = vector.shape_cast %957 : vector<1x128xi32> to vector<1x1x128xi32>
    %cst_169 = arith.constant dense<2147483647> : vector<1xi32>
    %959 = vector.multi_reduction <minsi>, %958, %cst_169 [1, 2] : vector<1x1x128xi32> to vector<1xi32>
    %960 = vector.shape_cast %959 : vector<1xi32> to vector<1x1x1xi32>
    %961 = vector.extract %960[0, 0, 0] : i32 from vector<1x1x1xi32>
    %962 = vector.broadcast %961 : i32 to vector<1x128xi32>
    %963 = arith.cmpi eq, %957, %962 : vector<1x128xi32>
    %c127_i32_170 = arith.constant 127 : i32
    %964 = arith.andi %961, %c127_i32_170 : i32
    %965 = arith.select %963, %951, %947 : vector<1x128xi1>, vector<1x128xf32>
    %966 = arith.ori %948, %963 : vector<1x128xi1>
    %967 = arith.index_cast %964 : i32 to index
    %c0_171 = arith.constant 0 : index
    %968 = vector.load %arg4[%967, %c0_171] : memref<64x128xf32, #tpu.memory_space<vmem>>, vector<1x128xf32>
    %969 = arith.minimumf %951, %968 : vector<1x128xf32>
    %c52_i32 = arith.constant 52 : i32
    %970 = vector.broadcast %cst_15 : f32 to vector<1x128xf32>
    %971 = arith.select %966, %970, %969 : vector<1x128xi1>, vector<1x128xf32>
    %972 = tpu.bitcast %971 : vector<1x128xf32> -> vector<1x128xi32>
    %973 = vector.broadcast %c-128_i32 : i32 to vector<1x128xi32>
    %974 = arith.andi %972, %973 : vector<1x128xi32>
    %975 = arith.ori %974, %26 : vector<1x128xi32>
    %976 = vector.shape_cast %975 : vector<1x128xi32> to vector<1x1x128xi32>
    %cst_172 = arith.constant dense<2147483647> : vector<1xi32>
    %977 = vector.multi_reduction <minsi>, %976, %cst_172 [1, 2] : vector<1x1x128xi32> to vector<1xi32>
    %978 = vector.shape_cast %977 : vector<1xi32> to vector<1x1x1xi32>
    %979 = vector.extract %978[0, 0, 0] : i32 from vector<1x1x1xi32>
    %980 = vector.broadcast %979 : i32 to vector<1x128xi32>
    %981 = arith.cmpi eq, %975, %980 : vector<1x128xi32>
    %c127_i32_173 = arith.constant 127 : i32
    %982 = arith.andi %979, %c127_i32_173 : i32
    %983 = arith.select %981, %969, %965 : vector<1x128xi1>, vector<1x128xf32>
    %984 = arith.ori %966, %981 : vector<1x128xi1>
    %985 = arith.index_cast %982 : i32 to index
    %c0_174 = arith.constant 0 : index
    %986 = vector.load %arg4[%985, %c0_174] : memref<64x128xf32, #tpu.memory_space<vmem>>, vector<1x128xf32>
    %987 = arith.minimumf %969, %986 : vector<1x128xf32>
    %c53_i32 = arith.constant 53 : i32
    %988 = vector.broadcast %cst_15 : f32 to vector<1x128xf32>
    %989 = arith.select %984, %988, %987 : vector<1x128xi1>, vector<1x128xf32>
    %990 = tpu.bitcast %989 : vector<1x128xf32> -> vector<1x128xi32>
    %991 = vector.broadcast %c-128_i32 : i32 to vector<1x128xi32>
    %992 = arith.andi %990, %991 : vector<1x128xi32>
    %993 = arith.ori %992, %26 : vector<1x128xi32>
    %994 = vector.shape_cast %993 : vector<1x128xi32> to vector<1x1x128xi32>
    %cst_175 = arith.constant dense<2147483647> : vector<1xi32>
    %995 = vector.multi_reduction <minsi>, %994, %cst_175 [1, 2] : vector<1x1x128xi32> to vector<1xi32>
    %996 = vector.shape_cast %995 : vector<1xi32> to vector<1x1x1xi32>
    %997 = vector.extract %996[0, 0, 0] : i32 from vector<1x1x1xi32>
    %998 = vector.broadcast %997 : i32 to vector<1x128xi32>
    %999 = arith.cmpi eq, %993, %998 : vector<1x128xi32>
    %c127_i32_176 = arith.constant 127 : i32
    %1000 = arith.andi %997, %c127_i32_176 : i32
    %1001 = arith.select %999, %987, %983 : vector<1x128xi1>, vector<1x128xf32>
    %1002 = arith.ori %984, %999 : vector<1x128xi1>
    %1003 = arith.index_cast %1000 : i32 to index
    %c0_177 = arith.constant 0 : index
    %1004 = vector.load %arg4[%1003, %c0_177] : memref<64x128xf32, #tpu.memory_space<vmem>>, vector<1x128xf32>
    %1005 = arith.minimumf %987, %1004 : vector<1x128xf32>
    %c54_i32 = arith.constant 54 : i32
    %1006 = vector.broadcast %cst_15 : f32 to vector<1x128xf32>
    %1007 = arith.select %1002, %1006, %1005 : vector<1x128xi1>, vector<1x128xf32>
    %1008 = tpu.bitcast %1007 : vector<1x128xf32> -> vector<1x128xi32>
    %1009 = vector.broadcast %c-128_i32 : i32 to vector<1x128xi32>
    %1010 = arith.andi %1008, %1009 : vector<1x128xi32>
    %1011 = arith.ori %1010, %26 : vector<1x128xi32>
    %1012 = vector.shape_cast %1011 : vector<1x128xi32> to vector<1x1x128xi32>
    %cst_178 = arith.constant dense<2147483647> : vector<1xi32>
    %1013 = vector.multi_reduction <minsi>, %1012, %cst_178 [1, 2] : vector<1x1x128xi32> to vector<1xi32>
    %1014 = vector.shape_cast %1013 : vector<1xi32> to vector<1x1x1xi32>
    %1015 = vector.extract %1014[0, 0, 0] : i32 from vector<1x1x1xi32>
    %1016 = vector.broadcast %1015 : i32 to vector<1x128xi32>
    %1017 = arith.cmpi eq, %1011, %1016 : vector<1x128xi32>
    %c127_i32_179 = arith.constant 127 : i32
    %1018 = arith.andi %1015, %c127_i32_179 : i32
    %1019 = arith.select %1017, %1005, %1001 : vector<1x128xi1>, vector<1x128xf32>
    %1020 = arith.ori %1002, %1017 : vector<1x128xi1>
    %1021 = arith.index_cast %1018 : i32 to index
    %c0_180 = arith.constant 0 : index
    %1022 = vector.load %arg4[%1021, %c0_180] : memref<64x128xf32, #tpu.memory_space<vmem>>, vector<1x128xf32>
    %1023 = arith.minimumf %1005, %1022 : vector<1x128xf32>
    %c55_i32 = arith.constant 55 : i32
    %1024 = vector.broadcast %cst_15 : f32 to vector<1x128xf32>
    %1025 = arith.select %1020, %1024, %1023 : vector<1x128xi1>, vector<1x128xf32>
    %1026 = tpu.bitcast %1025 : vector<1x128xf32> -> vector<1x128xi32>
    %1027 = vector.broadcast %c-128_i32 : i32 to vector<1x128xi32>
    %1028 = arith.andi %1026, %1027 : vector<1x128xi32>
    %1029 = arith.ori %1028, %26 : vector<1x128xi32>
    %1030 = vector.shape_cast %1029 : vector<1x128xi32> to vector<1x1x128xi32>
    %cst_181 = arith.constant dense<2147483647> : vector<1xi32>
    %1031 = vector.multi_reduction <minsi>, %1030, %cst_181 [1, 2] : vector<1x1x128xi32> to vector<1xi32>
    %1032 = vector.shape_cast %1031 : vector<1xi32> to vector<1x1x1xi32>
    %1033 = vector.extract %1032[0, 0, 0] : i32 from vector<1x1x1xi32>
    %1034 = vector.broadcast %1033 : i32 to vector<1x128xi32>
    %1035 = arith.cmpi eq, %1029, %1034 : vector<1x128xi32>
    %c127_i32_182 = arith.constant 127 : i32
    %1036 = arith.andi %1033, %c127_i32_182 : i32
    %1037 = arith.select %1035, %1023, %1019 : vector<1x128xi1>, vector<1x128xf32>
    %1038 = arith.ori %1020, %1035 : vector<1x128xi1>
    %1039 = arith.index_cast %1036 : i32 to index
    %c0_183 = arith.constant 0 : index
    %1040 = vector.load %arg4[%1039, %c0_183] : memref<64x128xf32, #tpu.memory_space<vmem>>, vector<1x128xf32>
    %1041 = arith.minimumf %1023, %1040 : vector<1x128xf32>
    %c56_i32 = arith.constant 56 : i32
    %1042 = vector.broadcast %cst_15 : f32 to vector<1x128xf32>
    %1043 = arith.select %1038, %1042, %1041 : vector<1x128xi1>, vector<1x128xf32>
    %1044 = tpu.bitcast %1043 : vector<1x128xf32> -> vector<1x128xi32>
    %1045 = vector.broadcast %c-128_i32 : i32 to vector<1x128xi32>
    %1046 = arith.andi %1044, %1045 : vector<1x128xi32>
    %1047 = arith.ori %1046, %26 : vector<1x128xi32>
    %1048 = vector.shape_cast %1047 : vector<1x128xi32> to vector<1x1x128xi32>
    %cst_184 = arith.constant dense<2147483647> : vector<1xi32>
    %1049 = vector.multi_reduction <minsi>, %1048, %cst_184 [1, 2] : vector<1x1x128xi32> to vector<1xi32>
    %1050 = vector.shape_cast %1049 : vector<1xi32> to vector<1x1x1xi32>
    %1051 = vector.extract %1050[0, 0, 0] : i32 from vector<1x1x1xi32>
    %1052 = vector.broadcast %1051 : i32 to vector<1x128xi32>
    %1053 = arith.cmpi eq, %1047, %1052 : vector<1x128xi32>
    %c127_i32_185 = arith.constant 127 : i32
    %1054 = arith.andi %1051, %c127_i32_185 : i32
    %1055 = arith.select %1053, %1041, %1037 : vector<1x128xi1>, vector<1x128xf32>
    %1056 = arith.ori %1038, %1053 : vector<1x128xi1>
    %1057 = arith.index_cast %1054 : i32 to index
    %c0_186 = arith.constant 0 : index
    %1058 = vector.load %arg4[%1057, %c0_186] : memref<64x128xf32, #tpu.memory_space<vmem>>, vector<1x128xf32>
    %1059 = arith.minimumf %1041, %1058 : vector<1x128xf32>
    %c57_i32 = arith.constant 57 : i32
    %1060 = vector.broadcast %cst_15 : f32 to vector<1x128xf32>
    %1061 = arith.select %1056, %1060, %1059 : vector<1x128xi1>, vector<1x128xf32>
    %1062 = tpu.bitcast %1061 : vector<1x128xf32> -> vector<1x128xi32>
    %1063 = vector.broadcast %c-128_i32 : i32 to vector<1x128xi32>
    %1064 = arith.andi %1062, %1063 : vector<1x128xi32>
    %1065 = arith.ori %1064, %26 : vector<1x128xi32>
    %1066 = vector.shape_cast %1065 : vector<1x128xi32> to vector<1x1x128xi32>
    %cst_187 = arith.constant dense<2147483647> : vector<1xi32>
    %1067 = vector.multi_reduction <minsi>, %1066, %cst_187 [1, 2] : vector<1x1x128xi32> to vector<1xi32>
    %1068 = vector.shape_cast %1067 : vector<1xi32> to vector<1x1x1xi32>
    %1069 = vector.extract %1068[0, 0, 0] : i32 from vector<1x1x1xi32>
    %1070 = vector.broadcast %1069 : i32 to vector<1x128xi32>
    %1071 = arith.cmpi eq, %1065, %1070 : vector<1x128xi32>
    %c127_i32_188 = arith.constant 127 : i32
    %1072 = arith.andi %1069, %c127_i32_188 : i32
    %1073 = arith.select %1071, %1059, %1055 : vector<1x128xi1>, vector<1x128xf32>
    %1074 = arith.ori %1056, %1071 : vector<1x128xi1>
    %1075 = arith.index_cast %1072 : i32 to index
    %c0_189 = arith.constant 0 : index
    %1076 = vector.load %arg4[%1075, %c0_189] : memref<64x128xf32, #tpu.memory_space<vmem>>, vector<1x128xf32>
    %1077 = arith.minimumf %1059, %1076 : vector<1x128xf32>
    %c58_i32 = arith.constant 58 : i32
    %1078 = vector.broadcast %cst_15 : f32 to vector<1x128xf32>
    %1079 = arith.select %1074, %1078, %1077 : vector<1x128xi1>, vector<1x128xf32>
    %1080 = tpu.bitcast %1079 : vector<1x128xf32> -> vector<1x128xi32>
    %1081 = vector.broadcast %c-128_i32 : i32 to vector<1x128xi32>
    %1082 = arith.andi %1080, %1081 : vector<1x128xi32>
    %1083 = arith.ori %1082, %26 : vector<1x128xi32>
    %1084 = vector.shape_cast %1083 : vector<1x128xi32> to vector<1x1x128xi32>
    %cst_190 = arith.constant dense<2147483647> : vector<1xi32>
    %1085 = vector.multi_reduction <minsi>, %1084, %cst_190 [1, 2] : vector<1x1x128xi32> to vector<1xi32>
    %1086 = vector.shape_cast %1085 : vector<1xi32> to vector<1x1x1xi32>
    %1087 = vector.extract %1086[0, 0, 0] : i32 from vector<1x1x1xi32>
    %1088 = vector.broadcast %1087 : i32 to vector<1x128xi32>
    %1089 = arith.cmpi eq, %1083, %1088 : vector<1x128xi32>
    %c127_i32_191 = arith.constant 127 : i32
    %1090 = arith.andi %1087, %c127_i32_191 : i32
    %1091 = arith.select %1089, %1077, %1073 : vector<1x128xi1>, vector<1x128xf32>
    %1092 = arith.ori %1074, %1089 : vector<1x128xi1>
    %1093 = arith.index_cast %1090 : i32 to index
    %c0_192 = arith.constant 0 : index
    %1094 = vector.load %arg4[%1093, %c0_192] : memref<64x128xf32, #tpu.memory_space<vmem>>, vector<1x128xf32>
    %1095 = arith.minimumf %1077, %1094 : vector<1x128xf32>
    %c59_i32 = arith.constant 59 : i32
    %1096 = vector.broadcast %cst_15 : f32 to vector<1x128xf32>
    %1097 = arith.select %1092, %1096, %1095 : vector<1x128xi1>, vector<1x128xf32>
    %1098 = tpu.bitcast %1097 : vector<1x128xf32> -> vector<1x128xi32>
    %1099 = vector.broadcast %c-128_i32 : i32 to vector<1x128xi32>
    %1100 = arith.andi %1098, %1099 : vector<1x128xi32>
    %1101 = arith.ori %1100, %26 : vector<1x128xi32>
    %1102 = vector.shape_cast %1101 : vector<1x128xi32> to vector<1x1x128xi32>
    %cst_193 = arith.constant dense<2147483647> : vector<1xi32>
    %1103 = vector.multi_reduction <minsi>, %1102, %cst_193 [1, 2] : vector<1x1x128xi32> to vector<1xi32>
    %1104 = vector.shape_cast %1103 : vector<1xi32> to vector<1x1x1xi32>
    %1105 = vector.extract %1104[0, 0, 0] : i32 from vector<1x1x1xi32>
    %1106 = vector.broadcast %1105 : i32 to vector<1x128xi32>
    %1107 = arith.cmpi eq, %1101, %1106 : vector<1x128xi32>
    %c127_i32_194 = arith.constant 127 : i32
    %1108 = arith.andi %1105, %c127_i32_194 : i32
    %1109 = arith.select %1107, %1095, %1091 : vector<1x128xi1>, vector<1x128xf32>
    %1110 = arith.ori %1092, %1107 : vector<1x128xi1>
    %1111 = arith.index_cast %1108 : i32 to index
    %c0_195 = arith.constant 0 : index
    %1112 = vector.load %arg4[%1111, %c0_195] : memref<64x128xf32, #tpu.memory_space<vmem>>, vector<1x128xf32>
    %1113 = arith.minimumf %1095, %1112 : vector<1x128xf32>
    %c60_i32 = arith.constant 60 : i32
    %1114 = vector.broadcast %cst_15 : f32 to vector<1x128xf32>
    %1115 = arith.select %1110, %1114, %1113 : vector<1x128xi1>, vector<1x128xf32>
    %1116 = tpu.bitcast %1115 : vector<1x128xf32> -> vector<1x128xi32>
    %1117 = vector.broadcast %c-128_i32 : i32 to vector<1x128xi32>
    %1118 = arith.andi %1116, %1117 : vector<1x128xi32>
    %1119 = arith.ori %1118, %26 : vector<1x128xi32>
    %1120 = vector.shape_cast %1119 : vector<1x128xi32> to vector<1x1x128xi32>
    %cst_196 = arith.constant dense<2147483647> : vector<1xi32>
    %1121 = vector.multi_reduction <minsi>, %1120, %cst_196 [1, 2] : vector<1x1x128xi32> to vector<1xi32>
    %1122 = vector.shape_cast %1121 : vector<1xi32> to vector<1x1x1xi32>
    %1123 = vector.extract %1122[0, 0, 0] : i32 from vector<1x1x1xi32>
    %1124 = vector.broadcast %1123 : i32 to vector<1x128xi32>
    %1125 = arith.cmpi eq, %1119, %1124 : vector<1x128xi32>
    %c127_i32_197 = arith.constant 127 : i32
    %1126 = arith.andi %1123, %c127_i32_197 : i32
    %1127 = arith.select %1125, %1113, %1109 : vector<1x128xi1>, vector<1x128xf32>
    %1128 = arith.ori %1110, %1125 : vector<1x128xi1>
    %1129 = arith.index_cast %1126 : i32 to index
    %c0_198 = arith.constant 0 : index
    %1130 = vector.load %arg4[%1129, %c0_198] : memref<64x128xf32, #tpu.memory_space<vmem>>, vector<1x128xf32>
    %1131 = arith.minimumf %1113, %1130 : vector<1x128xf32>
    %c61_i32 = arith.constant 61 : i32
    %1132 = vector.broadcast %cst_15 : f32 to vector<1x128xf32>
    %1133 = arith.select %1128, %1132, %1131 : vector<1x128xi1>, vector<1x128xf32>
    %1134 = tpu.bitcast %1133 : vector<1x128xf32> -> vector<1x128xi32>
    %1135 = vector.broadcast %c-128_i32 : i32 to vector<1x128xi32>
    %1136 = arith.andi %1134, %1135 : vector<1x128xi32>
    %1137 = arith.ori %1136, %26 : vector<1x128xi32>
    %1138 = vector.shape_cast %1137 : vector<1x128xi32> to vector<1x1x128xi32>
    %cst_199 = arith.constant dense<2147483647> : vector<1xi32>
    %1139 = vector.multi_reduction <minsi>, %1138, %cst_199 [1, 2] : vector<1x1x128xi32> to vector<1xi32>
    %1140 = vector.shape_cast %1139 : vector<1xi32> to vector<1x1x1xi32>
    %1141 = vector.extract %1140[0, 0, 0] : i32 from vector<1x1x1xi32>
    %1142 = vector.broadcast %1141 : i32 to vector<1x128xi32>
    %1143 = arith.cmpi eq, %1137, %1142 : vector<1x128xi32>
    %c127_i32_200 = arith.constant 127 : i32
    %1144 = arith.andi %1141, %c127_i32_200 : i32
    %1145 = arith.select %1143, %1131, %1127 : vector<1x128xi1>, vector<1x128xf32>
    %1146 = arith.ori %1128, %1143 : vector<1x128xi1>
    %1147 = arith.index_cast %1144 : i32 to index
    %c0_201 = arith.constant 0 : index
    %1148 = vector.load %arg4[%1147, %c0_201] : memref<64x128xf32, #tpu.memory_space<vmem>>, vector<1x128xf32>
    %1149 = arith.minimumf %1131, %1148 : vector<1x128xf32>
    %c62_i32 = arith.constant 62 : i32
    %1150 = vector.broadcast %cst_15 : f32 to vector<1x128xf32>
    %1151 = arith.select %1146, %1150, %1149 : vector<1x128xi1>, vector<1x128xf32>
    %1152 = tpu.bitcast %1151 : vector<1x128xf32> -> vector<1x128xi32>
    %1153 = vector.broadcast %c-128_i32 : i32 to vector<1x128xi32>
    %1154 = arith.andi %1152, %1153 : vector<1x128xi32>
    %1155 = arith.ori %1154, %26 : vector<1x128xi32>
    %1156 = vector.shape_cast %1155 : vector<1x128xi32> to vector<1x1x128xi32>
    %cst_202 = arith.constant dense<2147483647> : vector<1xi32>
    %1157 = vector.multi_reduction <minsi>, %1156, %cst_202 [1, 2] : vector<1x1x128xi32> to vector<1xi32>
    %1158 = vector.shape_cast %1157 : vector<1xi32> to vector<1x1x1xi32>
    %1159 = vector.extract %1158[0, 0, 0] : i32 from vector<1x1x1xi32>
    %1160 = vector.broadcast %1159 : i32 to vector<1x128xi32>
    %1161 = arith.cmpi eq, %1155, %1160 : vector<1x128xi32>
    %c127_i32_203 = arith.constant 127 : i32
    %1162 = arith.andi %1159, %c127_i32_203 : i32
    %1163 = arith.select %1161, %1149, %1145 : vector<1x128xi1>, vector<1x128xf32>
    %1164 = arith.ori %1146, %1161 : vector<1x128xi1>
    %1165 = arith.index_cast %1162 : i32 to index
    %c0_204 = arith.constant 0 : index
    %1166 = vector.load %arg4[%1165, %c0_204] : memref<64x128xf32, #tpu.memory_space<vmem>>, vector<1x128xf32>
    %1167 = arith.minimumf %1149, %1166 : vector<1x128xf32>
    %1168 = math.sqrt %1163 : vector<1x128xf32>
    %c0_i32_205 = arith.constant 0 : i32
    %1169 = vector.broadcast %c0_i32_205 : i32 to vector<1x128xi32>
    %1170 = arith.cmpi eq, %26, %1169 : vector<1x128xi32>
    %cst_206 = arith.constant 0x7F800000 : f32
    %1171 = vector.broadcast %cst_206 : f32 to vector<1x128xf32>
    %1172 = arith.select %1170, %1171, %1168 : vector<1x128xi1>, vector<1x128xf32>
    %c0_207 = arith.constant 0 : index
    %c0_208 = arith.constant 0 : index
    %c0_209 = arith.constant 0 : index
    %1173 = vector.load %arg3[%c0_207, %c0_208, %c0_209] : memref<1x1x128xf32, #tpu.memory_space<vmem>>, vector<1x1x128xf32>
    %1174 = vector.shape_cast %1173 : vector<1x1x128xf32> to vector<1x128xf32>
    %1175 = vector.shape_cast %1172 : vector<1x128xf32> to vector<1x1x128xf32>
    tpu.vector_store %arg3[%c0_207, %c0_208, %c0_209], %1175 {strides = array<i32>} : memref<1x1x128xf32, #tpu.memory_space<vmem>>, vector<1x1x128xf32>,
    return
  }
  func.func @transform_0(%arg0: i32) -> (i32, i32) {
    %c0_i32 = arith.constant 0 : i32
    %c0_i32_0 = arith.constant 0 : i32
    %c0_i32_1 = arith.constant 0 : i32
    return %c0_i32, %c0_i32_0 : i32, i32
  }
  func.func @transform_1(%arg0: i32) -> (i32, i32, i32) {
    %c0_i32 = arith.constant 0 : i32
    %c0_i32_0 = arith.constant 0 : i32
    %c0_i32_1 = arith.constant 0 : i32
    return %arg0, %c0_i32, %c0_i32_0 : i32, i32, i32
  }
  func.func @transform_2(%arg0: i32) -> (i32, i32, i32) {
    %c0_i32 = arith.constant 0 : i32
    %c0_i32_0 = arith.constant 0 : i32
    %c0_i32_1 = arith.constant 0 : i32
    return %arg0, %c0_i32, %c0_i32_0 : i32, i32, i32
  }
}

</mosaic_0001>

<bundles_post_ra>
// kernel: persistent_homology_forward.1
= control target key start
LH: loop header
LB: loop body
LE: loop exit
PB: predicated region body
PF: predicated region fallthrough
CT: control target
= control target key end

     0   :  { %s3087_s9 = smov 0   ;;  %s4468_s0 = inlined_call_operand.vmem [shape: f32[128,64], index: 0, kind: input, shape index: {}]   ;;  %s4469_s1 = inlined_call_operand.vmem [shape: f32[2,64,128], index: 1, kind: input, shape index: {}]   ;;  %s4470_s2 = inlined_call_operand.vmem [shape: f32[2,1,128], index: 2, kind: output, shape index: {}]  }
   0x1 LB: > { %s2876_s10 = sadd.s32 4294967295, %s3069_s9   ;;  %p2880_p0 = scmp.ge.s32.totalorder %s3069_s9, 1  ;;  %s3069_s9 = sphi %s3087_s9, %s12_s9  }
   0x2   : > { %p112_p1 = scmp.lt.s32.totalorder %s3069_s9, 3 }
   0x4   : > { %p113_p2 = pnand %p2880_p0, %p112_p1 }
   0x5   : > { %p132_p3 = scmp.lt.s32.totalorder (!%p113_p2), %s2876_s10, 1 }
   0x6   : > { %116 = sbr.rel (%p113_p2) target bundleno = 20272 (0x4f30), region = 28 }
   0xb   : > { %s4596_s10 = smov (!%p132_p3, %s2876_s10), 1  ;;  %v140_v8 = vld [vmem:[%s4468_s0] sm:$0xff]  ;;  %vm164_vm0 = vcmask 523264   ;;  %v150_v9 = vld [vmem:[%s4468_s0 + $0x50] sm:$0xff]  ;;  %v141_v10 = vld [vmem:[%s4468_s0 + $0x8] sm:$0xff]  ;;  %v3071_v56 = vmov 1.0   ;;  %v404_v57 = vlaneseq }
   0xc   : > { %s2901_s11 = sshll.u32 %s4596_s10, 6  ;;  %v151_v11 = vld [vmem:[%s4468_s0 + $0x58] sm:$0xff]  ;;  %v142_v12 = vld [vmem:[%s4468_s0 + $0x10] sm:$0xff]  ;;  %v152_v13 = vld [vmem:[%s4468_s0 + $0x60] sm:$0xff]  ;;  %vm430_vm5 = vcmask 1040384  }
   0xd   : > { %s136_s14 = scalar_lea.vmem %s4469_s1, %s2901_s11  ;;  %v143_v14 = vld [vmem:[%s4468_s0 + $0x18] sm:$0xff]  ;;  %v153_v15 = vld [vmem:[%s4468_s0 + $0x68] sm:$0xff]  ;;  %v144_v16 = vld [vmem:[%s4468_s0 + $0x20] sm:$0xff]  ;;  %v3236_v61 = vand.u32 127, %v404_v57 }
   0xe   : > { %v163_v0 = vld [vmem:[%s136_s14 + $0x38] sm:$0xff]  ;;  %v162_v1 = vld [vmem:[%s136_s14 + $0x30] sm:$0xff]  ;;  %v161_v2 = vld [vmem:[%s136_s14 + $0x28] sm:$0xff] }
   0xf   : > { %221 = vmatpush.msra.mxu0 %v163_v0  ;;  %2902 = vmatpush.msra.mxu1 %v163_v0  ;;  %v160_v3 = vld [vmem:[%s136_s14 + $0x20] sm:$0xff]  ;;  %v159_v4 = vld [vmem:[%s136_s14 + $0x18] sm:$0xff]  ;;  %v158_v5 = vld [vmem:[%s136_s14 + $0x10] sm:$0xff]  ;;  %vm423_vm1 = vcmp.eq.s32.totalorder %v3236_v61, 0  ;;  %vm424_vm2 = vcmp.ge.s32.totalorder %v3236_v61, 64  ;;  %vm406_vm3 = vcmp.lt.s32.totalorder %v3236_v61, 64 }
  0x10   : > { %v157_v6 = vld [vmem:[%s136_s14 + $0x8] sm:$0xff]  ;;  %v156_v7 = vld [vmem:[%s136_s14] sm:$0xff]  ;;  %v154_v17 = vld [vmem:[%s4468_s0 + $0x70] sm:$0xff] }
  0x11   : > { %222 = vmatpush.msra.mxu0 %v162_v1  ;;  %2903 = vmatpush.msra.mxu1 %v162_v1  ;;  %v145_v18 = vld [vmem:[%s4468_s0 + $0x28] sm:$0xff]  ;;  %v155_v19 = vld [vmem:[%s4468_s0 + $0x78] sm:$0xff]  ;;  %v146_v20 = vld [vmem:[%s4468_s0 + $0x30] sm:$0xff] }
  0x12   : > { %v147_v21 = vld [vmem:[%s4468_s0 + $0x38] sm:$0xff]  ;;  %v148_v22 = vld [vmem:[%s4468_s0 + $0x40] sm:$0xff]  ;;  %v149_v23 = vld [vmem:[%s4468_s0 + $0x48] sm:$0xff] }
  0x13   : > { %223 = vmatpush.msra.mxu0 %v161_v2  ;;  %2904 = vmatpush.msra.mxu1 %v161_v2  ;;  %vm3244_vm4 = vmor %vm423_vm1, %vm424_vm2 }
  0x15   : > { %224 = vmatpush.msra.mxu0 %v160_v3  ;;  %2905 = vmatpush.msra.mxu1 %v160_v3 }
  0x17   : > { %225 = vmatpush.msra.mxu0 %v159_v4  ;;  %2906 = vmatpush.msra.mxu1 %v159_v4 }
  0x19   : > { %226 = vmatpush.msra.mxu0 %v158_v5  ;;  %2907 = vmatpush.msra.mxu1 %v158_v5 }
  0x1b   : > { %227 = vmatpush.msra.mxu0 %v157_v6  ;;  %2908 = vmatpush.msra.mxu1 %v157_v6 }
  0x1d   : > { %228 = vmatpush.msra.mxu0 %v156_v7  ;;  %2909 = vmatpush.msra.mxu1 %v156_v7 }
  0x1e   : > { %2883 = vmatmul.msk.f32.vlgmr.msra.gmra.mxu0 %vm164_vm0, %v140_v8  ;;  %2893 = vmatmul.msk.f32.vlgmr.msra.gmra.mxu1 %vm164_vm0, %v150_v9 }
  0x26   : > { %2884 = vmatmul.msk.f32.gmra.mxu0 %vm164_vm0, %v141_v10  ;;  %2894 = vmatmul.msk.f32.gmra.mxu1 %vm164_vm0, %v151_v11 }
  0x2e   : > { %2885 = vmatmul.msk.f32.gmra.mxu0 %vm164_vm0, %v142_v12  ;;  %2895 = vmatmul.msk.f32.gmra.mxu1 %vm164_vm0, %v152_v13 }
  0x36   : > { %2886 = vmatmul.msk.f32.gmra.mxu0 %vm164_vm0, %v143_v14  ;;  %2896 = vmatmul.msk.f32.gmra.mxu1 %vm164_vm0, %v153_v15 }
  0x3e   : > { %2887 = vmatmul.msk.f32.gmra.mxu0 %vm164_vm0, %v144_v16  ;;  %2897 = vmatmul.msk.f32.gmra.mxu1 %vm164_vm0, %v154_v17 }
  0x46   : > { %2888 = vmatmul.msk.f32.gmra.mxu0 %vm164_vm0, %v145_v18  ;;  %2898 = vmatmul.msk.f32.gmra.mxu1 %vm164_vm0, %v155_v19 }
  0x4e   : > { %2889 = vmatmul.msk.f32.gmra.mxu0 %vm164_vm0, %v146_v20 }
  0x56   : > { %2890 = vmatmul.msk.f32.gmra.mxu0 %vm164_vm0, %v147_v21 }
  0x5e   : > { %2891 = vmatmul.msk.f32.gmra.mxu0 %vm164_vm0, %v148_v22 }
  0x66   : > { %2892 = vmatmul.msk.f32.gmra.mxu0 %vm164_vm0, %v149_v23 }
  0x9b   : > { %v3165_v24 = vpop.f32.mrf.mxu0  ;;  %v260_v25 = vpop.f32.mrf.mxu1 }
  0x9c   : > { %v3169_v26 = vmul.f32 %v3165_v24, %v3165_v24  ;;  %v288_v47 = vmul.f32 %v260_v25, %v260_v25 }
  0x9e   : > { %294 = vadd.xlane.f32.xlu0 %v3169_v26 }
  0xa3   : > { %v3172_v27 = vpop.f32.mrf.mxu0  ;;  %v263_v28 = vpop.f32.mrf.mxu1 }
  0xa4   : > { %v289_v46 = vmul.f32 %v263_v28, %v263_v28  ;;  %v3221_v55 = vmul.f32 %v3172_v27, %v3172_v27 }
  0xab   : > { %v3174_v29 = vpop.f32.mrf.mxu0  ;;  %v266_v30 = vpop.f32.mrf.mxu1 }
  0xac   : > { %v3178_v31 = vmul.f32 %v3174_v29, %v3174_v29  ;;  %v290_v44 = vmul.f32 %v266_v30, %v266_v30 }
  0xae   : > { %298 = vadd.xlane.f32.xlu2 %v3178_v31 }
  0xb3   : > { %v3181_v32 = vpop.f32.mrf.mxu0  ;;  %v269_v33 = vpop.f32.mrf.mxu1 }
  0xb4   : > { %v281_v34 = vmul.f32 %v3181_v32, %v3181_v32  ;;  %v291_v42 = vmul.f32 %v269_v33, %v269_v33 }
  0xb6   : > { %300 = vadd.xlane.f32.xlu2 %v281_v34 }
  0xbb   : > { %v3185_v35 = vpop.f32.mrf.mxu0  ;;  %v272_v36 = vpop.f32.mrf.mxu1 }
  0xbc   : > { %v292_v40 = vmul.f32 %v272_v36, %v272_v36  ;;  %v3209_v54 = vmul.f32 %v3185_v35, %v3185_v35 }
  0xc3   : > { %v3187_v37 = vpop.f32.mrf.mxu0  ;;  %v275_v38 = vpop.f32.mrf.mxu1 }
  0xc4   : > { %330 = vmatpush.xpose.msra.mxu2 %v275_v38  ;;  %2910 = vmatpush.xpose.msra.mxu3 %v275_v38  ;;  %v293_v39 = vmul.f32 %v275_v38, %v275_v38  ;;  %v3202_v53 = vmul.f32 %v3187_v37, %v3187_v37 }
  0xc6   : > { %310 = vmatpush.xpose.msrb.mxu1 %v293_v39 }
  0xc8   : > { %331 = vmatpush.xpose.msra.mxu2 %v272_v36  ;;  %2911 = vmatpush.xpose.msra.mxu3 %v272_v36 }
  0xca   : > { %311 = vmatpush.xpose.msrb.mxu1 %v292_v40 }
  0xcb   : > { %v3189_v41 = vpop.f32.mrf.mxu0 }
  0xcc   : > { %332 = vmatpush.xpose.msra.mxu2 %v269_v33  ;;  %2912 = vmatpush.xpose.msra.mxu3 %v269_v33  ;;  %v284_v43 = vmul.f32 %v3189_v41, %v3189_v41 }
  0xce   : > { %312 = vmatpush.xpose.msrb.mxu1 %v291_v42  ;;  %306 = vadd.xlane.f32.xlu2 %v284_v43 }
  0xd0   : > { %333 = vmatpush.xpose.msra.mxu2 %v266_v30  ;;  %2913 = vmatpush.xpose.msra.mxu3 %v266_v30 }
  0xd2   : > { %313 = vmatpush.xpose.msrb.mxu1 %v290_v44 }
  0xd3   : > { %v251_v45 = vpop.f32.mrf.mxu0 }
  0xd4   : > { %334 = vmatpush.xpose.msra.mxu2 %v263_v28  ;;  %2914 = vmatpush.xpose.msra.mxu3 %v263_v28  ;;  %v3193_v52 = vmul.f32 %v251_v45, %v251_v45 }
  0xd6   : > { %314 = vmatpush.xpose.msrb.mxu1 %v289_v46 }
  0xd8   : > { %335 = vmatpush.xpose.msra.mxu2 %v260_v25  ;;  %2915 = vmatpush.xpose.msra.mxu3 %v260_v25 }
  0xda   : > { %315 = vmatpush.xpose.msrb.mxu1 %v288_v47 }
  0xdb   : > { %v254_v48 = vpop.f32.mrf.mxu0 }
  0xdc   : > { %v286_v51 = vmul.f32 %v254_v48, %v254_v48 }
  0xe3   : > { %v257_v49 = vpop.f32.mrf.mxu0 }
  0xe4   : > { %336 = vmatpush.xpose.msra.mxu2 %v257_v49  ;;  %2916 = vmatpush.xpose.msra.mxu3 %v257_v49  ;;  %v287_v50 = vmul.f32 %v257_v49, %v257_v49 }
  0xe6   : > { %316 = vmatpush.xpose.msrb.mxu1 %v287_v50 }
  0xe8   : > { %337 = vmatpush.xpose.msra.mxu2 %v254_v48  ;;  %2917 = vmatpush.xpose.msra.mxu3 %v254_v48 }
  0xea   : > { %317 = vmatpush.xpose.msrb.mxu1 %v286_v51 }
  0xec   : > { %338 = vmatpush.xpose.msra.mxu2 %v251_v45  ;;  %2918 = vmatpush.xpose.msra.mxu3 %v251_v45 }
  0xee   : > { %318 = vmatpush.xpose.msrb.mxu1 %v3193_v52 }
  0xf0   : > { %339 = vmatpush.xpose.msra.mxu2 %v3189_v41  ;;  %2919 = vmatpush.xpose.msra.mxu3 %v3189_v41 }
  0xf2   : > { %319 = vmatpush.xpose.msrb.mxu1 %v284_v43 }
  0xf4   : > { %340 = vmatpush.xpose.msra.mxu2 %v3187_v37  ;;  %2920 = vmatpush.xpose.msra.mxu3 %v3187_v37 }
  0xf6   : > { %320 = vmatpush.xpose.msrb.mxu1 %v3202_v53 }
  0xf8   : > { %341 = vmatpush.xpose.msra.mxu2 %v3185_v35  ;;  %2921 = vmatpush.xpose.msra.mxu3 %v3185_v35 }
  0xfa   : > { %321 = vmatpush.xpose.msrb.mxu1 %v3209_v54 }
  0xfc   : > { %342 = vmatpush.xpose.msra.mxu2 %v3181_v32  ;;  %2922 = vmatpush.xpose.msra.mxu3 %v3181_v32 }
  0xfe   : > { %322 = vmatpush.xpose.msrb.mxu1 %v281_v34 }
 0x100   : > { %343 = vmatpush.xpose.msra.mxu2 %v3174_v29  ;;  %2923 = vmatpush.xpose.msra.mxu3 %v3174_v29 }
 0x102   : > { %323 = vmatpush.xpose.msrb.mxu1 %v3178_v31 }
 0x104   : > { %344 = vmatpush.xpose.msra.mxu2 %v3172_v27  ;;  %2924 = vmatpush.xpose.msra.mxu3 %v3172_v27 }
 0x106   : > { %324 = vmatpush.xpose.msrb.mxu1 %v3221_v55 }
 0x108   : > { %345 = vmatpush.xpose.msra.mxu2 %v3165_v24  ;;  %2925 = vmatpush.xpose.msra.mxu3 %v3165_v24 }
 0x10a   : > { %325 = vmatpush.xpose.msrb.mxu1 %v3169_v26 }
 0x10b   : > { %346 = vmatmul.f32.vlgmr.msra.gmra.mxu2 %v3165_v24  ;;  %358 = vmatmul.f32.vlgmr.msra.gmra.mxu3 %v3185_v35 }
 0x10d   : > { %326 = vmatmul.f32.vlgmr.msrb.gmra.mxu1 %v3071_v56 }
 0x111   : > { %v295_v62 = vpop.xlane.xlu0 %294 }
 0x113   : > { %349 = vmatmul.f32.gmra.mxu2 %v3172_v27  ;;  %361 = vmatmul.f32.gmra.mxu3 %v3187_v37 }
 0x11b   : > { %352 = vmatmul.f32.gmra.mxu2 %v3174_v29  ;;  %364 = vmatmul.f32.gmra.mxu3 %v3189_v41 }
 0x121   : > { %v299_v59 = vpop.xlane.xlu2 %298 }
 0x123   : > { %355 = vmatmul.f32.gmra.mxu2 %v3181_v32  ;;  %367 = vmatmul.f32.gmra.mxu3 %v251_v45 }
 0x129   : > { %v301_v6 = vpop.xlane.xlu2 %300 }
 0x141   : > { %v307_v15 = vpop.xlane.xlu2 %306 }
 0x18a   : > { %v327_v58 = vpop.f32.mrf.mxu1 }
 0x18b   : > { %v3234_v60 = vperm.slane %v327_v58, 0 }
 0x18d   : > { %v372_v1 = vadd.f32 %v3234_v60, %v295_v62  ;;  %v374_v19 = vadd.f32 %v3234_v60, %v299_v59  ;;  %v378_v21 = vadd.f32 %v3234_v60, %v307_v15  ;;  %v375_v30 = vadd.f32 %v3234_v60, %v301_v6 }
 0x18e   : > { %v347_v63 = vpop.f32.mrf.mxu2  ;;  %v359_v0 = vpop.f32.mrf.mxu3 }
 0x18f   : > { %v380_v2 = vmul.f32 2.0, %v347_v63  ;;  %v384_v40 = vmul.f32 2.0, %v359_v0 }
 0x191   : > { %v388_v3 = vsub.f32 %v372_v1, %v380_v2 }
 0x193   : > { %v396_v4 = vmax.f32 %v388_v3, 0.0 }
 0x195   : > { %v3250_v7 = vsel %vm406_vm3, %v396_v4, inf }
 0x196   : > { %415 = vst [vmem:[#allocation2] sm:$0xff] %v3250_v7  ;;  %v3253_v8 = vpop.f32.mrf.mxu2  ;;  %v3255_v9 = vpop.f32.mrf.mxu3  ;;  %v426_v10 = vsel %vm3244_vm4, inf, %v3250_v7 }
 0x197   : > { %v428_v11 = vand.u32 4294967168, %v426_v10  ;;  %v381_v63 = vmul.f32 2.0, %v3253_v8 }
 0x199   : > { %v3261_v12 = vor.u32 %v428_v11, %v3236_v61 }
 0x19b   : > { %v431_v13 = vsel %vm430_vm5, %v3261_v12, 2147483647 }
 0x19c   : > { %v433_v14 = vshra.s32 %v431_v13, 16  ;;  %v432_v35 = vand.u32 65535, %v431_v13  ;;  %v385_v13 = vmul.f32 2.0, %v3255_v9 }
 0x19e   : > { %v353_v16 = vpop.f32.mrf.mxu2  ;;  %v365_v17 = vpop.f32.mrf.mxu3  ;;  %v435_v18 = vcvt.s32.f32 %v433_v14  ;;  %v434_v37 = vcvt.s32.f32 %v432_v35 }
 0x19f   : > { %v382_v20 = vmul.f32 2.0, %v353_v16  ;;  %v386_v22 = vmul.f32 2.0, %v365_v17 }
 0x1a0   : > { %436 = vmin.xlane.f32.xlu0 %v435_v18 }
 0x1a1   : > { %v390_v23 = vsub.f32 %v374_v19, %v382_v20  ;;  %v394_v24 = vsub.f32 %v378_v21, %v386_v22 }
 0x1a3   : > { %v398_v25 = vmax.f32 %v390_v23, 0.0  ;;  %v402_v26 = vmax.f32 %v394_v24, 0.0 }
 0x1a5   : > { %v409_v27 = vsel %vm406_vm3, %v398_v25, inf  ;;  %v413_v28 = vsel %vm406_vm3, %v402_v26, inf }
 0x1a6   : > { %417 = vst [vmem:[#allocation2 + $0x10] sm:$0xff] %v409_v27  ;;  %v356_v29 = vpop.f32.mrf.mxu2  ;;  %v368_v44 = vpop.f32.mrf.mxu3 }
 0x1a7   : > { %421 = vst [vmem:[#allocation2 + $0x30] sm:$0xff] %v413_v28  ;;  %v383_v31 = vmul.f32 2.0, %v356_v29  ;;  %v387_v47 = vmul.f32 2.0, %v368_v44 }
 0x1a8   : > { %302 = vadd.xlane.f32.xlu0 %v3209_v54 }
 0x1a9   : > { %v391_v32 = vsub.f32 %v375_v30, %v383_v31 }
 0x1ab   : > { %v399_v33 = vmax.f32 %v391_v32, 0.0 }
 0x1ad   : > { %v410_v34 = vsel %vm406_vm3, %v399_v33, inf }
 0x1ae   : > { %418 = vst [vmem:[#allocation2 + $0x18] sm:$0xff] %v410_v34 }
 0x1b0   : > { %308 = vadd.xlane.f32.xlu0 %v3193_v52 }
 0x213   : > { %v437_v36 = vpop.xlane.xlu0 %436 }
 0x214   : > { %vm438_vm6 = vcmp.eq.f32.partialorder %v435_v18, %v437_v36  ;;  %v443_v52 = vcvt.f32.s32 %v437_v36 }
 0x215   : > { %v439_v38 = vsel %vm438_vm6, %v434_v37, inf }
 0x216   : > { %440 = vmin.xlane.f32.xlu1 %v439_v38 }
 0x21b   : > { %v303_v39 = vpop.xlane.xlu0 %302 }
 0x21c   : > { %v376_v41 = vadd.f32 %v3234_v60, %v303_v39 }
 0x21e   : > { %v392_v42 = vsub.f32 %v376_v41, %v384_v40  ;;  %296 = vadd.xlane.f32.xlu1 %v3221_v55  ;;  %v444_v55 = vshll.u32 %v443_v52, 16 }
 0x220   : > { %v400_v43 = vmax.f32 %v392_v42, 0.0 }
 0x222   : > { %v411_v45 = vsel %vm406_vm3, %v400_v43, inf }
 0x223   : > { %419 = vst [vmem:[#allocation2 + $0x20] sm:$0xff] %v411_v45  ;;  %v309_v46 = vpop.xlane.xlu0 %308 }
 0x224   : > { %v379_v48 = vadd.f32 %v3234_v60, %v309_v46 }
 0x226   : > { %v395_v49 = vsub.f32 %v379_v48, %v387_v47  ;;  %304 = vadd.xlane.f32.xlu1 %v3202_v53 }
 0x228   : > { %v403_v50 = vmax.f32 %v395_v49, 0.0 }
 0x22a   : > { %v414_v51 = vsel %vm406_vm3, %v403_v50, inf }
 0x22b   : > { %422 = vst [vmem:[#allocation2 + $0x38] sm:$0xff] %v414_v51 }
 0x289   : > { %v441_v54 = vpop.xlane.xlu1 %440 }
 0x28a   : > { %v442_v56 = vcvt.f32.s32 %v441_v54 }
 0x28c   : > { %v445_v57 = vadd.s32 %v444_v55, %v442_v56 }
 0x28e   : > { %v446_v58 = vrot.slane %v445_v57, 4 }
 0x290   : > { %vm447_vm7 = vcmp.lt.s32.totalorder %v445_v57, %v446_v58 }
 0x291   : > { %v297_v59 = vpop.xlane.xlu1 %296  ;;  %v448_v62 = vsel %vm447_vm7, %v445_v57, %v446_v58 }
 0x292   : > { %v373_v0 = vadd.f32 %v3234_v60, %v297_v59  ;;  %v449_v1 = vrot.slane %v448_v62, 2 }
 0x294   : > { %v389_v53 = vsub.f32 %v373_v0, %v381_v63  ;;  %vm450_vm8 = vcmp.lt.s32.totalorder %v448_v62, %v449_v1 }
 0x295   : > { %v451_v2 = vsel %vm450_vm8, %v448_v62, %v449_v1 }
 0x296   : > { %v397_v3 = vmax.f32 %v389_v53, 0.0  ;;  %v452_v4 = vrot.slane %v451_v2, 1 }
 0x298   : > { %v408_v6 = vsel %vm406_vm3, %v397_v3, inf  ;;  %vm453_vm9 = vcmp.lt.s32.totalorder %v451_v2, %v452_v4 }
 0x299   : > { %416 = vst [vmem:[#allocation2 + $0x8] sm:$0xff] %v408_v6  ;;  %v305_v10 = vpop.xlane.xlu1 %304  ;;  %v454_v11 = vsel %vm453_vm9, %v451_v2, %v452_v4 }
 0x29a   : > { %v377_v14 = vadd.f32 %v3234_v60, %v305_v10  ;;  %2926 = vpush %v454_v11 }
 0x29c   : > { %v393_v8 = vsub.f32 %v377_v14, %v385_v13 }
 0x29e   : > { %v401_v15 = vmax.f32 %v393_v8, 0.0 }
 0x2a0   : > { %v412_v16 = vsel %vm406_vm3, %v401_v15, inf }
 0x2a1   : > { %420 = vst [vmem:[#allocation2 + $0x28] sm:$0xff] %v412_v16 }
 0x2cb   : > { %s2927_s21 = spop %2926 }
 0x2cc   : > { %v456_v17 = vstv %s2927_s21  ;;  %s458_s22 = sand.u32 127, %s2927_s21 }
 0x2cd   : > { %vm3293_vm10 = vcmp.eq.s32.totalorder %v3261_v12, %v456_v17  ;;  %s461_s23 = scalar_lea.vmem [#allocation2], %s458_s22 }
 0x2ce   : > { %v462_v19 = vld [vmem:[%s461_s23] sm:$0x1]  ;;  %vm460_vm11 = vmor %vm3244_vm4, %vm3293_vm10  ;;  %v459_v40 = vsel %vm3293_vm10, %v3250_v7, 0.0 }
 0x2cf   : > { %v463_v9 = vmin.f32 %v3250_v7, %v462_v19 }
 0x2d1   : > { %v464_v60 = vsel %vm460_vm11, inf, %v463_v9 }
 0x2d2   : > { %v466_v20 = vand.u32 4294967168, %v464_v60 }
 0x2d4   : > { %v467_v12 = vor.u32 %v466_v20, %v3236_v61 }
 0x2d6   : > { %v468_v21 = vsel %vm430_vm5, %v467_v12, 2147483647 }
 0x2d7   : > { %v470_v22 = vshra.s32 %v468_v21, 16  ;;  %v469_v24 = vand.u32 65535, %v468_v21 }
 0x2d9   : > { %v472_v23 = vcvt.s32.f32 %v470_v22  ;;  %v471_v26 = vcvt.s32.f32 %v469_v24 }
 0x2db   : > { %473 = vmin.xlane.f32.xlu1 %v472_v23 }
 0x34e   : > { %v474_v25 = vpop.xlane.xlu1 %473 }
 0x34f   : > { %vm475_vm12 = vcmp.eq.f32.partialorder %v472_v23, %v474_v25  ;;  %v480_v28 = vcvt.f32.s32 %v474_v25 }
 0x350   : > { %v476_v27 = vsel %vm475_vm12, %v471_v26, inf }
 0x351   : > { %477 = vmin.xlane.f32.xlu2 %v476_v27  ;;  %v481_v30 = vshll.u32 %v480_v28, 16 }
 0x3c4   : > { %v478_v29 = vpop.xlane.xlu2 %477 }
 0x3c5   : > { %v479_v31 = vcvt.f32.s32 %v478_v29 }
 0x3c7   : > { %v482_v32 = vadd.s32 %v481_v30, %v479_v31 }
 0x3c9   : > { %v483_v33 = vrot.slane %v482_v32, 4 }
 0x3cb   : > { %vm484_vm13 = vcmp.lt.s32.totalorder %v482_v32, %v483_v33 }
 0x3cc   : > { %v485_v34 = vsel %vm484_vm13, %v482_v32, %v483_v33 }
 0x3cd   : > { %v486_v35 = vrot.slane %v485_v34, 2 }
 0x3cf   : > { %vm487_vm14 = vcmp.lt.s32.totalorder %v485_v34, %v486_v35 }
 0x3d0   : > { %v488_v36 = vsel %vm487_vm14, %v485_v34, %v486_v35 }
 0x3d1   : > { %v489_v37 = vrot.slane %v488_v36, 1 }
 0x3d3   : > { %vm490_vm15 = vcmp.lt.s32.totalorder %v488_v36, %v489_v37 }
 0x3d4   : > { %v491_v38 = vsel %vm490_vm15, %v488_v36, %v489_v37 }
 0x3d5   : > { %2928 = vpush %v491_v38 }
 0x406   : > { %s2929_s24 = spop %2928 }
 0x407   : > { %v493_v39 = vstv %s2929_s24  ;;  %s495_s25 = sand.u32 127, %s2929_s24 }
 0x408   : > { %vm494_vm0 = vcmp.eq.s32.totalorder %v467_v12, %v493_v39  ;;  %s498_s26 = scalar_lea.vmem [#allocation2], %s495_s25 }
 0x409   : > { %v3312_v41 = vsel %vm494_vm0, %v463_v9, %v459_v40  ;;  %v499_v42 = vld [vmem:[%s498_s26] sm:$0x1]  ;;  %vm3321_vm2 = vmor %vm460_vm11, %vm494_vm0 }
 0x40a   : > { %v3314_v43 = vmin.f32 %v463_v9, %v499_v42 }
 0x40c   : > { %v501_v7 = vsel %vm3321_vm2, inf, %v3314_v43 }
 0x40d   : > { %v503_v45 = vand.u32 4294967168, %v501_v7 }
 0x40f   : > { %v504_v46 = vor.u32 %v503_v45, %v3236_v61 }
 0x411   : > { %v505_v47 = vsel %vm430_vm5, %v504_v46, 2147483647 }
 0x412   : > { %v507_v48 = vshra.s32 %v505_v47, 16  ;;  %v506_v5 = vand.u32 65535, %v505_v47 }
 0x414   : > { %v509_v49 = vcvt.s32.f32 %v507_v48  ;;  %v508_v51 = vcvt.s32.f32 %v506_v5 }
 0x416   : > { %510 = vmin.xlane.f32.xlu0 %v509_v49 }
 0x489   : > { %v511_v50 = vpop.xlane.xlu0 %510 }
 0x48a   : > { %vm512_vm3 = vcmp.eq.f32.partialorder %v509_v49, %v511_v50  ;;  %v517_v54 = vcvt.f32.s32 %v511_v50 }
 0x48b   : > { %v513_v52 = vsel %vm512_vm3, %v508_v51, inf }
 0x48c   : > { %514 = vmin.xlane.f32.xlu1 %v513_v52  ;;  %v518_v56 = vshll.u32 %v517_v54, 16 }
 0x4ff   : > { %v515_v55 = vpop.xlane.xlu1 %514 }
 0x500   : > { %v516_v57 = vcvt.f32.s32 %v515_v55 }
 0x502   : > { %v519_v58 = vadd.s32 %v518_v56, %v516_v57 }
 0x504   : > { %v520_v59 = vrot.slane %v519_v58, 4 }
 0x506   : > { %vm521_vm4 = vcmp.lt.s32.totalorder %v519_v58, %v520_v59 }
 0x507   : > { %v522_v62 = vsel %vm521_vm4, %v519_v58, %v520_v59 }
 0x508   : > { %v523_v63 = vrot.slane %v522_v62, 2 }
 0x50a   : > { %vm524_vm6 = vcmp.lt.s32.totalorder %v522_v62, %v523_v63 }
 0x50b   : > { %v525_v0 = vsel %vm524_vm6, %v522_v62, %v523_v63 }
 0x50c   : > { %v526_v1 = vrot.slane %v525_v0, 1 }
 0x50e   : > { %vm527_vm7 = vcmp.lt.s32.totalorder %v525_v0, %v526_v1 }
 0x50f   : > { %v528_v53 = vsel %vm527_vm7, %v525_v0, %v526_v1 }
 0x510   : > { %2930 = vpush %v528_v53 }
 0x541   : > { %s2931_s27 = spop %2930 }
 0x542   : > { %v530_v2 = vstv %s2931_s27  ;;  %s532_s28 = sand.u32 127, %s2931_s27 }
 0x543   : > { %vm3330_vm8 = vcmp.eq.s32.totalorder %v504_v46, %v530_v2  ;;  %s535_s29 = scalar_lea.vmem [#allocation2], %s532_s28 }
 0x544   : > { %v533_v4 = vsel %vm3330_vm8, %v3314_v43, %v3312_v41  ;;  %v536_v6 = vld [vmem:[%s535_s29] sm:$0x1]  ;;  %vm534_vm9 = vmor %vm3321_vm2, %vm3330_vm8 }
 0x545   : > { %v537_v10 = vmin.f32 %v3314_v43, %v536_v6 }
 0x547   : > { %v538_v11 = vsel %vm534_vm9, inf, %v537_v10 }
 0x548   : > { %v540_v13 = vand.u32 4294967168, %v538_v11 }
 0x54a   : > { %v541_v14 = vor.u32 %v540_v13, %v3236_v61 }
 0x54c   : > { %v542_v8 = vsel %vm430_vm5, %v541_v14, 2147483647 }
 0x54d   : > { %v544_v15 = vshra.s32 %v542_v8, 16  ;;  %v543_v17 = vand.u32 65535, %v542_v8 }
 0x54f   : > { %v546_v16 = vcvt.s32.f32 %v544_v15  ;;  %v545_v19 = vcvt.s32.f32 %v543_v17 }
 0x551   : > { %547 = vmin.xlane.f32.xlu2 %v546_v16 }
 0x5c4   : > { %v548_v18 = vpop.xlane.xlu2 %547 }
 0x5c5   : > { %vm549_vm10 = vcmp.eq.f32.partialorder %v546_v16, %v548_v18  ;;  %v554_v60 = vcvt.f32.s32 %v548_v18 }
 0x5c6   : > { %v550_v9 = vsel %vm549_vm10, %v545_v19, inf }
 0x5c7   : > { %551 = vmin.xlane.f32.xlu0 %v550_v9  ;;  %v555_v12 = vshll.u32 %v554_v60, 16 }
 0x63a   : > { %v552_v20 = vpop.xlane.xlu0 %551 }
 0x63b   : > { %v553_v21 = vcvt.f32.s32 %v552_v20 }
 0x63d   : > { %v556_v22 = vadd.s32 %v555_v12, %v553_v21 }
 0x63f   : > { %v557_v23 = vrot.slane %v556_v22, 4 }
 0x641   : > { %vm558_vm11 = vcmp.lt.s32.totalorder %v556_v22, %v557_v23 }
 0x642   : > { %v559_v24 = vsel %vm558_vm11, %v556_v22, %v557_v23 }
 0x643   : > { %v560_v25 = vrot.slane %v559_v24, 2 }
 0x645   : > { %vm561_vm12 = vcmp.lt.s32.totalorder %v559_v24, %v560_v25 }
 0x646   : > { %v562_v26 = vsel %vm561_vm12, %v559_v24, %v560_v25 }
 0x647   : > { %v563_v27 = vrot.slane %v562_v26, 1 }
 0x649   : > { %vm564_vm13 = vcmp.lt.s32.totalorder %v562_v26, %v563_v27 }
 0x64a   : > { %v565_v28 = vsel %vm564_vm13, %v562_v26, %v563_v27 }
 0x64b   : > { %2932 = vpush %v565_v28 }
 0x67c   : > { %s2933_s30 = spop %2932 }
 0x67d   : > { %v567_v29 = vstv %s2933_s30  ;;  %s569_s3 = sand.u32 127, %s2933_s30 }
 0x67e   : > { %vm568_vm14 = vcmp.eq.s32.totalorder %v541_v14, %v567_v29  ;;  %s572_s4 = scalar_lea.vmem [#allocation2], %s569_s3 }
 0x67f   : > { %v3350_v30 = vsel %vm568_vm14, %v537_v10, %v533_v4  ;;  %v573_v31 = vld [vmem:[%s572_s4] sm:$0x1]  ;;  %vm3359_vm15 = vmor %vm534_vm9, %vm568_vm14 }
 0x680   : > { %v3352_v32 = vmin.f32 %v537_v10, %v573_v31 }
 0x682   : > { %v575_v34 = vsel %vm3359_vm15, inf, %v3352_v32 }
 0x683   : > { %v577_v35 = vand.u32 4294967168, %v575_v34 }
 0x685   : > { %v578_v36 = vor.u32 %v577_v35, %v3236_v61 }
 0x687   : > { %v579_v37 = vsel %vm430_vm5, %v578_v36, 2147483647 }
 0x688   : > { %v581_v38 = vshra.s32 %v579_v37, 16  ;;  %v580_v40 = vand.u32 65535, %v579_v37 }
 0x68a   : > { %v583_v39 = vcvt.s32.f32 %v581_v38  ;;  %v582_v42 = vcvt.s32.f32 %v580_v40 }
 0x68c   : > { %584 = vmin.xlane.f32.xlu1 %v583_v39 }
 0x6ff   : > { %v585_v41 = vpop.xlane.xlu1 %584 }
 0x700   : > { %vm586_vm0 = vcmp.eq.f32.partialorder %v583_v39, %v585_v41  ;;  %v591_v44 = vcvt.f32.s32 %v585_v41 }
 0x701   : > { %v587_v43 = vsel %vm586_vm0, %v582_v42, inf }
 0x702   : > { %588 = vmin.xlane.f32.xlu2 %v587_v43  ;;  %v592_v45 = vshll.u32 %v591_v44, 16 }
 0x775   : > { %v589_v7 = vpop.xlane.xlu2 %588 }
 0x776   : > { %v590_v46 = vcvt.f32.s32 %v589_v7 }
 0x778   : > { %v593_v47 = vadd.s32 %v592_v45, %v590_v46 }
 0x77a   : > { %v594_v48 = vrot.slane %v593_v47, 4 }
 0x77c   : > { %vm595_vm2 = vcmp.lt.s32.totalorder %v593_v47, %v594_v48 }
 0x77d   : > { %v596_v49 = vsel %vm595_vm2, %v593_v47, %v594_v48 }
 0x77e   : > { %v597_v5 = vrot.slane %v596_v49, 2 }
 0x780   : > { %vm598_vm3 = vcmp.lt.s32.totalorder %v596_v49, %v597_v5 }
 0x781   : > { %v599_v50 = vsel %vm598_vm3, %v596_v49, %v597_v5 }
 0x782   : > { %v600_v51 = vrot.slane %v599_v50, 1 }
 0x784   : > { %vm601_vm4 = vcmp.lt.s32.totalorder %v599_v50, %v600_v51 }
 0x785   : > { %v602_v52 = vsel %vm601_vm4, %v599_v50, %v600_v51 }
 0x786   : > { %2934 = vpush %v602_v52 }
 0x7b7   : > { %s2935_s5 = spop %2934 }
 0x7b8   : > { %v604_v54 = vstv %s2935_s5  ;;  %s606_s6 = sand.u32 127, %s2935_s5 }
 0x7b9   : > { %vm3368_vm6 = vcmp.eq.s32.totalorder %v578_v36, %v604_v54  ;;  %s609_s7 = scalar_lea.vmem [#allocation2], %s606_s6 }
 0x7ba   : > { %v607_v56 = vsel %vm3368_vm6, %v3352_v32, %v3350_v30  ;;  %v610_v57 = vld [vmem:[%s609_s7] sm:$0x1]  ;;  %vm608_vm7 = vmor %vm3359_vm15, %vm3368_vm6 }
 0x7bb   : > { %v611_v58 = vmin.f32 %v3352_v32, %v610_v57 }
 0x7bd   : > { %v612_v59 = vsel %vm608_vm7, inf, %v611_v58 }
 0x7be   : > { %v614_v62 = vand.u32 4294967168, %v612_v59 }
 0x7c0   : > { %v615_v63 = vor.u32 %v614_v62, %v3236_v61 }
 0x7c2   : > { %v616_v0 = vsel %vm430_vm5, %v615_v63, 2147483647 }
 0x7c3   : > { %v618_v1 = vshra.s32 %v616_v0, 16  ;;  %v617_v2 = vand.u32 65535, %v616_v0 }
 0x7c5   : > { %v620_v53 = vcvt.s32.f32 %v618_v1  ;;  %v619_v4 = vcvt.s32.f32 %v617_v2 }
 0x7c7   : > { %621 = vmin.xlane.f32.xlu0 %v620_v53 }
 0x83a   : > { %v622_v3 = vpop.xlane.xlu0 %621 }
 0x83b   : > { %vm623_vm8 = vcmp.eq.f32.partialorder %v620_v53, %v622_v3  ;;  %v628_v10 = vcvt.f32.s32 %v622_v3 }
 0x83c   : > { %v624_v6 = vsel %vm623_vm8, %v619_v4, inf }
 0x83d   : > { %625 = vmin.xlane.f32.xlu1 %v624_v6  ;;  %v629_v13 = vshll.u32 %v628_v10, 16 }
 0x8b0   : > { %v626_v11 = vpop.xlane.xlu1 %625 }
 0x8b1   : > { %v627_v14 = vcvt.f32.s32 %v626_v11 }
 0x8b3   : > { %v630_v8 = vadd.s32 %v629_v13, %v627_v14 }
 0x8b5   : > { %v631_v15 = vrot.slane %v630_v8, 4 }
 0x8b7   : > { %vm632_vm9 = vcmp.lt.s32.totalorder %v630_v8, %v631_v15 }
 0x8b8   : > { %v633_v16 = vsel %vm632_vm9, %v630_v8, %v631_v15 }
 0x8b9   : > { %v634_v17 = vrot.slane %v633_v16, 2 }
 0x8bb   : > { %vm635_vm10 = vcmp.lt.s32.totalorder %v633_v16, %v634_v17 }
 0x8bc   : > { %v636_v18 = vsel %vm635_vm10, %v633_v16, %v634_v17 }
 0x8bd   : > { %v637_v19 = vrot.slane %v636_v18, 1 }
 0x8bf   : > { %vm638_vm11 = vcmp.lt.s32.totalorder %v636_v18, %v637_v19 }
 0x8c0   : > { %v639_v9 = vsel %vm638_vm11, %v636_v18, %v637_v19 }
 0x8c1   : > { %2936 = vpush %v639_v9 }
 0x8f2   : > { %s2937_s8 = spop %2936 }
 0x8f3   : > { %v641_v60 = vstv %s2937_s8  ;;  %s643_s11 = sand.u32 127, %s2937_s8 }
 0x8f4   : > { %vm642_vm12 = vcmp.eq.s32.totalorder %v615_v63, %v641_v60  ;;  %s646_s12 = scalar_lea.vmem [#allocation2], %s643_s11 }
 0x8f5   : > { %v3388_v20 = vsel %vm642_vm12, %v611_v58, %v607_v56  ;;  %v647_v12 = vld [vmem:[%s646_s12] sm:$0x1]  ;;  %vm3397_vm13 = vmor %vm608_vm7, %vm642_vm12 }
 0x8f6   : > { %v3390_v21 = vmin.f32 %v611_v58, %v647_v12 }
 0x8f8   : > { %v649_v23 = vsel %vm3397_vm13, inf, %v3390_v21 }
 0x8f9   : > { %v651_v24 = vand.u32 4294967168, %v649_v23 }
 0x8fb   : > { %v652_v25 = vor.u32 %v651_v24, %v3236_v61 }
 0x8fd   : > { %v653_v26 = vsel %vm430_vm5, %v652_v25, 2147483647 }
 0x8fe   : > { %v655_v27 = vshra.s32 %v653_v26, 16  ;;  %v654_v29 = vand.u32 65535, %v653_v26 }
 0x900   : > { %v657_v28 = vcvt.s32.f32 %v655_v27  ;;  %v656_v31 = vcvt.s32.f32 %v654_v29 }
 0x902   : > { %658 = vmin.xlane.f32.xlu2 %v657_v28 }
 0x975   : > { %v659_v30 = vpop.xlane.xlu2 %658 }
 0x976   : > { %vm660_vm14 = vcmp.eq.f32.partialorder %v657_v28, %v659_v30  ;;  %v665_v33 = vcvt.f32.s32 %v659_v30 }
 0x977   : > { %v661_v32 = vsel %vm660_vm14, %v656_v31, inf }
 0x978   : > { %662 = vmin.xlane.f32.xlu0 %v661_v32  ;;  %v666_v35 = vshll.u32 %v665_v33, 16 }
 0x9eb   : > { %v663_v34 = vpop.xlane.xlu0 %662 }
 0x9ec   : > { %v664_v36 = vcvt.f32.s32 %v663_v34 }
 0x9ee   : > { %v667_v37 = vadd.s32 %v666_v35, %v664_v36 }
 0x9f0   : > { %v668_v38 = vrot.slane %v667_v37, 4 }
 0x9f2   : > { %vm669_vm15 = vcmp.lt.s32.totalorder %v667_v37, %v668_v38 }
 0x9f3   : > { %v670_v39 = vsel %vm669_vm15, %v667_v37, %v668_v38 }
 0x9f4   : > { %v671_v40 = vrot.slane %v670_v39, 2 }
 0x9f6   : > { %vm672_vm0 = vcmp.lt.s32.totalorder %v670_v39, %v671_v40 }
 0x9f7   : > { %v673_v41 = vsel %vm672_vm0, %v670_v39, %v671_v40 }
 0x9f8   : > { %v674_v42 = vrot.slane %v673_v41, 1 }
 0x9fa   : > { %vm675_vm2 = vcmp.lt.s32.totalorder %v673_v41, %v674_v42 }
 0x9fb   : > { %v676_v43 = vsel %vm675_vm2, %v673_v41, %v674_v42 }
 0x9fc   : > { %2938 = vpush %v676_v43 }
 0xa2d   : > { %s2939_s13 = spop %2938 }
 0xa2e   : > { %v678_v44 = vstv %s2939_s13  ;;  %s680_s14 = sand.u32 127, %s2939_s13 }
 0xa2f   : > { %vm3406_vm3 = vcmp.eq.s32.totalorder %v652_v25, %v678_v44  ;;  %s683_s15 = scalar_lea.vmem [#allocation2], %s680_s14 }
 0xa30   : > { %v681_v45 = vsel %vm3406_vm3, %v3390_v21, %v3388_v20  ;;  %v684_v46 = vld [vmem:[%s683_s15] sm:$0x1]  ;;  %vm682_vm4 = vmor %vm3397_vm13, %vm3406_vm3 }
 0xa31   : > { %v685_v47 = vmin.f32 %v3390_v21, %v684_v46 }
 0xa33   : > { %v686_v48 = vsel %vm682_vm4, inf, %v685_v47 }
 0xa34   : > { %v688_v49 = vand.u32 4294967168, %v686_v48 }
 0xa36   : > { %v689_v5 = vor.u32 %v688_v49, %v3236_v61 }
 0xa38   : > { %v690_v50 = vsel %vm430_vm5, %v689_v5, 2147483647 }
 0xa39   : > { %v692_v51 = vshra.s32 %v690_v50, 16  ;;  %v691_v54 = vand.u32 65535, %v690_v50 }
 0xa3b   : > { %v694_v52 = vcvt.s32.f32 %v692_v51  ;;  %v693_v56 = vcvt.s32.f32 %v691_v54 }
 0xa3d   : > { %695 = vmin.xlane.f32.xlu1 %v694_v52 }
 0xab0   : > { %v696_v55 = vpop.xlane.xlu1 %695 }
 0xab1   : > { %vm697_vm6 = vcmp.eq.f32.partialorder %v694_v52, %v696_v55  ;;  %v702_v58 = vcvt.f32.s32 %v696_v55 }
 0xab2   : > { %v698_v57 = vsel %vm697_vm6, %v693_v56, inf }
 0xab3   : > { %699 = vmin.xlane.f32.xlu2 %v698_v57  ;;  %v703_v62 = vshll.u32 %v702_v58, 16 }
 0xb26   : > { %v700_v59 = vpop.xlane.xlu2 %699 }
 0xb27   : > { %v701_v63 = vcvt.f32.s32 %v700_v59 }
 0xb29   : > { %v704_v0 = vadd.s32 %v703_v62, %v701_v63 }
 0xb2b   : > { %v705_v1 = vrot.slane %v704_v0, 4 }
 0xb2d   : > { %vm706_vm7 = vcmp.lt.s32.totalorder %v704_v0, %v705_v1 }
 0xb2e   : > { %v707_v53 = vsel %vm706_vm7, %v704_v0, %v705_v1 }
 0xb2f   : > { %v708_v2 = vrot.slane %v707_v53, 2 }
 0xb31   : > { %vm709_vm8 = vcmp.lt.s32.totalorder %v707_v53, %v708_v2 }
 0xb32   : > { %v710_v3 = vsel %vm709_vm8, %v707_v53, %v708_v2 }
 0xb33   : > { %v711_v4 = vrot.slane %v710_v3, 1 }
 0xb35   : > { %vm712_vm9 = vcmp.lt.s32.totalorder %v710_v3, %v711_v4 }
 0xb36   : > { %v713_v6 = vsel %vm712_vm9, %v710_v3, %v711_v4 }
 0xb37   : > { %2940 = vpush %v713_v6 }
 0xb68   : > { %s2941_s16 = spop %2940 }
 0xb69   : > { %v715_v10 = vstv %s2941_s16  ;;  %s717_s17 = sand.u32 127, %s2941_s16 }
 0xb6a   : > { %vm716_vm10 = vcmp.eq.s32.totalorder %v689_v5, %v715_v10  ;;  %s720_s18 = scalar_lea.vmem [#allocation2], %s717_s17 }
 0xb6b   : > { %v3426_v11 = vsel %vm716_vm10, %v685_v47, %v681_v45  ;;  %v721_v13 = vld [vmem:[%s720_s18] sm:$0x1]  ;;  %vm3435_vm11 = vmor %vm682_vm4, %vm716_vm10 }
 0xb6c   : > { %v3428_v14 = vmin.f32 %v685_v47, %v721_v13 }
 0xb6e   : > { %v723_v15 = vsel %vm3435_vm11, inf, %v3428_v14 }
 0xb6f   : > { %v725_v16 = vand.u32 4294967168, %v723_v15 }
 0xb71   : > { %v726_v17 = vor.u32 %v725_v16, %v3236_v61 }
 0xb73   : > { %v727_v18 = vsel %vm430_vm5, %v726_v17, 2147483647 }
 0xb74   : > { %v729_v19 = vshra.s32 %v727_v18, 16  ;;  %v728_v60 = vand.u32 65535, %v727_v18 }
 0xb76   : > { %v731_v9 = vcvt.s32.f32 %v729_v19  ;;  %v730_v12 = vcvt.s32.f32 %v728_v60 }
 0xb78   : > { %732 = vmin.xlane.f32.xlu0 %v731_v9 }
 0xbeb   : > { %v733_v20 = vpop.xlane.xlu0 %732 }
 0xbec   : > { %vm734_vm12 = vcmp.eq.f32.partialorder %v731_v9, %v733_v20  ;;  %v739_v22 = vcvt.f32.s32 %v733_v20 }
 0xbed   : > { %v735_v21 = vsel %vm734_vm12, %v730_v12, inf }
 0xbee   : > { %736 = vmin.xlane.f32.xlu1 %v735_v21  ;;  %v740_v24 = vshll.u32 %v739_v22, 16 }
 0xc61   : > { %v737_v23 = vpop.xlane.xlu1 %736 }
 0xc62   : > { %v738_v25 = vcvt.f32.s32 %v737_v23 }
 0xc64   : > { %v741_v26 = vadd.s32 %v740_v24, %v738_v25 }
 0xc66   : > { %v742_v27 = vrot.slane %v741_v26, 4 }
 0xc68   : > { %vm743_vm13 = vcmp.lt.s32.totalorder %v741_v26, %v742_v27 }
 0xc69   : > { %v744_v28 = vsel %vm743_vm13, %v741_v26, %v742_v27 }
 0xc6a   : > { %v745_v29 = vrot.slane %v744_v28, 2 }
 0xc6c   : > { %vm746_vm14 = vcmp.lt.s32.totalorder %v744_v28, %v745_v29 }
 0xc6d   : > { %v747_v30 = vsel %vm746_vm14, %v744_v28, %v745_v29 }
 0xc6e   : > { %v748_v31 = vrot.slane %v747_v30, 1 }
 0xc70   : > { %vm749_vm15 = vcmp.lt.s32.totalorder %v747_v30, %v748_v31 }
 0xc71   : > { %v750_v32 = vsel %vm749_vm15, %v747_v30, %v748_v31 }
 0xc72   : > { %2942 = vpush %v750_v32 }
 0xca3   : > { %s2943_s19 = spop %2942 }
 0xca4   : > { %v752_v33 = vstv %s2943_s19  ;;  %s754_s20 = sand.u32 127, %s2943_s19 }
 0xca5   : > { %vm3444_vm0 = vcmp.eq.s32.totalorder %v726_v17, %v752_v33  ;;  %s757_s21 = scalar_lea.vmem [#allocation2], %s754_s20 }
 0xca6   : > { %v755_v35 = vsel %vm3444_vm0, %v3428_v14, %v3426_v11  ;;  %v758_v36 = vld [vmem:[%s757_s21] sm:$0x1]  ;;  %vm756_vm2 = vmor %vm3435_vm11, %vm3444_vm0 }
 0xca7   : > { %v759_v37 = vmin.f32 %v3428_v14, %v758_v36 }
 0xca9   : > { %v760_v38 = vsel %vm756_vm2, inf, %v759_v37 }
 0xcaa   : > { %v762_v39 = vand.u32 4294967168, %v760_v38 }
 0xcac   : > { %v763_v40 = vor.u32 %v762_v39, %v3236_v61 }
 0xcae   : > { %v764_v41 = vsel %vm430_vm5, %v763_v40, 2147483647 }
 0xcaf   : > { %v766_v42 = vshra.s32 %v764_v41, 16  ;;  %v765_v44 = vand.u32 65535, %v764_v41 }
 0xcb1   : > { %v768_v43 = vcvt.s32.f32 %v766_v42  ;;  %v767_v45 = vcvt.s32.f32 %v765_v44 }
 0xcb3   : > { %769 = vmin.xlane.f32.xlu2 %v768_v43 }
 0xd26   : > { %v770_v7 = vpop.xlane.xlu2 %769 }
 0xd27   : > { %vm771_vm3 = vcmp.eq.f32.partialorder %v768_v43, %v770_v7  ;;  %v776_v47 = vcvt.f32.s32 %v770_v7 }
 0xd28   : > { %v772_v46 = vsel %vm771_vm3, %v767_v45, inf }
 0xd29   : > { %773 = vmin.xlane.f32.xlu0 %v772_v46  ;;  %v777_v49 = vshll.u32 %v776_v47, 16 }
 0xd9c   : > { %v774_v48 = vpop.xlane.xlu0 %773 }
 0xd9d   : > { %v775_v5 = vcvt.f32.s32 %v774_v48 }
 0xd9f   : > { %v778_v50 = vadd.s32 %v777_v49, %v775_v5 }
 0xda1   : > { %v779_v51 = vrot.slane %v778_v50, 4 }
 0xda3   : > { %vm780_vm4 = vcmp.lt.s32.totalorder %v778_v50, %v779_v51 }
 0xda4   : > { %v781_v52 = vsel %vm780_vm4, %v778_v50, %v779_v51 }
 0xda5   : > { %v782_v54 = vrot.slane %v781_v52, 2 }
 0xda7   : > { %vm783_vm6 = vcmp.lt.s32.totalorder %v781_v52, %v782_v54 }
 0xda8   : > { %v784_v55 = vsel %vm783_vm6, %v781_v52, %v782_v54 }
 0xda9   : > { %v785_v56 = vrot.slane %v784_v55, 1 }
 0xdab   : > { %vm786_vm7 = vcmp.lt.s32.totalorder %v784_v55, %v785_v56 }
 0xdac   : > { %v787_v57 = vsel %vm786_vm7, %v784_v55, %v785_v56 }
 0xdad   : > { %2944 = vpush %v787_v57 }
 0xdde   : > { %s2945_s22 = spop %2944 }
 0xddf   : > { %v789_v58 = vstv %s2945_s22  ;;  %s791_s23 = sand.u32 127, %s2945_s22 }
 0xde0   : > { %vm790_vm8 = vcmp.eq.s32.totalorder %v763_v40, %v789_v58  ;;  %s794_s24 = scalar_lea.vmem [#allocation2], %s791_s23 }
 0xde1   : > { %v3464_v59 = vsel %vm790_vm8, %v759_v37, %v755_v35  ;;  %v795_v62 = vld [vmem:[%s794_s24] sm:$0x1]  ;;  %vm3473_vm9 = vmor %vm756_vm2, %vm790_vm8 }
 0xde2   : > { %v3466_v63 = vmin.f32 %v759_v37, %v795_v62 }
 0xde4   : > { %v797_v1 = vsel %vm3473_vm9, inf, %v3466_v63 }
 0xde5   : > { %v799_v53 = vand.u32 4294967168, %v797_v1 }
 0xde7   : > { %v800_v2 = vor.u32 %v799_v53, %v3236_v61 }
 0xde9   : > { %v801_v3 = vsel %vm430_vm5, %v800_v2, 2147483647 }
 0xdea   : > { %v803_v4 = vshra.s32 %v801_v3, 16  ;;  %v802_v10 = vand.u32 65535, %v801_v3 }
 0xdec   : > { %v805_v6 = vcvt.s32.f32 %v803_v4  ;;  %v804_v13 = vcvt.s32.f32 %v802_v10 }
 0xdee   : > { %806 = vmin.xlane.f32.xlu1 %v805_v6 }
 0xe61   : > { %v807_v11 = vpop.xlane.xlu1 %806 }
 0xe62   : > { %vm808_vm10 = vcmp.eq.f32.partialorder %v805_v6, %v807_v11  ;;  %v813_v8 = vcvt.f32.s32 %v807_v11 }
 0xe63   : > { %v809_v14 = vsel %vm808_vm10, %v804_v13, inf }
 0xe64   : > { %810 = vmin.xlane.f32.xlu2 %v809_v14  ;;  %v814_v16 = vshll.u32 %v813_v8, 16 }
 0xed7   : > { %v811_v15 = vpop.xlane.xlu2 %810 }
 0xed8   : > { %v812_v17 = vcvt.f32.s32 %v811_v15 }
 0xeda   : > { %v815_v18 = vadd.s32 %v814_v16, %v812_v17 }
 0xedc   : > { %v816_v19 = vrot.slane %v815_v18, 4 }
 0xede   : > { %vm817_vm11 = vcmp.lt.s32.totalorder %v815_v18, %v816_v19 }
 0xedf   : > { %v818_v9 = vsel %vm817_vm11, %v815_v18, %v816_v19 }
 0xee0   : > { %v819_v60 = vrot.slane %v818_v9, 2 }
 0xee2   : > { %vm820_vm12 = vcmp.lt.s32.totalorder %v818_v9, %v819_v60 }
 0xee3   : > { %v821_v20 = vsel %vm820_vm12, %v818_v9, %v819_v60 }
 0xee4   : > { %v822_v12 = vrot.slane %v821_v20, 1 }
 0xee6   : > { %vm823_vm13 = vcmp.lt.s32.totalorder %v821_v20, %v822_v12 }
 0xee7   : > { %v824_v21 = vsel %vm823_vm13, %v821_v20, %v822_v12 }
 0xee8   : > { %2946 = vpush %v824_v21 }
 0xf19   : > { %s2947_s25 = spop %2946 }
 0xf1a   : > { %v826_v22 = vstv %s2947_s25  ;;  %s828_s26 = sand.u32 127, %s2947_s25 }
 0xf1b   : > { %vm3482_vm14 = vcmp.eq.s32.totalorder %v800_v2, %v826_v22  ;;  %s831_s27 = scalar_lea.vmem [#allocation2], %s828_s26 }
 0xf1c   : > { %v829_v24 = vsel %vm3482_vm14, %v3466_v63, %v3464_v59  ;;  %v832_v25 = vld [vmem:[%s831_s27] sm:$0x1]  ;;  %vm830_vm15 = vmor %vm3473_vm9, %vm3482_vm14 }
 0xf1d   : > { %v833_v26 = vmin.f32 %v3466_v63, %v832_v25 }
 0xf1f   : > { %v834_v27 = vsel %vm830_vm15, inf, %v833_v26 }
 0xf20   : > { %v836_v28 = vand.u32 4294967168, %v834_v27 }
 0xf22   : > { %v837_v29 = vor.u32 %v836_v28, %v3236_v61 }
 0xf24   : > { %v838_v30 = vsel %vm430_vm5, %v837_v29, 2147483647 }
 0xf25   : > { %v840_v31 = vshra.s32 %v838_v30, 16  ;;  %v839_v33 = vand.u32 65535, %v838_v30 }
 0xf27   : > { %v842_v32 = vcvt.s32.f32 %v840_v31  ;;  %v841_v35 = vcvt.s32.f32 %v839_v33 }
 0xf29   : > { %843 = vmin.xlane.f32.xlu0 %v842_v32 }
 0xf9c   : > { %v844_v34 = vpop.xlane.xlu0 %843 }
 0xf9d   : > { %vm845_vm0 = vcmp.eq.f32.partialorder %v842_v32, %v844_v34  ;;  %v850_v37 = vcvt.f32.s32 %v844_v34 }
 0xf9e   : > { %v846_v36 = vsel %vm845_vm0, %v841_v35, inf }
 0xf9f   : > { %847 = vmin.xlane.f32.xlu1 %v846_v36  ;;  %v851_v39 = vshll.u32 %v850_v37, 16 }
0x1012   : > { %v848_v38 = vpop.xlane.xlu1 %847 }
0x1013   : > { %v849_v40 = vcvt.f32.s32 %v848_v38 }
0x1015   : > { %v852_v41 = vadd.s32 %v851_v39, %v849_v40 }
0x1017   : > { %v853_v42 = vrot.slane %v852_v41, 4 }
0x1019   : > { %vm854_vm2 = vcmp.lt.s32.totalorder %v852_v41, %v853_v42 }
0x101a   : > { %v855_v43 = vsel %vm854_vm2, %v852_v41, %v853_v42 }
0x101b   : > { %v856_v44 = vrot.slane %v855_v43, 2 }
0x101d   : > { %vm857_vm3 = vcmp.lt.s32.totalorder %v855_v43, %v856_v44 }
0x101e   : > { %v858_v7 = vsel %vm857_vm3, %v855_v43, %v856_v44 }
0x101f   : > { %v859_v45 = vrot.slane %v858_v7, 1 }
0x1021   : > { %vm860_vm4 = vcmp.lt.s32.totalorder %v858_v7, %v859_v45 }
0x1022   : > { %v861_v46 = vsel %vm860_vm4, %v858_v7, %v859_v45 }
0x1023   : > { %2948 = vpush %v861_v46 }
0x1054   : > { %s2949_s28 = spop %2948 }
0x1055   : > { %v863_v47 = vstv %s2949_s28  ;;  %s865_s29 = sand.u32 127, %s2949_s28 }
0x1056   : > { %vm864_vm6 = vcmp.eq.s32.totalorder %v837_v29, %v863_v47  ;;  %s868_s30 = scalar_lea.vmem [#allocation2], %s865_s29 }
0x1057   : > { %v3502_v48 = vsel %vm864_vm6, %v833_v26, %v829_v24  ;;  %v869_v49 = vld [vmem:[%s868_s30] sm:$0x1]  ;;  %vm3511_vm7 = vmor %vm830_vm15, %vm864_vm6 }
0x1058   : > { %v3504_v5 = vmin.f32 %v833_v26, %v869_v49 }
0x105a   : > { %v871_v51 = vsel %vm3511_vm7, inf, %v3504_v5 }
0x105b   : > { %v873_v52 = vand.u32 4294967168, %v871_v51 }
0x105d   : > { %v874_v54 = vor.u32 %v873_v52, %v3236_v61 }
0x105f   : > { %v875_v55 = vsel %vm430_vm5, %v874_v54, 2147483647 }
0x1060   : > { %v877_v56 = vshra.s32 %v875_v55, 16  ;;  %v876_v58 = vand.u32 65535, %v875_v55 }
0x1062   : > { %v879_v57 = vcvt.s32.f32 %v877_v56  ;;  %v878_v62 = vcvt.s32.f32 %v876_v58 }
0x1064   : > { %880 = vmin.xlane.f32.xlu2 %v879_v57 }
0x10d7   : > { %v881_v59 = vpop.xlane.xlu2 %880 }
0x10d8   : > { %vm882_vm8 = vcmp.eq.f32.partialorder %v879_v57, %v881_v59  ;;  %v887_v0 = vcvt.f32.s32 %v881_v59 }
0x10d9   : > { %v883_v63 = vsel %vm882_vm8, %v878_v62, inf }
0x10da   : > { %884 = vmin.xlane.f32.xlu0 %v883_v63  ;;  %v888_v53 = vshll.u32 %v887_v0, 16 }
0x114d   : > { %v885_v1 = vpop.xlane.xlu0 %884 }
0x114e   : > { %v886_v2 = vcvt.f32.s32 %v885_v1 }
0x1150   : > { %v889_v3 = vadd.s32 %v888_v53, %v886_v2 }
0x1152   : > { %v890_v4 = vrot.slane %v889_v3, 4 }
0x1154   : > { %vm891_vm9 = vcmp.lt.s32.totalorder %v889_v3, %v890_v4 }
0x1155   : > { %v892_v6 = vsel %vm891_vm9, %v889_v3, %v890_v4 }
0x1156   : > { %v893_v10 = vrot.slane %v892_v6, 2 }
0x1158   : > { %vm894_vm10 = vcmp.lt.s32.totalorder %v892_v6, %v893_v10 }
0x1159   : > { %v895_v11 = vsel %vm894_vm10, %v892_v6, %v893_v10 }
0x115a   : > { %v896_v13 = vrot.slane %v895_v11, 1 }
0x115c   : > { %vm897_vm11 = vcmp.lt.s32.totalorder %v895_v11, %v896_v13 }
0x115d   : > { %v898_v14 = vsel %vm897_vm11, %v895_v11, %v896_v13 }
0x115e   : > { %2950 = vpush %v898_v14 }
0x118f   : > { %s2951_s3 = spop %2950 }
0x1190   : > { %v900_v8 = vstv %s2951_s3  ;;  %s902_s4 = sand.u32 127, %s2951_s3 }
0x1191   : > { %vm3520_vm12 = vcmp.eq.s32.totalorder %v874_v54, %v900_v8  ;;  %s905_s5 = scalar_lea.vmem [#allocation2], %s902_s4 }
0x1192   : > { %v903_v16 = vsel %vm3520_vm12, %v3504_v5, %v3502_v48  ;;  %v906_v17 = vld [vmem:[%s905_s5] sm:$0x1]  ;;  %vm904_vm13 = vmor %vm3511_vm7, %vm3520_vm12 }
0x1193   : > { %v907_v18 = vmin.f32 %v3504_v5, %v906_v17 }
0x1195   : > { %v908_v19 = vsel %vm904_vm13, inf, %v907_v18 }
0x1196   : > { %v910_v9 = vand.u32 4294967168, %v908_v19 }
0x1198   : > { %v911_v60 = vor.u32 %v910_v9, %v3236_v61 }
0x119a   : > { %v912_v20 = vsel %vm430_vm5, %v911_v60, 2147483647 }
0x119b   : > { %v914_v12 = vshra.s32 %v912_v20, 16  ;;  %v913_v22 = vand.u32 65535, %v912_v20 }
0x119d   : > { %v916_v21 = vcvt.s32.f32 %v914_v12  ;;  %v915_v24 = vcvt.s32.f32 %v913_v22 }
0x119f   : > { %917 = vmin.xlane.f32.xlu1 %v916_v21 }
0x1212   : > { %v918_v23 = vpop.xlane.xlu1 %917 }
0x1213   : > { %vm919_vm14 = vcmp.eq.f32.partialorder %v916_v21, %v918_v23  ;;  %v924_v26 = vcvt.f32.s32 %v918_v23 }
0x1214   : > { %v920_v25 = vsel %vm919_vm14, %v915_v24, inf }
0x1215   : > { %921 = vmin.xlane.f32.xlu2 %v920_v25  ;;  %v925_v28 = vshll.u32 %v924_v26, 16 }
0x1288   : > { %v922_v27 = vpop.xlane.xlu2 %921 }
0x1289   : > { %v923_v29 = vcvt.f32.s32 %v922_v27 }
0x128b   : > { %v926_v30 = vadd.s32 %v925_v28, %v923_v29 }
0x128d   : > { %v927_v31 = vrot.slane %v926_v30, 4 }
0x128f   : > { %vm928_vm15 = vcmp.lt.s32.totalorder %v926_v30, %v927_v31 }
0x1290   : > { %v929_v32 = vsel %vm928_vm15, %v926_v30, %v927_v31 }
0x1291   : > { %v930_v33 = vrot.slane %v929_v32, 2 }
0x1293   : > { %vm931_vm0 = vcmp.lt.s32.totalorder %v929_v32, %v930_v33 }
0x1294   : > { %v932_v34 = vsel %vm931_vm0, %v929_v32, %v930_v33 }
0x1295   : > { %v933_v35 = vrot.slane %v932_v34, 1 }
0x1297   : > { %vm934_vm2 = vcmp.lt.s32.totalorder %v932_v34, %v933_v35 }
0x1298   : > { %v935_v36 = vsel %vm934_vm2, %v932_v34, %v933_v35 }
0x1299   : > { %2952 = vpush %v935_v36 }
0x12ca   : > { %s2953_s6 = spop %2952 }
0x12cb   : > { %v937_v37 = vstv %s2953_s6  ;;  %s939_s7 = sand.u32 127, %s2953_s6 }
0x12cc   : > { %vm938_vm3 = vcmp.eq.s32.totalorder %v911_v60, %v937_v37  ;;  %s942_s8 = scalar_lea.vmem [#allocation2], %s939_s7 }
0x12cd   : > { %v3540_v38 = vsel %vm938_vm3, %v907_v18, %v903_v16  ;;  %v943_v39 = vld [vmem:[%s942_s8] sm:$0x1]  ;;  %vm3549_vm4 = vmor %vm904_vm13, %vm938_vm3 }
0x12ce   : > { %v3542_v40 = vmin.f32 %v907_v18, %v943_v39 }
0x12d0   : > { %v945_v42 = vsel %vm3549_vm4, inf, %v3542_v40 }
0x12d1   : > { %v947_v43 = vand.u32 4294967168, %v945_v42 }
0x12d3   : > { %v948_v44 = vor.u32 %v947_v43, %v3236_v61 }
0x12d5   : > { %v949_v7 = vsel %vm430_vm5, %v948_v44, 2147483647 }
0x12d6   : > { %v951_v45 = vshra.s32 %v949_v7, 16  ;;  %v950_v47 = vand.u32 65535, %v949_v7 }
0x12d8   : > { %v953_v46 = vcvt.s32.f32 %v951_v45  ;;  %v952_v49 = vcvt.s32.f32 %v950_v47 }
0x12da   : > { %954 = vmin.xlane.f32.xlu0 %v953_v46 }
0x134d   : > { %v955_v48 = vpop.xlane.xlu0 %954 }
0x134e   : > { %vm956_vm6 = vcmp.eq.f32.partialorder %v953_v46, %v955_v48  ;;  %v961_v50 = vcvt.f32.s32 %v955_v48 }
0x134f   : > { %v957_v5 = vsel %vm956_vm6, %v952_v49, inf }
0x1350   : > { %958 = vmin.xlane.f32.xlu1 %v957_v5  ;;  %v962_v52 = vshll.u32 %v961_v50, 16 }
0x13c3   : > { %v959_v51 = vpop.xlane.xlu1 %958 }
0x13c4   : > { %v960_v54 = vcvt.f32.s32 %v959_v51 }
0x13c6   : > { %v963_v55 = vadd.s32 %v962_v52, %v960_v54 }
0x13c8   : > { %v964_v56 = vrot.slane %v963_v55, 4 }
0x13ca   : > { %vm965_vm7 = vcmp.lt.s32.totalorder %v963_v55, %v964_v56 }
0x13cb   : > { %v966_v57 = vsel %vm965_vm7, %v963_v55, %v964_v56 }
0x13cc   : > { %v967_v58 = vrot.slane %v966_v57, 2 }
0x13ce   : > { %vm968_vm8 = vcmp.lt.s32.totalorder %v966_v57, %v967_v58 }
0x13cf   : > { %v969_v59 = vsel %vm968_vm8, %v966_v57, %v967_v58 }
0x13d0   : > { %v970_v62 = vrot.slane %v969_v59, 1 }
0x13d2   : > { %vm971_vm9 = vcmp.lt.s32.totalorder %v969_v59, %v970_v62 }
0x13d3   : > { %v972_v63 = vsel %vm971_vm9, %v969_v59, %v970_v62 }
0x13d4   : > { %2954 = vpush %v972_v63 }
0x1405   : > { %s2955_s11 = spop %2954 }
0x1406   : > { %v974_v0 = vstv %s2955_s11  ;;  %s976_s12 = sand.u32 127, %s2955_s11 }
0x1407   : > { %vm3558_vm10 = vcmp.eq.s32.totalorder %v948_v44, %v974_v0  ;;  %s979_s13 = scalar_lea.vmem [#allocation2], %s976_s12 }
0x1408   : > { %v977_v53 = vsel %vm3558_vm10, %v3542_v40, %v3540_v38  ;;  %v980_v2 = vld [vmem:[%s979_s13] sm:$0x1]  ;;  %vm978_vm11 = vmor %vm3549_vm4, %vm3558_vm10 }
0x1409   : > { %v981_v3 = vmin.f32 %v3542_v40, %v980_v2 }
0x140b   : > { %v982_v4 = vsel %vm978_vm11, inf, %v981_v3 }
0x140c   : > { %v984_v6 = vand.u32 4294967168, %v982_v4 }
0x140e   : > { %v985_v10 = vor.u32 %v984_v6, %v3236_v61 }
0x1410   : > { %v986_v11 = vsel %vm430_vm5, %v985_v10, 2147483647 }
0x1411   : > { %v988_v13 = vshra.s32 %v986_v11, 16  ;;  %v987_v8 = vand.u32 65535, %v986_v11 }
0x1413   : > { %v990_v14 = vcvt.s32.f32 %v988_v13  ;;  %v989_v16 = vcvt.s32.f32 %v987_v8 }
0x1415   : > { %991 = vmin.xlane.f32.xlu2 %v990_v14 }
0x1488   : > { %v992_v15 = vpop.xlane.xlu2 %991 }
0x1489   : > { %vm993_vm12 = vcmp.eq.f32.partialorder %v990_v14, %v992_v15  ;;  %v998_v18 = vcvt.f32.s32 %v992_v15 }
0x148a   : > { %v994_v17 = vsel %vm993_vm12, %v989_v16, inf }
0x148b   : > { %995 = vmin.xlane.f32.xlu0 %v994_v17  ;;  %v999_v9 = vshll.u32 %v998_v18, 16 }
0x14fe   : > { %v996_v19 = vpop.xlane.xlu0 %995 }
0x14ff   : > { %v997_v60 = vcvt.f32.s32 %v996_v19 }
0x1501   : > { %v1000_v20 = vadd.s32 %v999_v9, %v997_v60 }
0x1503   : > { %v1001_v12 = vrot.slane %v1000_v20, 4 }
0x1505   : > { %vm1002_vm13 = vcmp.lt.s32.totalorder %v1000_v20, %v1001_v12 }
0x1506   : > { %v1003_v21 = vsel %vm1002_vm13, %v1000_v20, %v1001_v12 }
0x1507   : > { %v1004_v22 = vrot.slane %v1003_v21, 2 }
0x1509   : > { %vm1005_vm14 = vcmp.lt.s32.totalorder %v1003_v21, %v1004_v22 }
0x150a   : > { %v1006_v23 = vsel %vm1005_vm14, %v1003_v21, %v1004_v22 }
0x150b   : > { %v1007_v24 = vrot.slane %v1006_v23, 1 }
0x150d   : > { %vm1008_vm15 = vcmp.lt.s32.totalorder %v1006_v23, %v1007_v24 }
0x150e   : > { %v1009_v25 = vsel %vm1008_vm15, %v1006_v23, %v1007_v24 }
0x150f   : > { %2956 = vpush %v1009_v25 }
0x1540   : > { %s2957_s14 = spop %2956 }
0x1541   : > { %v1011_v26 = vstv %s2957_s14  ;;  %s1013_s15 = sand.u32 127, %s2957_s14 }
0x1542   : > { %vm1012_vm0 = vcmp.eq.s32.totalorder %v985_v10, %v1011_v26  ;;  %s1016_s16 = scalar_lea.vmem [#allocation2], %s1013_s15 }
0x1543   : > { %v3578_v27 = vsel %vm1012_vm0, %v981_v3, %v977_v53  ;;  %v1017_v28 = vld [vmem:[%s1016_s16] sm:$0x1]  ;;  %vm3587_vm2 = vmor %vm978_vm11, %vm1012_vm0 }
0x1544   : > { %v3580_v29 = vmin.f32 %v981_v3, %v1017_v28 }
0x1546   : > { %v1019_v31 = vsel %vm3587_vm2, inf, %v3580_v29 }
0x1547   : > { %v1021_v32 = vand.u32 4294967168, %v1019_v31 }
0x1549   : > { %v1022_v33 = vor.u32 %v1021_v32, %v3236_v61 }
0x154b   : > { %v1023_v34 = vsel %vm430_vm5, %v1022_v33, 2147483647 }
0x154c   : > { %v1025_v35 = vshra.s32 %v1023_v34, 16  ;;  %v1024_v37 = vand.u32 65535, %v1023_v34 }
0x154e   : > { %v1027_v36 = vcvt.s32.f32 %v1025_v35  ;;  %v1026_v39 = vcvt.s32.f32 %v1024_v37 }
0x1550   : > { %1028 = vmin.xlane.f32.xlu1 %v1027_v36 }
0x15c3   : > { %v1029_v38 = vpop.xlane.xlu1 %1028 }
0x15c4   : > { %vm1030_vm3 = vcmp.eq.f32.partialorder %v1027_v36, %v1029_v38  ;;  %v1035_v41 = vcvt.f32.s32 %v1029_v38 }
0x15c5   : > { %v1031_v40 = vsel %vm1030_vm3, %v1026_v39, inf }
0x15c6   : > { %1032 = vmin.xlane.f32.xlu2 %v1031_v40  ;;  %v1036_v43 = vshll.u32 %v1035_v41, 16 }
0x1639   : > { %v1033_v42 = vpop.xlane.xlu2 %1032 }
0x163a   : > { %v1034_v44 = vcvt.f32.s32 %v1033_v42 }
0x163c   : > { %v1037_v7 = vadd.s32 %v1036_v43, %v1034_v44 }
0x163e   : > { %v1038_v45 = vrot.slane %v1037_v7, 4 }
0x1640   : > { %vm1039_vm4 = vcmp.lt.s32.totalorder %v1037_v7, %v1038_v45 }
0x1641   : > { %v1040_v46 = vsel %vm1039_vm4, %v1037_v7, %v1038_v45 }
0x1642   : > { %v1041_v47 = vrot.slane %v1040_v46, 2 }
0x1644   : > { %vm1042_vm6 = vcmp.lt.s32.totalorder %v1040_v46, %v1041_v47 }
0x1645   : > { %v1043_v48 = vsel %vm1042_vm6, %v1040_v46, %v1041_v47 }
0x1646   : > { %v1044_v49 = vrot.slane %v1043_v48, 1 }
0x1648   : > { %vm1045_vm7 = vcmp.lt.s32.totalorder %v1043_v48, %v1044_v49 }
0x1649   : > { %v1046_v5 = vsel %vm1045_vm7, %v1043_v48, %v1044_v49 }
0x164a   : > { %2958 = vpush %v1046_v5 }
0x167b   : > { %s2959_s17 = spop %2958 }
0x167c   : > { %v1048_v50 = vstv %s2959_s17  ;;  %s1050_s18 = sand.u32 127, %s2959_s17 }
0x167d   : > { %vm3596_vm8 = vcmp.eq.s32.totalorder %v1022_v33, %v1048_v50  ;;  %s1053_s19 = scalar_lea.vmem [#allocation2], %s1050_s18 }
0x167e   : > { %v1051_v52 = vsel %vm3596_vm8, %v3580_v29, %v3578_v27  ;;  %v1054_v54 = vld [vmem:[%s1053_s19] sm:$0x1]  ;;  %vm1052_vm9 = vmor %vm3587_vm2, %vm3596_vm8 }
0x167f   : > { %v1055_v55 = vmin.f32 %v3580_v29, %v1054_v54 }
0x1681   : > { %v1056_v56 = vsel %vm1052_vm9, inf, %v1055_v55 }
0x1682   : > { %v1058_v57 = vand.u32 4294967168, %v1056_v56 }
0x1684   : > { %v1059_v58 = vor.u32 %v1058_v57, %v3236_v61 }
0x1686   : > { %v1060_v59 = vsel %vm430_vm5, %v1059_v58, 2147483647 }
0x1687   : > { %v1062_v62 = vshra.s32 %v1060_v59, 16  ;;  %v1061_v0 = vand.u32 65535, %v1060_v59 }
0x1689   : > { %v1064_v63 = vcvt.s32.f32 %v1062_v62  ;;  %v1063_v53 = vcvt.s32.f32 %v1061_v0 }
0x168b   : > { %1065 = vmin.xlane.f32.xlu0 %v1064_v63 }
0x16fe   : > { %v1066_v1 = vpop.xlane.xlu0 %1065 }
0x16ff   : > { %vm1067_vm10 = vcmp.eq.f32.partialorder %v1064_v63, %v1066_v1  ;;  %v1072_v3 = vcvt.f32.s32 %v1066_v1 }
0x1700   : > { %v1068_v2 = vsel %vm1067_vm10, %v1063_v53, inf }
0x1701   : > { %1069 = vmin.xlane.f32.xlu1 %v1068_v2  ;;  %v1073_v6 = vshll.u32 %v1072_v3, 16 }
0x1774   : > { %v1070_v4 = vpop.xlane.xlu1 %1069 }
0x1775   : > { %v1071_v10 = vcvt.f32.s32 %v1070_v4 }
0x1777   : > { %v1074_v11 = vadd.s32 %v1073_v6, %v1071_v10 }
0x1779   : > { %v1075_v13 = vrot.slane %v1074_v11, 4 }
0x177b   : > { %vm1076_vm11 = vcmp.lt.s32.totalorder %v1074_v11, %v1075_v13 }
0x177c   : > { %v1077_v14 = vsel %vm1076_vm11, %v1074_v11, %v1075_v13 }
0x177d   : > { %v1078_v8 = vrot.slane %v1077_v14, 2 }
0x177f   : > { %vm1079_vm12 = vcmp.lt.s32.totalorder %v1077_v14, %v1078_v8 }
0x1780   : > { %v1080_v15 = vsel %vm1079_vm12, %v1077_v14, %v1078_v8 }
0x1781   : > { %v1081_v16 = vrot.slane %v1080_v15, 1 }
0x1783   : > { %vm1082_vm13 = vcmp.lt.s32.totalorder %v1080_v15, %v1081_v16 }
0x1784   : > { %v1083_v17 = vsel %vm1082_vm13, %v1080_v15, %v1081_v16 }
0x1785   : > { %2960 = vpush %v1083_v17 }
0x17b6   : > { %s2961_s20 = spop %2960 }
0x17b7   : > { %v1085_v18 = vstv %s2961_s20  ;;  %s1087_s21 = sand.u32 127, %s2961_s20 }
0x17b8   : > { %vm1086_vm14 = vcmp.eq.s32.totalorder %v1059_v58, %v1085_v18  ;;  %s1090_s22 = scalar_lea.vmem [#allocation2], %s1087_s21 }
0x17b9   : > { %v3616_v19 = vsel %vm1086_vm14, %v1055_v55, %v1051_v52  ;;  %v1091_v9 = vld [vmem:[%s1090_s22] sm:$0x1]  ;;  %vm3625_vm15 = vmor %vm1052_vm9, %vm1086_vm14 }
0x17ba   : > { %v3618_v60 = vmin.f32 %v1055_v55, %v1091_v9 }
0x17bc   : > { %v1093_v12 = vsel %vm3625_vm15, inf, %v3618_v60 }
0x17bd   : > { %v1095_v21 = vand.u32 4294967168, %v1093_v12 }
0x17bf   : > { %v1096_v22 = vor.u32 %v1095_v21, %v3236_v61 }
0x17c1   : > { %v1097_v23 = vsel %vm430_vm5, %v1096_v22, 2147483647 }
0x17c2   : > { %v1099_v24 = vshra.s32 %v1097_v23, 16  ;;  %v1098_v26 = vand.u32 65535, %v1097_v23 }
0x17c4   : > { %v1101_v25 = vcvt.s32.f32 %v1099_v24  ;;  %v1100_v28 = vcvt.s32.f32 %v1098_v26 }
0x17c6   : > { %1102 = vmin.xlane.f32.xlu2 %v1101_v25 }
0x1839   : > { %v1103_v27 = vpop.xlane.xlu2 %1102 }
0x183a   : > { %vm1104_vm0 = vcmp.eq.f32.partialorder %v1101_v25, %v1103_v27  ;;  %v1109_v30 = vcvt.f32.s32 %v1103_v27 }
0x183b   : > { %v1105_v29 = vsel %vm1104_vm0, %v1100_v28, inf }
0x183c   : > { %1106 = vmin.xlane.f32.xlu0 %v1105_v29  ;;  %v1110_v32 = vshll.u32 %v1109_v30, 16 }
0x18af   : > { %v1107_v31 = vpop.xlane.xlu0 %1106 }
0x18b0   : > { %v1108_v33 = vcvt.f32.s32 %v1107_v31 }
0x18b2   : > { %v1111_v34 = vadd.s32 %v1110_v32, %v1108_v33 }
0x18b4   : > { %v1112_v35 = vrot.slane %v1111_v34, 4 }
0x18b6   : > { %vm1113_vm2 = vcmp.lt.s32.totalorder %v1111_v34, %v1112_v35 }
0x18b7   : > { %v1114_v36 = vsel %vm1113_vm2, %v1111_v34, %v1112_v35 }
0x18b8   : > { %v1115_v37 = vrot.slane %v1114_v36, 2 }
0x18ba   : > { %vm1116_vm3 = vcmp.lt.s32.totalorder %v1114_v36, %v1115_v37 }
0x18bb   : > { %v1117_v38 = vsel %vm1116_vm3, %v1114_v36, %v1115_v37 }
0x18bc   : > { %v1118_v39 = vrot.slane %v1117_v38, 1 }
0x18be   : > { %vm1119_vm4 = vcmp.lt.s32.totalorder %v1117_v38, %v1118_v39 }
0x18bf   : > { %v1120_v40 = vsel %vm1119_vm4, %v1117_v38, %v1118_v39 }
0x18c0   : > { %2962 = vpush %v1120_v40 }
0x18f1   : > { %s2963_s23 = spop %2962 }
0x18f2   : > { %v1122_v41 = vstv %s2963_s23  ;;  %s1124_s24 = sand.u32 127, %s2963_s23 }
0x18f3   : > { %vm3634_vm6 = vcmp.eq.s32.totalorder %v1096_v22, %v1122_v41  ;;  %s1127_s25 = scalar_lea.vmem [#allocation2], %s1124_s24 }
0x18f4   : > { %v1125_v43 = vsel %vm3634_vm6, %v3618_v60, %v3616_v19  ;;  %v1128_v44 = vld [vmem:[%s1127_s25] sm:$0x1]  ;;  %vm1126_vm7 = vmor %vm3625_vm15, %vm3634_vm6 }
0x18f5   : > { %v1129_v7 = vmin.f32 %v3618_v60, %v1128_v44 }
0x18f7   : > { %v1130_v45 = vsel %vm1126_vm7, inf, %v1129_v7 }
0x18f8   : > { %v1132_v46 = vand.u32 4294967168, %v1130_v45 }
0x18fa   : > { %v1133_v47 = vor.u32 %v1132_v46, %v3236_v61 }
0x18fc   : > { %v1134_v48 = vsel %vm430_vm5, %v1133_v47, 2147483647 }
0x18fd   : > { %v1136_v49 = vshra.s32 %v1134_v48, 16  ;;  %v1135_v50 = vand.u32 65535, %v1134_v48 }
0x18ff   : > { %v1138_v5 = vcvt.s32.f32 %v1136_v49  ;;  %v1137_v52 = vcvt.s32.f32 %v1135_v50 }
0x1901   : > { %1139 = vmin.xlane.f32.xlu1 %v1138_v5 }
0x1974   : > { %v1140_v51 = vpop.xlane.xlu1 %1139 }
0x1975   : > { %vm1141_vm8 = vcmp.eq.f32.partialorder %v1138_v5, %v1140_v51  ;;  %v1146_v55 = vcvt.f32.s32 %v1140_v51 }
0x1976   : > { %v1142_v54 = vsel %vm1141_vm8, %v1137_v52, inf }
0x1977   : > { %1143 = vmin.xlane.f32.xlu2 %v1142_v54  ;;  %v1147_v57 = vshll.u32 %v1146_v55, 16 }
0x19ea   : > { %v1144_v56 = vpop.xlane.xlu2 %1143 }
0x19eb   : > { %v1145_v58 = vcvt.f32.s32 %v1144_v56 }
0x19ed   : > { %v1148_v59 = vadd.s32 %v1147_v57, %v1145_v58 }
0x19ef   : > { %v1149_v62 = vrot.slane %v1148_v59, 4 }
0x19f1   : > { %vm1150_vm9 = vcmp.lt.s32.totalorder %v1148_v59, %v1149_v62 }
0x19f2   : > { %v1151_v63 = vsel %vm1150_vm9, %v1148_v59, %v1149_v62 }
0x19f3   : > { %v1152_v0 = vrot.slane %v1151_v63, 2 }
0x19f5   : > { %vm1153_vm10 = vcmp.lt.s32.totalorder %v1151_v63, %v1152_v0 }
0x19f6   : > { %v1154_v1 = vsel %vm1153_vm10, %v1151_v63, %v1152_v0 }
0x19f7   : > { %v1155_v53 = vrot.slane %v1154_v1, 1 }
0x19f9   : > { %vm1156_vm11 = vcmp.lt.s32.totalorder %v1154_v1, %v1155_v53 }
0x19fa   : > { %v1157_v2 = vsel %vm1156_vm11, %v1154_v1, %v1155_v53 }
0x19fb   : > { %2964 = vpush %v1157_v2 }
0x1a2c   : > { %s2965_s26 = spop %2964 }
0x1a2d   : > { %v1159_v3 = vstv %s2965_s26  ;;  %s1161_s27 = sand.u32 127, %s2965_s26 }
0x1a2e   : > { %vm1160_vm12 = vcmp.eq.s32.totalorder %v1133_v47, %v1159_v3  ;;  %s1164_s28 = scalar_lea.vmem [#allocation2], %s1161_s27 }
0x1a2f   : > { %v3654_v4 = vsel %vm1160_vm12, %v1129_v7, %v1125_v43  ;;  %v1165_v6 = vld [vmem:[%s1164_s28] sm:$0x1]  ;;  %vm3663_vm13 = vmor %vm1126_vm7, %vm1160_vm12 }
0x1a30   : > { %v3656_v10 = vmin.f32 %v1129_v7, %v1165_v6 }
0x1a32   : > { %v1167_v13 = vsel %vm3663_vm13, inf, %v3656_v10 }
0x1a33   : > { %v1169_v14 = vand.u32 4294967168, %v1167_v13 }
0x1a35   : > { %v1170_v8 = vor.u32 %v1169_v14, %v3236_v61 }
0x1a37   : > { %v1171_v15 = vsel %vm430_vm5, %v1170_v8, 2147483647 }
0x1a38   : > { %v1173_v16 = vshra.s32 %v1171_v15, 16  ;;  %v1172_v18 = vand.u32 65535, %v1171_v15 }
0x1a3a   : > { %v1175_v17 = vcvt.s32.f32 %v1173_v16  ;;  %v1174_v9 = vcvt.s32.f32 %v1172_v18 }
0x1a3c   : > { %1176 = vmin.xlane.f32.xlu0 %v1175_v17 }
0x1aaf   : > { %v1177_v19 = vpop.xlane.xlu0 %1176 }
0x1ab0   : > { %vm1178_vm14 = vcmp.eq.f32.partialorder %v1175_v17, %v1177_v19  ;;  %v1183_v20 = vcvt.f32.s32 %v1177_v19 }
0x1ab1   : > { %v1179_v60 = vsel %vm1178_vm14, %v1174_v9, inf }
0x1ab2   : > { %1180 = vmin.xlane.f32.xlu1 %v1179_v60  ;;  %v1184_v21 = vshll.u32 %v1183_v20, 16 }
0x1b25   : > { %v1181_v12 = vpop.xlane.xlu1 %1180 }
0x1b26   : > { %v1182_v22 = vcvt.f32.s32 %v1181_v12 }
0x1b28   : > { %v1185_v23 = vadd.s32 %v1184_v21, %v1182_v22 }
0x1b2a   : > { %v1186_v24 = vrot.slane %v1185_v23, 4 }
0x1b2c   : > { %vm1187_vm15 = vcmp.lt.s32.totalorder %v1185_v23, %v1186_v24 }
0x1b2d   : > { %v1188_v25 = vsel %vm1187_vm15, %v1185_v23, %v1186_v24 }
0x1b2e   : > { %v1189_v26 = vrot.slane %v1188_v25, 2 }
0x1b30   : > { %vm1190_vm0 = vcmp.lt.s32.totalorder %v1188_v25, %v1189_v26 }
0x1b31   : > { %v1191_v27 = vsel %vm1190_vm0, %v1188_v25, %v1189_v26 }
0x1b32   : > { %v1192_v28 = vrot.slane %v1191_v27, 1 }
0x1b34   : > { %vm1193_vm2 = vcmp.lt.s32.totalorder %v1191_v27, %v1192_v28 }
0x1b35   : > { %v1194_v29 = vsel %vm1193_vm2, %v1191_v27, %v1192_v28 }
0x1b36   : > { %2966 = vpush %v1194_v29 }
0x1b67   : > { %s2967_s29 = spop %2966 }
0x1b68   : > { %v1196_v30 = vstv %s2967_s29  ;;  %s1198_s30 = sand.u32 127, %s2967_s29 }
0x1b69   : > { %vm3672_vm3 = vcmp.eq.s32.totalorder %v1170_v8, %v1196_v30  ;;  %s1201_s3 = scalar_lea.vmem [#allocation2], %s1198_s30 }
0x1b6a   : > { %v1199_v32 = vsel %vm3672_vm3, %v3656_v10, %v3654_v4  ;;  %v1202_v33 = vld [vmem:[%s1201_s3] sm:$0x1]  ;;  %vm1200_vm4 = vmor %vm3663_vm13, %vm3672_vm3 }
0x1b6b   : > { %v1203_v34 = vmin.f32 %v3656_v10, %v1202_v33 }
0x1b6d   : > { %v1204_v35 = vsel %vm1200_vm4, inf, %v1203_v34 }
0x1b6e   : > { %v1206_v36 = vand.u32 4294967168, %v1204_v35 }
0x1b70   : > { %v1207_v37 = vor.u32 %v1206_v36, %v3236_v61 }
0x1b72   : > { %v1208_v38 = vsel %vm430_vm5, %v1207_v37, 2147483647 }
0x1b73   : > { %v1210_v39 = vshra.s32 %v1208_v38, 16  ;;  %v1209_v41 = vand.u32 65535, %v1208_v38 }
0x1b75   : > { %v1212_v40 = vcvt.s32.f32 %v1210_v39  ;;  %v1211_v43 = vcvt.s32.f32 %v1209_v41 }
0x1b77   : > { %1213 = vmin.xlane.f32.xlu2 %v1212_v40 }
0x1bea   : > { %v1214_v42 = vpop.xlane.xlu2 %1213 }
0x1beb   : > { %vm1215_vm6 = vcmp.eq.f32.partialorder %v1212_v40, %v1214_v42  ;;  %v1220_v7 = vcvt.f32.s32 %v1214_v42 }
0x1bec   : > { %v1216_v44 = vsel %vm1215_vm6, %v1211_v43, inf }
0x1bed   : > { %1217 = vmin.xlane.f32.xlu0 %v1216_v44  ;;  %v1221_v46 = vshll.u32 %v1220_v7, 16 }
0x1c60   : > { %v1218_v45 = vpop.xlane.xlu0 %1217 }
0x1c61   : > { %v1219_v47 = vcvt.f32.s32 %v1218_v45 }
0x1c63   : > { %v1222_v48 = vadd.s32 %v1221_v46, %v1219_v47 }
0x1c65   : > { %v1223_v49 = vrot.slane %v1222_v48, 4 }
0x1c67   : > { %vm1224_vm7 = vcmp.lt.s32.totalorder %v1222_v48, %v1223_v49 }
0x1c68   : > { %v1225_v5 = vsel %vm1224_vm7, %v1222_v48, %v1223_v49 }
0x1c69   : > { %v1226_v50 = vrot.slane %v1225_v5, 2 }
0x1c6b   : > { %vm1227_vm8 = vcmp.lt.s32.totalorder %v1225_v5, %v1226_v50 }
0x1c6c   : > { %v1228_v51 = vsel %vm1227_vm8, %v1225_v5, %v1226_v50 }
0x1c6d   : > { %v1229_v52 = vrot.slane %v1228_v51, 1 }
0x1c6f   : > { %vm1230_vm9 = vcmp.lt.s32.totalorder %v1228_v51, %v1229_v52 }
0x1c70   : > { %v1231_v54 = vsel %vm1230_vm9, %v1228_v51, %v1229_v52 }
0x1c71   : > { %2968 = vpush %v1231_v54 }
0x1ca2   : > { %s2969_s4 = spop %2968 }
0x1ca3   : > { %v1233_v55 = vstv %s2969_s4  ;;  %s1235_s5 = sand.u32 127, %s2969_s4 }
0x1ca4   : > { %vm1234_vm10 = vcmp.eq.s32.totalorder %v1207_v37, %v1233_v55  ;;  %s1238_s6 = scalar_lea.vmem [#allocation2], %s1235_s5 }
0x1ca5   : > { %v3692_v56 = vsel %vm1234_vm10, %v1203_v34, %v1199_v32  ;;  %v1239_v57 = vld [vmem:[%s1238_s6] sm:$0x1]  ;;  %vm3701_vm11 = vmor %vm1200_vm4, %vm1234_vm10 }
0x1ca6   : > { %v3694_v58 = vmin.f32 %v1203_v34, %v1239_v57 }
0x1ca8   : > { %v1241_v62 = vsel %vm3701_vm11, inf, %v3694_v58 }
0x1ca9   : > { %v1243_v63 = vand.u32 4294967168, %v1241_v62 }
0x1cab   : > { %v1244_v0 = vor.u32 %v1243_v63, %v3236_v61 }
0x1cad   : > { %v1245_v1 = vsel %vm430_vm5, %v1244_v0, 2147483647 }
0x1cae   : > { %v1247_v53 = vshra.s32 %v1245_v1, 16  ;;  %v1246_v3 = vand.u32 65535, %v1245_v1 }
0x1cb0   : > { %v1249_v2 = vcvt.s32.f32 %v1247_v53  ;;  %v1248_v6 = vcvt.s32.f32 %v1246_v3 }
0x1cb2   : > { %1250 = vmin.xlane.f32.xlu1 %v1249_v2 }
0x1d25   : > { %v1251_v4 = vpop.xlane.xlu1 %1250 }
0x1d26   : > { %vm1252_vm12 = vcmp.eq.f32.partialorder %v1249_v2, %v1251_v4  ;;  %v1257_v11 = vcvt.f32.s32 %v1251_v4 }
0x1d27   : > { %v1253_v10 = vsel %vm1252_vm12, %v1248_v6, inf }
0x1d28   : > { %1254 = vmin.xlane.f32.xlu2 %v1253_v10  ;;  %v1258_v14 = vshll.u32 %v1257_v11, 16 }
0x1d9b   : > { %v1255_v13 = vpop.xlane.xlu2 %1254 }
0x1d9c   : > { %v1256_v8 = vcvt.f32.s32 %v1255_v13 }
0x1d9e   : > { %v1259_v15 = vadd.s32 %v1258_v14, %v1256_v8 }
0x1da0   : > { %v1260_v16 = vrot.slane %v1259_v15, 4 }
0x1da2   : > { %vm1261_vm13 = vcmp.lt.s32.totalorder %v1259_v15, %v1260_v16 }
0x1da3   : > { %v1262_v17 = vsel %vm1261_vm13, %v1259_v15, %v1260_v16 }
0x1da4   : > { %v1263_v18 = vrot.slane %v1262_v17, 2 }
0x1da6   : > { %vm1264_vm14 = vcmp.lt.s32.totalorder %v1262_v17, %v1263_v18 }
0x1da7   : > { %v1265_v19 = vsel %vm1264_vm14, %v1262_v17, %v1263_v18 }
0x1da8   : > { %v1266_v9 = vrot.slane %v1265_v19, 1 }
0x1daa   : > { %vm1267_vm15 = vcmp.lt.s32.totalorder %v1265_v19, %v1266_v9 }
0x1dab   : > { %v1268_v60 = vsel %vm1267_vm15, %v1265_v19, %v1266_v9 }
0x1dac   : > { %2970 = vpush %v1268_v60 }
0x1ddd   : > { %s2971_s7 = spop %2970 }
0x1dde   : > { %v1270_v20 = vstv %s2971_s7  ;;  %s1272_s8 = sand.u32 127, %s2971_s7 }
0x1ddf   : > { %vm3710_vm0 = vcmp.eq.s32.totalorder %v1244_v0, %v1270_v20  ;;  %s1275_s11 = scalar_lea.vmem [#allocation2], %s1272_s8 }
0x1de0   : > { %v1273_v21 = vsel %vm3710_vm0, %v3694_v58, %v3692_v56  ;;  %v1276_v22 = vld [vmem:[%s1275_s11] sm:$0x1]  ;;  %vm1274_vm2 = vmor %vm3701_vm11, %vm3710_vm0 }
0x1de1   : > { %v1277_v23 = vmin.f32 %v3694_v58, %v1276_v22 }
0x1de3   : > { %v1278_v24 = vsel %vm1274_vm2, inf, %v1277_v23 }
0x1de4   : > { %v1280_v25 = vand.u32 4294967168, %v1278_v24 }
0x1de6   : > { %v1281_v26 = vor.u32 %v1280_v25, %v3236_v61 }
0x1de8   : > { %v1282_v27 = vsel %vm430_vm5, %v1281_v26, 2147483647 }
0x1de9   : > { %v1284_v28 = vshra.s32 %v1282_v27, 16  ;;  %v1283_v30 = vand.u32 65535, %v1282_v27 }
0x1deb   : > { %v1286_v29 = vcvt.s32.f32 %v1284_v28  ;;  %v1285_v32 = vcvt.s32.f32 %v1283_v30 }
0x1ded   : > { %1287 = vmin.xlane.f32.xlu0 %v1286_v29 }
0x1e60   : > { %v1288_v31 = vpop.xlane.xlu0 %1287 }
0x1e61   : > { %vm1289_vm3 = vcmp.eq.f32.partialorder %v1286_v29, %v1288_v31  ;;  %v1294_v34 = vcvt.f32.s32 %v1288_v31 }
0x1e62   : > { %v1290_v33 = vsel %vm1289_vm3, %v1285_v32, inf }
0x1e63   : > { %1291 = vmin.xlane.f32.xlu1 %v1290_v33  ;;  %v1295_v36 = vshll.u32 %v1294_v34, 16 }
0x1ed6   : > { %v1292_v35 = vpop.xlane.xlu1 %1291 }
0x1ed7   : > { %v1293_v37 = vcvt.f32.s32 %v1292_v35 }
0x1ed9   : > { %v1296_v38 = vadd.s32 %v1295_v36, %v1293_v37 }
0x1edb   : > { %v1297_v39 = vrot.slane %v1296_v38, 4 }
0x1edd   : > { %vm1298_vm4 = vcmp.lt.s32.totalorder %v1296_v38, %v1297_v39 }
0x1ede   : > { %v1299_v40 = vsel %vm1298_vm4, %v1296_v38, %v1297_v39 }
0x1edf   : > { %v1300_v41 = vrot.slane %v1299_v40, 2 }
0x1ee1   : > { %vm1301_vm6 = vcmp.lt.s32.totalorder %v1299_v40, %v1300_v41 }
0x1ee2   : > { %v1302_v42 = vsel %vm1301_vm6, %v1299_v40, %v1300_v41 }
0x1ee3   : > { %v1303_v43 = vrot.slane %v1302_v42, 1 }
0x1ee5   : > { %vm1304_vm7 = vcmp.lt.s32.totalorder %v1302_v42, %v1303_v43 }
0x1ee6   : > { %v1305_v44 = vsel %vm1304_vm7, %v1302_v42, %v1303_v43 }
0x1ee7   : > { %2972 = vpush %v1305_v44 }
0x1f18   : > { %s2973_s12 = spop %2972 }
0x1f19   : > { %v1307_v7 = vstv %s2973_s12  ;;  %s1309_s13 = sand.u32 127, %s2973_s12 }
0x1f1a   : > { %vm1308_vm8 = vcmp.eq.s32.totalorder %v1281_v26, %v1307_v7  ;;  %s1312_s14 = scalar_lea.vmem [#allocation2], %s1309_s13 }
0x1f1b   : > { %v3730_v45 = vsel %vm1308_vm8, %v1277_v23, %v1273_v21  ;;  %v1313_v46 = vld [vmem:[%s1312_s14] sm:$0x1]  ;;  %vm3739_vm9 = vmor %vm1274_vm2, %vm1308_vm8 }
0x1f1c   : > { %v3732_v47 = vmin.f32 %v1277_v23, %v1313_v46 }
0x1f1e   : > { %v1315_v49 = vsel %vm3739_vm9, inf, %v3732_v47 }
0x1f1f   : > { %v1317_v5 = vand.u32 4294967168, %v1315_v49 }
0x1f21   : > { %v1318_v50 = vor.u32 %v1317_v5, %v3236_v61 }
0x1f23   : > { %v1319_v51 = vsel %vm430_vm5, %v1318_v50, 2147483647 }
0x1f24   : > { %v1321_v52 = vshra.s32 %v1319_v51, 16  ;;  %v1320_v55 = vand.u32 65535, %v1319_v51 }
0x1f26   : > { %v1323_v54 = vcvt.s32.f32 %v1321_v52  ;;  %v1322_v57 = vcvt.s32.f32 %v1320_v55 }
0x1f28   : > { %1324 = vmin.xlane.f32.xlu2 %v1323_v54 }
0x1f9b   : > { %v1325_v56 = vpop.xlane.xlu2 %1324 }
0x1f9c   : > { %vm1326_vm10 = vcmp.eq.f32.partialorder %v1323_v54, %v1325_v56  ;;  %v1331_v59 = vcvt.f32.s32 %v1325_v56 }
0x1f9d   : > { %v1327_v58 = vsel %vm1326_vm10, %v1322_v57, inf }
0x1f9e   : > { %1328 = vmin.xlane.f32.xlu0 %v1327_v58  ;;  %v1332_v63 = vshll.u32 %v1331_v59, 16 }
0x2011   : > { %v1329_v62 = vpop.xlane.xlu0 %1328 }
0x2012   : > { %v1330_v0 = vcvt.f32.s32 %v1329_v62 }
0x2014   : > { %v1333_v1 = vadd.s32 %v1332_v63, %v1330_v0 }
0x2016   : > { %v1334_v53 = vrot.slane %v1333_v1, 4 }
0x2018   : > { %vm1335_vm11 = vcmp.lt.s32.totalorder %v1333_v1, %v1334_v53 }
0x2019   : > { %v1336_v2 = vsel %vm1335_vm11, %v1333_v1, %v1334_v53 }
0x201a   : > { %v1337_v3 = vrot.slane %v1336_v2, 2 }
0x201c   : > { %vm1338_vm12 = vcmp.lt.s32.totalorder %v1336_v2, %v1337_v3 }
0x201d   : > { %v1339_v4 = vsel %vm1338_vm12, %v1336_v2, %v1337_v3 }
0x201e   : > { %v1340_v6 = vrot.slane %v1339_v4, 1 }
0x2020   : > { %vm1341_vm13 = vcmp.lt.s32.totalorder %v1339_v4, %v1340_v6 }
0x2021   : > { %v1342_v10 = vsel %vm1341_vm13, %v1339_v4, %v1340_v6 }
0x2022   : > { %2974 = vpush %v1342_v10 }
0x2053   : > { %s2975_s15 = spop %2974 }
0x2054   : > { %v1344_v11 = vstv %s2975_s15  ;;  %s1346_s16 = sand.u32 127, %s2975_s15 }
0x2055   : > { %vm3748_vm14 = vcmp.eq.s32.totalorder %v1318_v50, %v1344_v11  ;;  %s1349_s17 = scalar_lea.vmem [#allocation2], %s1346_s16 }
0x2056   : > { %v1347_v14 = vsel %vm3748_vm14, %v3732_v47, %v3730_v45  ;;  %v1350_v8 = vld [vmem:[%s1349_s17] sm:$0x1]  ;;  %vm1348_vm15 = vmor %vm3739_vm9, %vm3748_vm14 }
0x2057   : > { %v1351_v15 = vmin.f32 %v3732_v47, %v1350_v8 }
0x2059   : > { %v1352_v16 = vsel %vm1348_vm15, inf, %v1351_v15 }
0x205a   : > { %v1354_v17 = vand.u32 4294967168, %v1352_v16 }
0x205c   : > { %v1355_v18 = vor.u32 %v1354_v17, %v3236_v61 }
0x205e   : > { %v1356_v19 = vsel %vm430_vm5, %v1355_v18, 2147483647 }
0x205f   : > { %v1358_v9 = vshra.s32 %v1356_v19, 16  ;;  %v1357_v20 = vand.u32 65535, %v1356_v19 }
0x2061   : > { %v1360_v60 = vcvt.s32.f32 %v1358_v9  ;;  %v1359_v21 = vcvt.s32.f32 %v1357_v20 }
0x2063   : > { %1361 = vmin.xlane.f32.xlu1 %v1360_v60 }
0x20d6   : > { %v1362_v12 = vpop.xlane.xlu1 %1361 }
0x20d7   : > { %vm1363_vm0 = vcmp.eq.f32.partialorder %v1360_v60, %v1362_v12  ;;  %v1368_v23 = vcvt.f32.s32 %v1362_v12 }
0x20d8   : > { %v1364_v22 = vsel %vm1363_vm0, %v1359_v21, inf }
0x20d9   : > { %1365 = vmin.xlane.f32.xlu2 %v1364_v22  ;;  %v1369_v25 = vshll.u32 %v1368_v23, 16 }
0x214c   : > { %v1366_v24 = vpop.xlane.xlu2 %1365 }
0x214d   : > { %v1367_v26 = vcvt.f32.s32 %v1366_v24 }
0x214f   : > { %v1370_v27 = vadd.s32 %v1369_v25, %v1367_v26 }
0x2151   : > { %v1371_v28 = vrot.slane %v1370_v27, 4 }
0x2153   : > { %vm1372_vm2 = vcmp.lt.s32.totalorder %v1370_v27, %v1371_v28 }
0x2154   : > { %v1373_v29 = vsel %vm1372_vm2, %v1370_v27, %v1371_v28 }
0x2155   : > { %v1374_v30 = vrot.slane %v1373_v29, 2 }
0x2157   : > { %vm1375_vm3 = vcmp.lt.s32.totalorder %v1373_v29, %v1374_v30 }
0x2158   : > { %v1376_v31 = vsel %vm1375_vm3, %v1373_v29, %v1374_v30 }
0x2159   : > { %v1377_v32 = vrot.slane %v1376_v31, 1 }
0x215b   : > { %vm1378_vm4 = vcmp.lt.s32.totalorder %v1376_v31, %v1377_v32 }
0x215c   : > { %v1379_v33 = vsel %vm1378_vm4, %v1376_v31, %v1377_v32 }
0x215d   : > { %2976 = vpush %v1379_v33 }
0x218e   : > { %s2977_s18 = spop %2976 }
0x218f   : > { %v1381_v34 = vstv %s2977_s18  ;;  %s1383_s19 = sand.u32 127, %s2977_s18 }
0x2190   : > { %vm1382_vm6 = vcmp.eq.s32.totalorder %v1355_v18, %v1381_v34  ;;  %s1386_s20 = scalar_lea.vmem [#allocation2], %s1383_s19 }
0x2191   : > { %v3768_v35 = vsel %vm1382_vm6, %v1351_v15, %v1347_v14  ;;  %v1387_v36 = vld [vmem:[%s1386_s20] sm:$0x1]  ;;  %vm3777_vm7 = vmor %vm1348_vm15, %vm1382_vm6 }
0x2192   : > { %v3770_v37 = vmin.f32 %v1351_v15, %v1387_v36 }
0x2194   : > { %v1389_v39 = vsel %vm3777_vm7, inf, %v3770_v37 }
0x2195   : > { %v1391_v40 = vand.u32 4294967168, %v1389_v39 }
0x2197   : > { %v1392_v41 = vor.u32 %v1391_v40, %v3236_v61 }
0x2199   : > { %v1393_v42 = vsel %vm430_vm5, %v1392_v41, 2147483647 }
0x219a   : > { %v1395_v43 = vshra.s32 %v1393_v42, 16  ;;  %v1394_v7 = vand.u32 65535, %v1393_v42 }
0x219c   : > { %v1397_v44 = vcvt.s32.f32 %v1395_v43  ;;  %v1396_v46 = vcvt.s32.f32 %v1394_v7 }
0x219e   : > { %1398 = vmin.xlane.f32.xlu0 %v1397_v44 }
0x2211   : > { %v1399_v45 = vpop.xlane.xlu0 %1398 }
0x2212   : > { %vm1400_vm8 = vcmp.eq.f32.partialorder %v1397_v44, %v1399_v45  ;;  %v1405_v48 = vcvt.f32.s32 %v1399_v45 }
0x2213   : > { %v1401_v47 = vsel %vm1400_vm8, %v1396_v46, inf }
0x2214   : > { %1402 = vmin.xlane.f32.xlu1 %v1401_v47  ;;  %v1406_v5 = vshll.u32 %v1405_v48, 16 }
0x2287   : > { %v1403_v49 = vpop.xlane.xlu1 %1402 }
0x2288   : > { %v1404_v50 = vcvt.f32.s32 %v1403_v49 }
0x228a   : > { %v1407_v51 = vadd.s32 %v1406_v5, %v1404_v50 }
0x228c   : > { %v1408_v52 = vrot.slane %v1407_v51, 4 }
0x228e   : > { %vm1409_vm9 = vcmp.lt.s32.totalorder %v1407_v51, %v1408_v52 }
0x228f   : > { %v1410_v54 = vsel %vm1409_vm9, %v1407_v51, %v1408_v52 }
0x2290   : > { %v1411_v55 = vrot.slane %v1410_v54, 2 }
0x2292   : > { %vm1412_vm10 = vcmp.lt.s32.totalorder %v1410_v54, %v1411_v55 }
0x2293   : > { %v1413_v56 = vsel %vm1412_vm10, %v1410_v54, %v1411_v55 }
0x2294   : > { %v1414_v57 = vrot.slane %v1413_v56, 1 }
0x2296   : > { %vm1415_vm11 = vcmp.lt.s32.totalorder %v1413_v56, %v1414_v57 }
0x2297   : > { %v1416_v58 = vsel %vm1415_vm11, %v1413_v56, %v1414_v57 }
0x2298   : > { %2978 = vpush %v1416_v58 }
0x22c9   : > { %s2979_s21 = spop %2978 }
0x22ca   : > { %v1418_v59 = vstv %s2979_s21  ;;  %s1420_s22 = sand.u32 127, %s2979_s21 }
0x22cb   : > { %vm3786_vm12 = vcmp.eq.s32.totalorder %v1392_v41, %v1418_v59  ;;  %s1423_s23 = scalar_lea.vmem [#allocation2], %s1420_s22 }
0x22cc   : > { %v1421_v63 = vsel %vm3786_vm12, %v3770_v37, %v3768_v35  ;;  %v1424_v0 = vld [vmem:[%s1423_s23] sm:$0x1]  ;;  %vm1422_vm13 = vmor %vm3777_vm7, %vm3786_vm12 }
0x22cd   : > { %v1425_v1 = vmin.f32 %v3770_v37, %v1424_v0 }
0x22cf   : > { %v1426_v53 = vsel %vm1422_vm13, inf, %v1425_v1 }
0x22d0   : > { %v1428_v2 = vand.u32 4294967168, %v1426_v53 }
0x22d2   : > { %v1429_v3 = vor.u32 %v1428_v2, %v3236_v61 }
0x22d4   : > { %v1430_v4 = vsel %vm430_vm5, %v1429_v3, 2147483647 }
0x22d5   : > { %v1432_v6 = vshra.s32 %v1430_v4, 16  ;;  %v1431_v11 = vand.u32 65535, %v1430_v4 }
0x22d7   : > { %v1434_v10 = vcvt.s32.f32 %v1432_v6  ;;  %v1433_v14 = vcvt.s32.f32 %v1431_v11 }
0x22d9   : > { %1435 = vmin.xlane.f32.xlu2 %v1434_v10 }
0x234c   : > { %v1436_v13 = vpop.xlane.xlu2 %1435 }
0x234d   : > { %vm1437_vm14 = vcmp.eq.f32.partialorder %v1434_v10, %v1436_v13  ;;  %v1442_v15 = vcvt.f32.s32 %v1436_v13 }
0x234e   : > { %v1438_v8 = vsel %vm1437_vm14, %v1433_v14, inf }
0x234f   : > { %1439 = vmin.xlane.f32.xlu0 %v1438_v8  ;;  %v1443_v17 = vshll.u32 %v1442_v15, 16 }
0x23c2   : > { %v1440_v16 = vpop.xlane.xlu0 %1439 }
0x23c3   : > { %v1441_v18 = vcvt.f32.s32 %v1440_v16 }
0x23c5   : > { %v1444_v19 = vadd.s32 %v1443_v17, %v1441_v18 }
0x23c7   : > { %v1445_v9 = vrot.slane %v1444_v19, 4 }
0x23c9   : > { %vm1446_vm15 = vcmp.lt.s32.totalorder %v1444_v19, %v1445_v9 }
0x23ca   : > { %v1447_v60 = vsel %vm1446_vm15, %v1444_v19, %v1445_v9 }
0x23cb   : > { %v1448_v20 = vrot.slane %v1447_v60, 2 }
0x23cd   : > { %vm1449_vm0 = vcmp.lt.s32.totalorder %v1447_v60, %v1448_v20 }
0x23ce   : > { %v1450_v12 = vsel %vm1449_vm0, %v1447_v60, %v1448_v20 }
0x23cf   : > { %v1451_v21 = vrot.slane %v1450_v12, 1 }
0x23d1   : > { %vm1452_vm2 = vcmp.lt.s32.totalorder %v1450_v12, %v1451_v21 }
0x23d2   : > { %v1453_v22 = vsel %vm1452_vm2, %v1450_v12, %v1451_v21 }
0x23d3   : > { %2980 = vpush %v1453_v22 }
0x2404   : > { %s2981_s24 = spop %2980 }
0x2405   : > { %v1455_v23 = vstv %s2981_s24  ;;  %s1457_s25 = sand.u32 127, %s2981_s24 }
0x2406   : > { %vm1456_vm3 = vcmp.eq.s32.totalorder %v1429_v3, %v1455_v23  ;;  %s1460_s26 = scalar_lea.vmem [#allocation2], %s1457_s25 }
0x2407   : > { %v3806_v24 = vsel %vm1456_vm3, %v1425_v1, %v1421_v63  ;;  %v1461_v25 = vld [vmem:[%s1460_s26] sm:$0x1]  ;;  %vm3815_vm4 = vmor %vm1422_vm13, %vm1456_vm3 }
0x2408   : > { %v3808_v26 = vmin.f32 %v1425_v1, %v1461_v25 }
0x240a   : > { %v1463_v28 = vsel %vm3815_vm4, inf, %v3808_v26 }
0x240b   : > { %v1465_v29 = vand.u32 4294967168, %v1463_v28 }
0x240d   : > { %v1466_v30 = vor.u32 %v1465_v29, %v3236_v61 }
0x240f   : > { %v1467_v31 = vsel %vm430_vm5, %v1466_v30, 2147483647 }
0x2410   : > { %v1469_v32 = vshra.s32 %v1467_v31, 16  ;;  %v1468_v34 = vand.u32 65535, %v1467_v31 }
0x2412   : > { %v1471_v33 = vcvt.s32.f32 %v1469_v32  ;;  %v1470_v36 = vcvt.s32.f32 %v1468_v34 }
0x2414   : > { %1472 = vmin.xlane.f32.xlu1 %v1471_v33 }
0x2487   : > { %v1473_v35 = vpop.xlane.xlu1 %1472 }
0x2488   : > { %vm1474_vm6 = vcmp.eq.f32.partialorder %v1471_v33, %v1473_v35  ;;  %v1479_v38 = vcvt.f32.s32 %v1473_v35 }
0x2489   : > { %v1475_v37 = vsel %vm1474_vm6, %v1470_v36, inf }
0x248a   : > { %1476 = vmin.xlane.f32.xlu2 %v1475_v37  ;;  %v1480_v40 = vshll.u32 %v1479_v38, 16 }
0x24fd   : > { %v1477_v39 = vpop.xlane.xlu2 %1476 }
0x24fe   : > { %v1478_v41 = vcvt.f32.s32 %v1477_v39 }
0x2500   : > { %v1481_v42 = vadd.s32 %v1480_v40, %v1478_v41 }
0x2502   : > { %v1482_v43 = vrot.slane %v1481_v42, 4 }
0x2504   : > { %vm1483_vm7 = vcmp.lt.s32.totalorder %v1481_v42, %v1482_v43 }
0x2505   : > { %v1484_v44 = vsel %vm1483_vm7, %v1481_v42, %v1482_v43 }
0x2506   : > { %v1485_v7 = vrot.slane %v1484_v44, 2 }
0x2508   : > { %vm1486_vm8 = vcmp.lt.s32.totalorder %v1484_v44, %v1485_v7 }
0x2509   : > { %v1487_v45 = vsel %vm1486_vm8, %v1484_v44, %v1485_v7 }
0x250a   : > { %v1488_v46 = vrot.slane %v1487_v45, 1 }
0x250c   : > { %vm1489_vm9 = vcmp.lt.s32.totalorder %v1487_v45, %v1488_v46 }
0x250d   : > { %v1490_v47 = vsel %vm1489_vm9, %v1487_v45, %v1488_v46 }
0x250e   : > { %2982 = vpush %v1490_v47 }
0x253f   : > { %s2983_s27 = spop %2982 }
0x2540   : > { %v1492_v48 = vstv %s2983_s27  ;;  %s1494_s28 = sand.u32 127, %s2983_s27 }
0x2541   : > { %vm3824_vm10 = vcmp.eq.s32.totalorder %v1466_v30, %v1492_v48  ;;  %s1497_s29 = scalar_lea.vmem [#allocation2], %s1494_s28 }
0x2542   : > { %v1495_v5 = vsel %vm3824_vm10, %v3808_v26, %v3806_v24  ;;  %v1498_v50 = vld [vmem:[%s1497_s29] sm:$0x1]  ;;  %vm1496_vm11 = vmor %vm3815_vm4, %vm3824_vm10 }
0x2543   : > { %v1499_v51 = vmin.f32 %v3808_v26, %v1498_v50 }
0x2545   : > { %v1500_v52 = vsel %vm1496_vm11, inf, %v1499_v51 }
0x2546   : > { %v1502_v54 = vand.u32 4294967168, %v1500_v52 }
0x2548   : > { %v1503_v55 = vor.u32 %v1502_v54, %v3236_v61 }
0x254a   : > { %v1504_v56 = vsel %vm430_vm5, %v1503_v55, 2147483647 }
0x254b   : > { %v1506_v57 = vshra.s32 %v1504_v56, 16  ;;  %v1505_v59 = vand.u32 65535, %v1504_v56 }
0x254d   : > { %v1508_v58 = vcvt.s32.f32 %v1506_v57  ;;  %v1507_v63 = vcvt.s32.f32 %v1505_v59 }
0x254f   : > { %1509 = vmin.xlane.f32.xlu0 %v1508_v58 }
0x25c2   : > { %v1510_v62 = vpop.xlane.xlu0 %1509 }
0x25c3   : > { %vm1511_vm12 = vcmp.eq.f32.partialorder %v1508_v58, %v1510_v62  ;;  %v1516_v1 = vcvt.f32.s32 %v1510_v62 }
0x25c4   : > { %v1512_v0 = vsel %vm1511_vm12, %v1507_v63, inf }
0x25c5   : > { %1513 = vmin.xlane.f32.xlu1 %v1512_v0  ;;  %v1517_v2 = vshll.u32 %v1516_v1, 16 }
0x2638   : > { %v1514_v53 = vpop.xlane.xlu1 %1513 }
0x2639   : > { %v1515_v3 = vcvt.f32.s32 %v1514_v53 }
0x263b   : > { %v1518_v4 = vadd.s32 %v1517_v2, %v1515_v3 }
0x263d   : > { %v1519_v6 = vrot.slane %v1518_v4, 4 }
0x263f   : > { %vm1520_vm13 = vcmp.lt.s32.totalorder %v1518_v4, %v1519_v6 }
0x2640   : > { %v1521_v10 = vsel %vm1520_vm13, %v1518_v4, %v1519_v6 }
0x2641   : > { %v1522_v11 = vrot.slane %v1521_v10, 2 }
0x2643   : > { %vm1523_vm14 = vcmp.lt.s32.totalorder %v1521_v10, %v1522_v11 }
0x2644   : > { %v1524_v13 = vsel %vm1523_vm14, %v1521_v10, %v1522_v11 }
0x2645   : > { %v1525_v14 = vrot.slane %v1524_v13, 1 }
0x2647   : > { %vm1526_vm15 = vcmp.lt.s32.totalorder %v1524_v13, %v1525_v14 }
0x2648   : > { %v1527_v8 = vsel %vm1526_vm15, %v1524_v13, %v1525_v14 }
0x2649   : > { %2984 = vpush %v1527_v8 }
0x267a   : > { %s2985_s30 = spop %2984 }
0x267b   : > { %v1529_v15 = vstv %s2985_s30  ;;  %s1531_s3 = sand.u32 127, %s2985_s30 }
0x267c   : > { %vm1530_vm0 = vcmp.eq.s32.totalorder %v1503_v55, %v1529_v15  ;;  %s1534_s4 = scalar_lea.vmem [#allocation2], %s1531_s3 }
0x267d   : > { %v3844_v16 = vsel %vm1530_vm0, %v1499_v51, %v1495_v5  ;;  %v1535_v17 = vld [vmem:[%s1534_s4] sm:$0x1]  ;;  %vm3853_vm2 = vmor %vm1496_vm11, %vm1530_vm0 }
0x267e   : > { %v3846_v18 = vmin.f32 %v1499_v51, %v1535_v17 }
0x2680   : > { %v1537_v9 = vsel %vm3853_vm2, inf, %v3846_v18 }
0x2681   : > { %v1539_v60 = vand.u32 4294967168, %v1537_v9 }
0x2683   : > { %v1540_v20 = vor.u32 %v1539_v60, %v3236_v61 }
0x2685   : > { %v1541_v12 = vsel %vm430_vm5, %v1540_v20, 2147483647 }
0x2686   : > { %v1543_v21 = vshra.s32 %v1541_v12, 16  ;;  %v1542_v23 = vand.u32 65535, %v1541_v12 }
0x2688   : > { %v1545_v22 = vcvt.s32.f32 %v1543_v21  ;;  %v1544_v25 = vcvt.s32.f32 %v1542_v23 }
0x268a   : > { %1546 = vmin.xlane.f32.xlu2 %v1545_v22 }
0x26fd   : > { %v1547_v24 = vpop.xlane.xlu2 %1546 }
0x26fe   : > { %vm1548_vm3 = vcmp.eq.f32.partialorder %v1545_v22, %v1547_v24  ;;  %v1553_v27 = vcvt.f32.s32 %v1547_v24 }
0x26ff   : > { %v1549_v26 = vsel %vm1548_vm3, %v1544_v25, inf }
0x2700   : > { %1550 = vmin.xlane.f32.xlu0 %v1549_v26  ;;  %v1554_v29 = vshll.u32 %v1553_v27, 16 }
0x2773   : > { %v1551_v28 = vpop.xlane.xlu0 %1550 }
0x2774   : > { %v1552_v30 = vcvt.f32.s32 %v1551_v28 }
0x2776   : > { %v1555_v31 = vadd.s32 %v1554_v29, %v1552_v30 }
0x2778   : > { %v1556_v32 = vrot.slane %v1555_v31, 4 }
0x277a   : > { %vm1557_vm4 = vcmp.lt.s32.totalorder %v1555_v31, %v1556_v32 }
0x277b   : > { %v1558_v33 = vsel %vm1557_vm4, %v1555_v31, %v1556_v32 }
0x277c   : > { %v1559_v34 = vrot.slane %v1558_v33, 2 }
0x277e   : > { %vm1560_vm6 = vcmp.lt.s32.totalorder %v1558_v33, %v1559_v34 }
0x277f   : > { %v1561_v35 = vsel %vm1560_vm6, %v1558_v33, %v1559_v34 }
0x2780   : > { %v1562_v36 = vrot.slane %v1561_v35, 1 }
0x2782   : > { %vm1563_vm7 = vcmp.lt.s32.totalorder %v1561_v35, %v1562_v36 }
0x2783   : > { %v1564_v37 = vsel %vm1563_vm7, %v1561_v35, %v1562_v36 }
0x2784   : > { %2986 = vpush %v1564_v37 }
0x27b5   : > { %s2987_s5 = spop %2986 }
0x27b6   : > { %v1566_v38 = vstv %s2987_s5  ;;  %s1568_s6 = sand.u32 127, %s2987_s5 }
0x27b7   : > { %vm3862_vm8 = vcmp.eq.s32.totalorder %v1540_v20, %v1566_v38  ;;  %s1571_s7 = scalar_lea.vmem [#allocation2], %s1568_s6 }
0x27b8   : > { %v1569_v40 = vsel %vm3862_vm8, %v3846_v18, %v3844_v16  ;;  %v1572_v41 = vld [vmem:[%s1571_s7] sm:$0x1]  ;;  %vm1570_vm9 = vmor %vm3853_vm2, %vm3862_vm8 }
0x27b9   : > { %v1573_v42 = vmin.f32 %v3846_v18, %v1572_v41 }
0x27bb   : > { %v1574_v43 = vsel %vm1570_vm9, inf, %v1573_v42 }
0x27bc   : > { %v1576_v44 = vand.u32 4294967168, %v1574_v43 }
0x27be   : > { %v1577_v7 = vor.u32 %v1576_v44, %v3236_v61 }
0x27c0   : > { %v1578_v45 = vsel %vm430_vm5, %v1577_v7, 2147483647 }
0x27c1   : > { %v1580_v46 = vshra.s32 %v1578_v45, 16  ;;  %v1579_v48 = vand.u32 65535, %v1578_v45 }
0x27c3   : > { %v1582_v47 = vcvt.s32.f32 %v1580_v46  ;;  %v1581_v5 = vcvt.s32.f32 %v1579_v48 }
0x27c5   : > { %1583 = vmin.xlane.f32.xlu1 %v1582_v47 }
0x2838   : > { %v1584_v49 = vpop.xlane.xlu1 %1583 }
0x2839   : > { %vm1585_vm10 = vcmp.eq.f32.partialorder %v1582_v47, %v1584_v49  ;;  %v1590_v51 = vcvt.f32.s32 %v1584_v49 }
0x283a   : > { %v1586_v50 = vsel %vm1585_vm10, %v1581_v5, inf }
0x283b   : > { %1587 = vmin.xlane.f32.xlu2 %v1586_v50  ;;  %v1591_v54 = vshll.u32 %v1590_v51, 16 }
0x28ae   : > { %v1588_v52 = vpop.xlane.xlu2 %1587 }
0x28af   : > { %v1589_v55 = vcvt.f32.s32 %v1588_v52 }
0x28b1   : > { %v1592_v56 = vadd.s32 %v1591_v54, %v1589_v55 }
0x28b3   : > { %v1593_v57 = vrot.slane %v1592_v56, 4 }
0x28b5   : > { %vm1594_vm11 = vcmp.lt.s32.totalorder %v1592_v56, %v1593_v57 }
0x28b6   : > { %v1595_v58 = vsel %vm1594_vm11, %v1592_v56, %v1593_v57 }
0x28b7   : > { %v1596_v59 = vrot.slane %v1595_v58, 2 }
0x28b9   : > { %vm1597_vm12 = vcmp.lt.s32.totalorder %v1595_v58, %v1596_v59 }
0x28ba   : > { %v1598_v62 = vsel %vm1597_vm12, %v1595_v58, %v1596_v59 }
0x28bb   : > { %v1599_v63 = vrot.slane %v1598_v62, 1 }
0x28bd   : > { %vm1600_vm13 = vcmp.lt.s32.totalorder %v1598_v62, %v1599_v63 }
0x28be   : > { %v1601_v0 = vsel %vm1600_vm13, %v1598_v62, %v1599_v63 }
0x28bf   : > { %2988 = vpush %v1601_v0 }
0x28f0   : > { %s2989_s8 = spop %2988 }
0x28f1   : > { %v1603_v1 = vstv %s2989_s8  ;;  %s1605_s11 = sand.u32 127, %s2989_s8 }
0x28f2   : > { %vm1604_vm14 = vcmp.eq.s32.totalorder %v1577_v7, %v1603_v1  ;;  %s1608_s12 = scalar_lea.vmem [#allocation2], %s1605_s11 }
0x28f3   : > { %v3882_v53 = vsel %vm1604_vm14, %v1573_v42, %v1569_v40  ;;  %v1609_v2 = vld [vmem:[%s1608_s12] sm:$0x1]  ;;  %vm3891_vm15 = vmor %vm1570_vm9, %vm1604_vm14 }
0x28f4   : > { %v3884_v3 = vmin.f32 %v1573_v42, %v1609_v2 }
0x28f6   : > { %v1611_v6 = vsel %vm3891_vm15, inf, %v3884_v3 }
0x28f7   : > { %v1613_v10 = vand.u32 4294967168, %v1611_v6 }
0x28f9   : > { %v1614_v11 = vor.u32 %v1613_v10, %v3236_v61 }
0x28fb   : > { %v1615_v13 = vsel %vm430_vm5, %v1614_v11, 2147483647 }
0x28fc   : > { %v1617_v14 = vshra.s32 %v1615_v13, 16  ;;  %v1616_v15 = vand.u32 65535, %v1615_v13 }
0x28fe   : > { %v1619_v8 = vcvt.s32.f32 %v1617_v14  ;;  %v1618_v17 = vcvt.s32.f32 %v1616_v15 }
0x2900   : > { %1620 = vmin.xlane.f32.xlu0 %v1619_v8 }
0x2973   : > { %v1621_v16 = vpop.xlane.xlu0 %1620 }
0x2974   : > { %vm1622_vm0 = vcmp.eq.f32.partialorder %v1619_v8, %v1621_v16  ;;  %v1627_v19 = vcvt.f32.s32 %v1621_v16 }
0x2975   : > { %v1623_v18 = vsel %vm1622_vm0, %v1618_v17, inf }
0x2976   : > { %1624 = vmin.xlane.f32.xlu1 %v1623_v18  ;;  %v1628_v60 = vshll.u32 %v1627_v19, 16 }
0x29e9   : > { %v1625_v9 = vpop.xlane.xlu1 %1624 }
0x29ea   : > { %v1626_v20 = vcvt.f32.s32 %v1625_v9 }
0x29ec   : > { %v1629_v12 = vadd.s32 %v1628_v60, %v1626_v20 }
0x29ee   : > { %v1630_v21 = vrot.slane %v1629_v12, 4 }
0x29f0   : > { %vm1631_vm2 = vcmp.lt.s32.totalorder %v1629_v12, %v1630_v21 }
0x29f1   : > { %v1632_v22 = vsel %vm1631_vm2, %v1629_v12, %v1630_v21 }
0x29f2   : > { %v1633_v23 = vrot.slane %v1632_v22, 2 }
0x29f4   : > { %vm1634_vm3 = vcmp.lt.s32.totalorder %v1632_v22, %v1633_v23 }
0x29f5   : > { %v1635_v24 = vsel %vm1634_vm3, %v1632_v22, %v1633_v23 }
0x29f6   : > { %v1636_v25 = vrot.slane %v1635_v24, 1 }
0x29f8   : > { %vm1637_vm4 = vcmp.lt.s32.totalorder %v1635_v24, %v1636_v25 }
0x29f9   : > { %v1638_v26 = vsel %vm1637_vm4, %v1635_v24, %v1636_v25 }
0x29fa   : > { %2990 = vpush %v1638_v26 }
0x2a2b   : > { %s2991_s13 = spop %2990 }
0x2a2c   : > { %v1640_v27 = vstv %s2991_s13  ;;  %s1642_s14 = sand.u32 127, %s2991_s13 }
0x2a2d   : > { %vm3900_vm6 = vcmp.eq.s32.totalorder %v1614_v11, %v1640_v27  ;;  %s1645_s15 = scalar_lea.vmem [#allocation2], %s1642_s14 }
0x2a2e   : > { %v1643_v29 = vsel %vm3900_vm6, %v3884_v3, %v3882_v53  ;;  %v1646_v30 = vld [vmem:[%s1645_s15] sm:$0x1]  ;;  %vm1644_vm7 = vmor %vm3891_vm15, %vm3900_vm6 }
0x2a2f   : > { %v1647_v31 = vmin.f32 %v3884_v3, %v1646_v30 }
0x2a31   : > { %v1648_v32 = vsel %vm1644_vm7, inf, %v1647_v31 }
0x2a32   : > { %v1650_v33 = vand.u32 4294967168, %v1648_v32 }
0x2a34   : > { %v1651_v34 = vor.u32 %v1650_v33, %v3236_v61 }
0x2a36   : > { %v1652_v35 = vsel %vm430_vm5, %v1651_v34, 2147483647 }
0x2a37   : > { %v1654_v36 = vshra.s32 %v1652_v35, 16  ;;  %v1653_v38 = vand.u32 65535, %v1652_v35 }
0x2a39   : > { %v1656_v37 = vcvt.s32.f32 %v1654_v36  ;;  %v1655_v40 = vcvt.s32.f32 %v1653_v38 }
0x2a3b   : > { %1657 = vmin.xlane.f32.xlu2 %v1656_v37 }
0x2aae   : > { %v1658_v39 = vpop.xlane.xlu2 %1657 }
0x2aaf   : > { %vm1659_vm8 = vcmp.eq.f32.partialorder %v1656_v37, %v1658_v39  ;;  %v1664_v42 = vcvt.f32.s32 %v1658_v39 }
0x2ab0   : > { %v1660_v41 = vsel %vm1659_vm8, %v1655_v40, inf }
0x2ab1   : > { %1661 = vmin.xlane.f32.xlu0 %v1660_v41  ;;  %v1665_v44 = vshll.u32 %v1664_v42, 16 }
0x2b24   : > { %v1662_v43 = vpop.xlane.xlu0 %1661 }
0x2b25   : > { %v1663_v7 = vcvt.f32.s32 %v1662_v43 }
0x2b27   : > { %v1666_v45 = vadd.s32 %v1665_v44, %v1663_v7 }
0x2b29   : > { %v1667_v46 = vrot.slane %v1666_v45, 4 }
0x2b2b   : > { %vm1668_vm9 = vcmp.lt.s32.totalorder %v1666_v45, %v1667_v46 }
0x2b2c   : > { %v1669_v47 = vsel %vm1668_vm9, %v1666_v45, %v1667_v46 }
0x2b2d   : > { %v1670_v48 = vrot.slane %v1669_v47, 2 }
0x2b2f   : > { %vm1671_vm10 = vcmp.lt.s32.totalorder %v1669_v47, %v1670_v48 }
0x2b30   : > { %v1672_v49 = vsel %vm1671_vm10, %v1669_v47, %v1670_v48 }
0x2b31   : > { %v1673_v5 = vrot.slane %v1672_v49, 1 }
0x2b33   : > { %vm1674_vm11 = vcmp.lt.s32.totalorder %v1672_v49, %v1673_v5 }
0x2b34   : > { %v1675_v50 = vsel %vm1674_vm11, %v1672_v49, %v1673_v5 }
0x2b35   : > { %2992 = vpush %v1675_v50 }
0x2b66   : > { %s2993_s16 = spop %2992 }
0x2b67   : > { %v1677_v51 = vstv %s2993_s16  ;;  %s1679_s17 = sand.u32 127, %s2993_s16 }
0x2b68   : > { %vm1678_vm12 = vcmp.eq.s32.totalorder %v1651_v34, %v1677_v51  ;;  %s1682_s18 = scalar_lea.vmem [#allocation2], %s1679_s17 }
0x2b69   : > { %v3920_v52 = vsel %vm1678_vm12, %v1647_v31, %v1643_v29  ;;  %v1683_v54 = vld [vmem:[%s1682_s18] sm:$0x1]  ;;  %vm3929_vm13 = vmor %vm1644_vm7, %vm1678_vm12 }
0x2b6a   : > { %v3922_v55 = vmin.f32 %v1647_v31, %v1683_v54 }
0x2b6c   : > { %v1685_v57 = vsel %vm3929_vm13, inf, %v3922_v55 }
0x2b6d   : > { %v1687_v58 = vand.u32 4294967168, %v1685_v57 }
0x2b6f   : > { %v1688_v59 = vor.u32 %v1687_v58, %v3236_v61 }
0x2b71   : > { %v1689_v62 = vsel %vm430_vm5, %v1688_v59, 2147483647 }
0x2b72   : > { %v1691_v63 = vshra.s32 %v1689_v62, 16  ;;  %v1690_v1 = vand.u32 65535, %v1689_v62 }
0x2b74   : > { %v1693_v0 = vcvt.s32.f32 %v1691_v63  ;;  %v1692_v2 = vcvt.s32.f32 %v1690_v1 }
0x2b76   : > { %1694 = vmin.xlane.f32.xlu1 %v1693_v0 }
0x2be9   : > { %v1695_v53 = vpop.xlane.xlu1 %1694 }
0x2bea   : > { %vm1696_vm14 = vcmp.eq.f32.partialorder %v1693_v0, %v1695_v53  ;;  %v1701_v4 = vcvt.f32.s32 %v1695_v53 }
0x2beb   : > { %v1697_v3 = vsel %vm1696_vm14, %v1692_v2, inf }
0x2bec   : > { %1698 = vmin.xlane.f32.xlu2 %v1697_v3  ;;  %v1702_v10 = vshll.u32 %v1701_v4, 16 }
0x2c5f   : > { %v1699_v6 = vpop.xlane.xlu2 %1698 }
0x2c60   : > { %v1700_v11 = vcvt.f32.s32 %v1699_v6 }
0x2c62   : > { %v1703_v13 = vadd.s32 %v1702_v10, %v1700_v11 }
0x2c64   : > { %v1704_v14 = vrot.slane %v1703_v13, 4 }
0x2c66   : > { %vm1705_vm15 = vcmp.lt.s32.totalorder %v1703_v13, %v1704_v14 }
0x2c67   : > { %v1706_v8 = vsel %vm1705_vm15, %v1703_v13, %v1704_v14 }
0x2c68   : > { %v1707_v15 = vrot.slane %v1706_v8, 2 }
0x2c6a   : > { %vm1708_vm0 = vcmp.lt.s32.totalorder %v1706_v8, %v1707_v15 }
0x2c6b   : > { %v1709_v16 = vsel %vm1708_vm0, %v1706_v8, %v1707_v15 }
0x2c6c   : > { %v1710_v17 = vrot.slane %v1709_v16, 1 }
0x2c6e   : > { %vm1711_vm2 = vcmp.lt.s32.totalorder %v1709_v16, %v1710_v17 }
0x2c6f   : > { %v1712_v18 = vsel %vm1711_vm2, %v1709_v16, %v1710_v17 }
0x2c70   : > { %2994 = vpush %v1712_v18 }
0x2ca1   : > { %s2995_s19 = spop %2994 }
0x2ca2   : > { %v1714_v19 = vstv %s2995_s19  ;;  %s1716_s20 = sand.u32 127, %s2995_s19 }
0x2ca3   : > { %vm3938_vm3 = vcmp.eq.s32.totalorder %v1688_v59, %v1714_v19  ;;  %s1719_s21 = scalar_lea.vmem [#allocation2], %s1716_s20 }
0x2ca4   : > { %v1717_v60 = vsel %vm3938_vm3, %v3922_v55, %v3920_v52  ;;  %v1720_v20 = vld [vmem:[%s1719_s21] sm:$0x1]  ;;  %vm1718_vm4 = vmor %vm3929_vm13, %vm3938_vm3 }
0x2ca5   : > { %v1721_v12 = vmin.f32 %v3922_v55, %v1720_v20 }
0x2ca7   : > { %v1722_v21 = vsel %vm1718_vm4, inf, %v1721_v12 }
0x2ca8   : > { %v1724_v22 = vand.u32 4294967168, %v1722_v21 }
0x2caa   : > { %v1725_v23 = vor.u32 %v1724_v22, %v3236_v61 }
0x2cac   : > { %v1726_v24 = vsel %vm430_vm5, %v1725_v23, 2147483647 }
0x2cad   : > { %v1728_v25 = vshra.s32 %v1726_v24, 16  ;;  %v1727_v27 = vand.u32 65535, %v1726_v24 }
0x2caf   : > { %v1730_v26 = vcvt.s32.f32 %v1728_v25  ;;  %v1729_v29 = vcvt.s32.f32 %v1727_v27 }
0x2cb1   : > { %1731 = vmin.xlane.f32.xlu0 %v1730_v26 }
0x2d24   : > { %v1732_v28 = vpop.xlane.xlu0 %1731 }
0x2d25   : > { %vm1733_vm6 = vcmp.eq.f32.partialorder %v1730_v26, %v1732_v28  ;;  %v1738_v31 = vcvt.f32.s32 %v1732_v28 }
0x2d26   : > { %v1734_v30 = vsel %vm1733_vm6, %v1729_v29, inf }
0x2d27   : > { %1735 = vmin.xlane.f32.xlu1 %v1734_v30  ;;  %v1739_v33 = vshll.u32 %v1738_v31, 16 }
0x2d9a   : > { %v1736_v32 = vpop.xlane.xlu1 %1735 }
0x2d9b   : > { %v1737_v34 = vcvt.f32.s32 %v1736_v32 }
0x2d9d   : > { %v1740_v35 = vadd.s32 %v1739_v33, %v1737_v34 }
0x2d9f   : > { %v1741_v36 = vrot.slane %v1740_v35, 4 }
0x2da1   : > { %vm1742_vm7 = vcmp.lt.s32.totalorder %v1740_v35, %v1741_v36 }
0x2da2   : > { %v1743_v37 = vsel %vm1742_vm7, %v1740_v35, %v1741_v36 }
0x2da3   : > { %v1744_v38 = vrot.slane %v1743_v37, 2 }
0x2da5   : > { %vm1745_vm8 = vcmp.lt.s32.totalorder %v1743_v37, %v1744_v38 }
0x2da6   : > { %v1746_v39 = vsel %vm1745_vm8, %v1743_v37, %v1744_v38 }
0x2da7   : > { %v1747_v40 = vrot.slane %v1746_v39, 1 }
0x2da9   : > { %vm1748_vm9 = vcmp.lt.s32.totalorder %v1746_v39, %v1747_v40 }
0x2daa   : > { %v1749_v41 = vsel %vm1748_vm9, %v1746_v39, %v1747_v40 }
0x2dab   : > { %2996 = vpush %v1749_v41 }
0x2ddc   : > { %s2997_s22 = spop %2996 }
0x2ddd   : > { %v1751_v42 = vstv %s2997_s22  ;;  %s1753_s23 = sand.u32 127, %s2997_s22 }
0x2dde   : > { %vm1752_vm10 = vcmp.eq.s32.totalorder %v1725_v23, %v1751_v42  ;;  %s1756_s24 = scalar_lea.vmem [#allocation2], %s1753_s23 }
0x2ddf   : > { %v3958_v43 = vsel %vm1752_vm10, %v1721_v12, %v1717_v60  ;;  %v1757_v44 = vld [vmem:[%s1756_s24] sm:$0x1]  ;;  %vm3967_vm11 = vmor %vm1718_vm4, %vm1752_vm10 }
0x2de0   : > { %v3960_v7 = vmin.f32 %v1721_v12, %v1757_v44 }
0x2de2   : > { %v1759_v46 = vsel %vm3967_vm11, inf, %v3960_v7 }
0x2de3   : > { %v1761_v47 = vand.u32 4294967168, %v1759_v46 }
0x2de5   : > { %v1762_v48 = vor.u32 %v1761_v47, %v3236_v61 }
0x2de7   : > { %v1763_v49 = vsel %vm430_vm5, %v1762_v48, 2147483647 }
0x2de8   : > { %v1765_v5 = vshra.s32 %v1763_v49, 16  ;;  %v1764_v51 = vand.u32 65535, %v1763_v49 }
0x2dea   : > { %v1767_v50 = vcvt.s32.f32 %v1765_v5  ;;  %v1766_v54 = vcvt.s32.f32 %v1764_v51 }
0x2dec   : > { %1768 = vmin.xlane.f32.xlu2 %v1767_v50 }
0x2e5f   : > { %v1769_v52 = vpop.xlane.xlu2 %1768 }
0x2e60   : > { %vm1770_vm12 = vcmp.eq.f32.partialorder %v1767_v50, %v1769_v52  ;;  %v1775_v56 = vcvt.f32.s32 %v1769_v52 }
0x2e61   : > { %v1771_v55 = vsel %vm1770_vm12, %v1766_v54, inf }
0x2e62   : > { %1772 = vmin.xlane.f32.xlu0 %v1771_v55  ;;  %v1776_v58 = vshll.u32 %v1775_v56, 16 }
0x2ed5   : > { %v1773_v57 = vpop.xlane.xlu0 %1772 }
0x2ed6   : > { %v1774_v59 = vcvt.f32.s32 %v1773_v57 }
0x2ed8   : > { %v1777_v62 = vadd.s32 %v1776_v58, %v1774_v59 }
0x2eda   : > { %v1778_v63 = vrot.slane %v1777_v62, 4 }
0x2edc   : > { %vm1779_vm13 = vcmp.lt.s32.totalorder %v1777_v62, %v1778_v63 }
0x2edd   : > { %v1780_v0 = vsel %vm1779_vm13, %v1777_v62, %v1778_v63 }
0x2ede   : > { %v1781_v1 = vrot.slane %v1780_v0, 2 }
0x2ee0   : > { %vm1782_vm14 = vcmp.lt.s32.totalorder %v1780_v0, %v1781_v1 }
0x2ee1   : > { %v1783_v53 = vsel %vm1782_vm14, %v1780_v0, %v1781_v1 }
0x2ee2   : > { %v1784_v2 = vrot.slane %v1783_v53, 1 }
0x2ee4   : > { %vm1785_vm15 = vcmp.lt.s32.totalorder %v1783_v53, %v1784_v2 }
0x2ee5   : > { %v1786_v3 = vsel %vm1785_vm15, %v1783_v53, %v1784_v2 }
0x2ee6   : > { %2998 = vpush %v1786_v3 }
0x2f17   : > { %s2999_s25 = spop %2998 }
0x2f18   : > { %v1788_v4 = vstv %s2999_s25  ;;  %s1790_s26 = sand.u32 127, %s2999_s25 }
0x2f19   : > { %vm3976_vm0 = vcmp.eq.s32.totalorder %v1762_v48, %v1788_v4  ;;  %s1793_s27 = scalar_lea.vmem [#allocation2], %s1790_s26 }
0x2f1a   : > { %v1791_v10 = vsel %vm3976_vm0, %v3960_v7, %v3958_v43  ;;  %v1794_v11 = vld [vmem:[%s1793_s27] sm:$0x1]  ;;  %vm1792_vm2 = vmor %vm3967_vm11, %vm3976_vm0 }
0x2f1b   : > { %v1795_v13 = vmin.f32 %v3960_v7, %v1794_v11 }
0x2f1d   : > { %v1796_v14 = vsel %vm1792_vm2, inf, %v1795_v13 }
0x2f1e   : > { %v1798_v8 = vand.u32 4294967168, %v1796_v14 }
0x2f20   : > { %v1799_v15 = vor.u32 %v1798_v8, %v3236_v61 }
0x2f22   : > { %v1800_v16 = vsel %vm430_vm5, %v1799_v15, 2147483647 }
0x2f23   : > { %v1802_v17 = vshra.s32 %v1800_v16, 16  ;;  %v1801_v19 = vand.u32 65535, %v1800_v16 }
0x2f25   : > { %v1804_v18 = vcvt.s32.f32 %v1802_v17  ;;  %v1803_v60 = vcvt.s32.f32 %v1801_v19 }
0x2f27   : > { %1805 = vmin.xlane.f32.xlu1 %v1804_v18 }
0x2f9a   : > { %v1806_v9 = vpop.xlane.xlu1 %1805 }
0x2f9b   : > { %vm1807_vm3 = vcmp.eq.f32.partialorder %v1804_v18, %v1806_v9  ;;  %v1812_v12 = vcvt.f32.s32 %v1806_v9 }
0x2f9c   : > { %v1808_v20 = vsel %vm1807_vm3, %v1803_v60, inf }
0x2f9d   : > { %1809 = vmin.xlane.f32.xlu2 %v1808_v20  ;;  %v1813_v22 = vshll.u32 %v1812_v12, 16 }
0x3010   : > { %v1810_v21 = vpop.xlane.xlu2 %1809 }
0x3011   : > { %v1811_v23 = vcvt.f32.s32 %v1810_v21 }
0x3013   : > { %v1814_v24 = vadd.s32 %v1813_v22, %v1811_v23 }
0x3015   : > { %v1815_v25 = vrot.slane %v1814_v24, 4 }
0x3017   : > { %vm1816_vm4 = vcmp.lt.s32.totalorder %v1814_v24, %v1815_v25 }
0x3018   : > { %v1817_v26 = vsel %vm1816_vm4, %v1814_v24, %v1815_v25 }
0x3019   : > { %v1818_v27 = vrot.slane %v1817_v26, 2 }
0x301b   : > { %vm1819_vm6 = vcmp.lt.s32.totalorder %v1817_v26, %v1818_v27 }
0x301c   : > { %v1820_v28 = vsel %vm1819_vm6, %v1817_v26, %v1818_v27 }
0x301d   : > { %v1821_v29 = vrot.slane %v1820_v28, 1 }
0x301f   : > { %vm1822_vm7 = vcmp.lt.s32.totalorder %v1820_v28, %v1821_v29 }
0x3020   : > { %v1823_v30 = vsel %vm1822_vm7, %v1820_v28, %v1821_v29 }
0x3021   : > { %3000 = vpush %v1823_v30 }
0x3052   : > { %s3001_s28 = spop %3000 }
0x3053   : > { %v1825_v31 = vstv %s3001_s28  ;;  %s1827_s29 = sand.u32 127, %s3001_s28 }
0x3054   : > { %vm1826_vm8 = vcmp.eq.s32.totalorder %v1799_v15, %v1825_v31  ;;  %s1830_s30 = scalar_lea.vmem [#allocation2], %s1827_s29 }
0x3055   : > { %v3996_v32 = vsel %vm1826_vm8, %v1795_v13, %v1791_v10  ;;  %v1831_v33 = vld [vmem:[%s1830_s30] sm:$0x1]  ;;  %vm4005_vm9 = vmor %vm1792_vm2, %vm1826_vm8 }
0x3056   : > { %v3998_v34 = vmin.f32 %v1795_v13, %v1831_v33 }
0x3058   : > { %v1833_v36 = vsel %vm4005_vm9, inf, %v3998_v34 }
0x3059   : > { %v1835_v37 = vand.u32 4294967168, %v1833_v36 }
0x305b   : > { %v1836_v38 = vor.u32 %v1835_v37, %v3236_v61 }
0x305d   : > { %v1837_v39 = vsel %vm430_vm5, %v1836_v38, 2147483647 }
0x305e   : > { %v1839_v40 = vshra.s32 %v1837_v39, 16  ;;  %v1838_v42 = vand.u32 65535, %v1837_v39 }
0x3060   : > { %v1841_v41 = vcvt.s32.f32 %v1839_v40  ;;  %v1840_v44 = vcvt.s32.f32 %v1838_v42 }
0x3062   : > { %1842 = vmin.xlane.f32.xlu0 %v1841_v41 }
0x30d5   : > { %v1843_v43 = vpop.xlane.xlu0 %1842 }
0x30d6   : > { %vm1844_vm10 = vcmp.eq.f32.partialorder %v1841_v41, %v1843_v43  ;;  %v1849_v45 = vcvt.f32.s32 %v1843_v43 }
0x30d7   : > { %v1845_v7 = vsel %vm1844_vm10, %v1840_v44, inf }
0x30d8   : > { %1846 = vmin.xlane.f32.xlu1 %v1845_v7  ;;  %v1850_v47 = vshll.u32 %v1849_v45, 16 }
0x314b   : > { %v1847_v46 = vpop.xlane.xlu1 %1846 }
0x314c   : > { %v1848_v48 = vcvt.f32.s32 %v1847_v46 }
0x314e   : > { %v1851_v49 = vadd.s32 %v1850_v47, %v1848_v48 }
0x3150   : > { %v1852_v5 = vrot.slane %v1851_v49, 4 }
0x3152   : > { %vm1853_vm11 = vcmp.lt.s32.totalorder %v1851_v49, %v1852_v5 }
0x3153   : > { %v1854_v50 = vsel %vm1853_vm11, %v1851_v49, %v1852_v5 }
0x3154   : > { %v1855_v51 = vrot.slane %v1854_v50, 2 }
0x3156   : > { %vm1856_vm12 = vcmp.lt.s32.totalorder %v1854_v50, %v1855_v51 }
0x3157   : > { %v1857_v52 = vsel %vm1856_vm12, %v1854_v50, %v1855_v51 }
0x3158   : > { %v1858_v54 = vrot.slane %v1857_v52, 1 }
0x315a   : > { %vm1859_vm13 = vcmp.lt.s32.totalorder %v1857_v52, %v1858_v54 }
0x315b   : > { %v1860_v55 = vsel %vm1859_vm13, %v1857_v52, %v1858_v54 }
0x315c   : > { %3002 = vpush %v1860_v55 }
0x318d   : > { %s3003_s3 = spop %3002 }
0x318e   : > { %v1862_v56 = vstv %s3003_s3  ;;  %s1864_s4 = sand.u32 127, %s3003_s3 }
0x318f   : > { %vm4014_vm14 = vcmp.eq.s32.totalorder %v1836_v38, %v1862_v56  ;;  %s1867_s5 = scalar_lea.vmem [#allocation2], %s1864_s4 }
0x3190   : > { %v1865_v58 = vsel %vm4014_vm14, %v3998_v34, %v3996_v32  ;;  %v1868_v59 = vld [vmem:[%s1867_s5] sm:$0x1]  ;;  %vm1866_vm15 = vmor %vm4005_vm9, %vm4014_vm14 }
0x3191   : > { %v1869_v62 = vmin.f32 %v3998_v34, %v1868_v59 }
0x3193   : > { %v1870_v63 = vsel %vm1866_vm15, inf, %v1869_v62 }
0x3194   : > { %v1872_v0 = vand.u32 4294967168, %v1870_v63 }
0x3196   : > { %v1873_v1 = vor.u32 %v1872_v0, %v3236_v61 }
0x3198   : > { %v1874_v53 = vsel %vm430_vm5, %v1873_v1, 2147483647 }
0x3199   : > { %v1876_v2 = vshra.s32 %v1874_v53, 16  ;;  %v1875_v4 = vand.u32 65535, %v1874_v53 }
0x319b   : > { %v1878_v3 = vcvt.s32.f32 %v1876_v2  ;;  %v1877_v10 = vcvt.s32.f32 %v1875_v4 }
0x319d   : > { %1879 = vmin.xlane.f32.xlu2 %v1878_v3 }
0x3210   : > { %v1880_v6 = vpop.xlane.xlu2 %1879 }
0x3211   : > { %vm1881_vm0 = vcmp.eq.f32.partialorder %v1878_v3, %v1880_v6  ;;  %v1886_v13 = vcvt.f32.s32 %v1880_v6 }
0x3212   : > { %v1882_v11 = vsel %vm1881_vm0, %v1877_v10, inf }
0x3213   : > { %1883 = vmin.xlane.f32.xlu0 %v1882_v11  ;;  %v1887_v8 = vshll.u32 %v1886_v13, 16 }
0x3286   : > { %v1884_v14 = vpop.xlane.xlu0 %1883 }
0x3287   : > { %v1885_v15 = vcvt.f32.s32 %v1884_v14 }
0x3289   : > { %v1888_v16 = vadd.s32 %v1887_v8, %v1885_v15 }
0x328b   : > { %v1889_v17 = vrot.slane %v1888_v16, 4 }
0x328d   : > { %vm1890_vm2 = vcmp.lt.s32.totalorder %v1888_v16, %v1889_v17 }
0x328e   : > { %v1891_v18 = vsel %vm1890_vm2, %v1888_v16, %v1889_v17 }
0x328f   : > { %v1892_v19 = vrot.slane %v1891_v18, 2 }
0x3291   : > { %vm1893_vm3 = vcmp.lt.s32.totalorder %v1891_v18, %v1892_v19 }
0x3292   : > { %v1894_v9 = vsel %vm1893_vm3, %v1891_v18, %v1892_v19 }
0x3293   : > { %v1895_v60 = vrot.slane %v1894_v9, 1 }
0x3295   : > { %vm1896_vm4 = vcmp.lt.s32.totalorder %v1894_v9, %v1895_v60 }
0x3296   : > { %v1897_v20 = vsel %vm1896_vm4, %v1894_v9, %v1895_v60 }
0x3297   : > { %3004 = vpush %v1897_v20 }
0x32c8   : > { %s3005_s6 = spop %3004 }
0x32c9   : > { %v1899_v12 = vstv %s3005_s6  ;;  %s1901_s7 = sand.u32 127, %s3005_s6 }
0x32ca   : > { %vm1900_vm6 = vcmp.eq.s32.totalorder %v1873_v1, %v1899_v12  ;;  %s1904_s8 = scalar_lea.vmem [#allocation2], %s1901_s7 }
0x32cb   : > { %v4034_v21 = vsel %vm1900_vm6, %v1869_v62, %v1865_v58  ;;  %v1905_v22 = vld [vmem:[%s1904_s8] sm:$0x1]  ;;  %vm4043_vm7 = vmor %vm1866_vm15, %vm1900_vm6 }
0x32cc   : > { %v4036_v23 = vmin.f32 %v1869_v62, %v1905_v22 }
0x32ce   : > { %v1907_v25 = vsel %vm4043_vm7, inf, %v4036_v23 }
0x32cf   : > { %v1909_v26 = vand.u32 4294967168, %v1907_v25 }
0x32d1   : > { %v1910_v27 = vor.u32 %v1909_v26, %v3236_v61 }
0x32d3   : > { %v1911_v28 = vsel %vm430_vm5, %v1910_v27, 2147483647 }
0x32d4   : > { %v1913_v29 = vshra.s32 %v1911_v28, 16  ;;  %v1912_v31 = vand.u32 65535, %v1911_v28 }
0x32d6   : > { %v1915_v30 = vcvt.s32.f32 %v1913_v29  ;;  %v1914_v33 = vcvt.s32.f32 %v1912_v31 }
0x32d8   : > { %1916 = vmin.xlane.f32.xlu1 %v1915_v30 }
0x334b   : > { %v1917_v32 = vpop.xlane.xlu1 %1916 }
0x334c   : > { %vm1918_vm8 = vcmp.eq.f32.partialorder %v1915_v30, %v1917_v32  ;;  %v1923_v35 = vcvt.f32.s32 %v1917_v32 }
0x334d   : > { %v1919_v34 = vsel %vm1918_vm8, %v1914_v33, inf }
0x334e   : > { %1920 = vmin.xlane.f32.xlu2 %v1919_v34  ;;  %v1924_v37 = vshll.u32 %v1923_v35, 16 }
0x33c1   : > { %v1921_v36 = vpop.xlane.xlu2 %1920 }
0x33c2   : > { %v1922_v38 = vcvt.f32.s32 %v1921_v36 }
0x33c4   : > { %v1925_v39 = vadd.s32 %v1924_v37, %v1922_v38 }
0x33c6   : > { %v1926_v40 = vrot.slane %v1925_v39, 4 }
0x33c8   : > { %vm1927_vm9 = vcmp.lt.s32.totalorder %v1925_v39, %v1926_v40 }
0x33c9   : > { %v1928_v41 = vsel %vm1927_vm9, %v1925_v39, %v1926_v40 }
0x33ca   : > { %v1929_v42 = vrot.slane %v1928_v41, 2 }
0x33cc   : > { %vm1930_vm10 = vcmp.lt.s32.totalorder %v1928_v41, %v1929_v42 }
0x33cd   : > { %v1931_v43 = vsel %vm1930_vm10, %v1928_v41, %v1929_v42 }
0x33ce   : > { %v1932_v44 = vrot.slane %v1931_v43, 1 }
0x33d0   : > { %vm1933_vm11 = vcmp.lt.s32.totalorder %v1931_v43, %v1932_v44 }
0x33d1   : > { %v1934_v7 = vsel %vm1933_vm11, %v1931_v43, %v1932_v44 }
0x33d2   : > { %3006 = vpush %v1934_v7 }
0x3403   : > { %s3007_s11 = spop %3006 }
0x3404   : > { %v1936_v45 = vstv %s3007_s11  ;;  %s1938_s12 = sand.u32 127, %s3007_s11 }
0x3405   : > { %vm4052_vm12 = vcmp.eq.s32.totalorder %v1910_v27, %v1936_v45  ;;  %s1941_s13 = scalar_lea.vmem [#allocation2], %s1938_s12 }
0x3406   : > { %v1939_v47 = vsel %vm4052_vm12, %v4036_v23, %v4034_v21  ;;  %v1942_v48 = vld [vmem:[%s1941_s13] sm:$0x1]  ;;  %vm1940_vm13 = vmor %vm4043_vm7, %vm4052_vm12 }
0x3407   : > { %v1943_v49 = vmin.f32 %v4036_v23, %v1942_v48 }
0x3409   : > { %v1944_v5 = vsel %vm1940_vm13, inf, %v1943_v49 }
0x340a   : > { %v1946_v50 = vand.u32 4294967168, %v1944_v5 }
0x340c   : > { %v1947_v51 = vor.u32 %v1946_v50, %v3236_v61 }
0x340e   : > { %v1948_v52 = vsel %vm430_vm5, %v1947_v51, 2147483647 }
0x340f   : > { %v1950_v54 = vshra.s32 %v1948_v52, 16  ;;  %v1949_v56 = vand.u32 65535, %v1948_v52 }
0x3411   : > { %v1952_v55 = vcvt.s32.f32 %v1950_v54  ;;  %v1951_v58 = vcvt.s32.f32 %v1949_v56 }
0x3413   : > { %1953 = vmin.xlane.f32.xlu0 %v1952_v55 }
0x3486   : > { %v1954_v57 = vpop.xlane.xlu0 %1953 }
0x3487   : > { %vm1955_vm14 = vcmp.eq.f32.partialorder %v1952_v55, %v1954_v57  ;;  %v1960_v62 = vcvt.f32.s32 %v1954_v57 }
0x3488   : > { %v1956_v59 = vsel %vm1955_vm14, %v1951_v58, inf }
0x3489   : > { %1957 = vmin.xlane.f32.xlu1 %v1956_v59  ;;  %v1961_v0 = vshll.u32 %v1960_v62, 16 }
0x34fc   : > { %v1958_v63 = vpop.xlane.xlu1 %1957 }
0x34fd   : > { %v1959_v1 = vcvt.f32.s32 %v1958_v63 }
0x34ff   : > { %v1962_v53 = vadd.s32 %v1961_v0, %v1959_v1 }
0x3501   : > { %v1963_v2 = vrot.slane %v1962_v53, 4 }
0x3503   : > { %vm1964_vm15 = vcmp.lt.s32.totalorder %v1962_v53, %v1963_v2 }
0x3504   : > { %v1965_v3 = vsel %vm1964_vm15, %v1962_v53, %v1963_v2 }
0x3505   : > { %v1966_v4 = vrot.slane %v1965_v3, 2 }
0x3507   : > { %vm1967_vm0 = vcmp.lt.s32.totalorder %v1965_v3, %v1966_v4 }
0x3508   : > { %v1968_v6 = vsel %vm1967_vm0, %v1965_v3, %v1966_v4 }
0x3509   : > { %v1969_v10 = vrot.slane %v1968_v6, 1 }
0x350b   : > { %vm1970_vm2 = vcmp.lt.s32.totalorder %v1968_v6, %v1969_v10 }
0x350c   : > { %v1971_v11 = vsel %vm1970_vm2, %v1968_v6, %v1969_v10 }
0x350d   : > { %3008 = vpush %v1971_v11 }
0x353e   : > { %s3009_s14 = spop %3008 }
0x353f   : > { %v1973_v13 = vstv %s3009_s14  ;;  %s1975_s15 = sand.u32 127, %s3009_s14 }
0x3540   : > { %vm1974_vm3 = vcmp.eq.s32.totalorder %v1947_v51, %v1973_v13  ;;  %s1978_s16 = scalar_lea.vmem [#allocation2], %s1975_s15 }
0x3541   : > { %v4072_v14 = vsel %vm1974_vm3, %v1943_v49, %v1939_v47  ;;  %v1979_v8 = vld [vmem:[%s1978_s16] sm:$0x1]  ;;  %vm4081_vm4 = vmor %vm1940_vm13, %vm1974_vm3 }
0x3542   : > { %v4074_v15 = vmin.f32 %v1943_v49, %v1979_v8 }
0x3544   : > { %v1981_v17 = vsel %vm4081_vm4, inf, %v4074_v15 }
0x3545   : > { %v1983_v18 = vand.u32 4294967168, %v1981_v17 }
0x3547   : > { %v1984_v19 = vor.u32 %v1983_v18, %v3236_v61 }
0x3549   : > { %v1985_v9 = vsel %vm430_vm5, %v1984_v19, 2147483647 }
0x354a   : > { %v1987_v60 = vshra.s32 %v1985_v9, 16  ;;  %v1986_v12 = vand.u32 65535, %v1985_v9 }
0x354c   : > { %v1989_v20 = vcvt.s32.f32 %v1987_v60  ;;  %v1988_v22 = vcvt.s32.f32 %v1986_v12 }
0x354e   : > { %1990 = vmin.xlane.f32.xlu2 %v1989_v20 }
0x35c1   : > { %v1991_v21 = vpop.xlane.xlu2 %1990 }
0x35c2   : > { %vm1992_vm6 = vcmp.eq.f32.partialorder %v1989_v20, %v1991_v21  ;;  %v1997_v24 = vcvt.f32.s32 %v1991_v21 }
0x35c3   : > { %v1993_v23 = vsel %vm1992_vm6, %v1988_v22, inf }
0x35c4   : > { %1994 = vmin.xlane.f32.xlu0 %v1993_v23  ;;  %v1998_v26 = vshll.u32 %v1997_v24, 16 }
0x3637   : > { %v1995_v25 = vpop.xlane.xlu0 %1994 }
0x3638   : > { %v1996_v27 = vcvt.f32.s32 %v1995_v25 }
0x363a   : > { %v1999_v28 = vadd.s32 %v1998_v26, %v1996_v27 }
0x363c   : > { %v2000_v29 = vrot.slane %v1999_v28, 4 }
0x363e   : > { %vm2001_vm7 = vcmp.lt.s32.totalorder %v1999_v28, %v2000_v29 }
0x363f   : > { %v2002_v30 = vsel %vm2001_vm7, %v1999_v28, %v2000_v29 }
0x3640   : > { %v2003_v31 = vrot.slane %v2002_v30, 2 }
0x3642   : > { %vm2004_vm8 = vcmp.lt.s32.totalorder %v2002_v30, %v2003_v31 }
0x3643   : > { %v2005_v32 = vsel %vm2004_vm8, %v2002_v30, %v2003_v31 }
0x3644   : > { %v2006_v33 = vrot.slane %v2005_v32, 1 }
0x3646   : > { %vm2007_vm9 = vcmp.lt.s32.totalorder %v2005_v32, %v2006_v33 }
0x3647   : > { %v2008_v34 = vsel %vm2007_vm9, %v2005_v32, %v2006_v33 }
0x3648   : > { %3010 = vpush %v2008_v34 }
0x3679   : > { %s3011_s17 = spop %3010 }
0x367a   : > { %v2010_v35 = vstv %s3011_s17  ;;  %s2012_s18 = sand.u32 127, %s3011_s17 }
0x367b   : > { %vm4090_vm10 = vcmp.eq.s32.totalorder %v1984_v19, %v2010_v35  ;;  %s2015_s19 = scalar_lea.vmem [#allocation2], %s2012_s18 }
0x367c   : > { %v2013_v37 = vsel %vm4090_vm10, %v4074_v15, %v4072_v14  ;;  %v2016_v38 = vld [vmem:[%s2015_s19] sm:$0x1]  ;;  %vm2014_vm11 = vmor %vm4081_vm4, %vm4090_vm10 }
0x367d   : > { %v2017_v39 = vmin.f32 %v4074_v15, %v2016_v38 }
0x367f   : > { %v2018_v40 = vsel %vm2014_vm11, inf, %v2017_v39 }
0x3680   : > { %v2020_v41 = vand.u32 4294967168, %v2018_v40 }
0x3682   : > { %v2021_v42 = vor.u32 %v2020_v41, %v3236_v61 }
0x3684   : > { %v2022_v43 = vsel %vm430_vm5, %v2021_v42, 2147483647 }
0x3685   : > { %v2024_v44 = vshra.s32 %v2022_v43, 16  ;;  %v2023_v45 = vand.u32 65535, %v2022_v43 }
0x3687   : > { %v2026_v7 = vcvt.s32.f32 %v2024_v44  ;;  %v2025_v47 = vcvt.s32.f32 %v2023_v45 }
0x3689   : > { %2027 = vmin.xlane.f32.xlu1 %v2026_v7 }
0x36fc   : > { %v2028_v46 = vpop.xlane.xlu1 %2027 }
0x36fd   : > { %vm2029_vm12 = vcmp.eq.f32.partialorder %v2026_v7, %v2028_v46  ;;  %v2034_v49 = vcvt.f32.s32 %v2028_v46 }
0x36fe   : > { %v2030_v48 = vsel %vm2029_vm12, %v2025_v47, inf }
0x36ff   : > { %2031 = vmin.xlane.f32.xlu2 %v2030_v48  ;;  %v2035_v50 = vshll.u32 %v2034_v49, 16 }
0x3772   : > { %v2032_v5 = vpop.xlane.xlu2 %2031 }
0x3773   : > { %v2033_v51 = vcvt.f32.s32 %v2032_v5 }
0x3775   : > { %v2036_v52 = vadd.s32 %v2035_v50, %v2033_v51 }
0x3777   : > { %v2037_v54 = vrot.slane %v2036_v52, 4 }
0x3779   : > { %vm2038_vm13 = vcmp.lt.s32.totalorder %v2036_v52, %v2037_v54 }
0x377a   : > { %v2039_v55 = vsel %vm2038_vm13, %v2036_v52, %v2037_v54 }
0x377b   : > { %v2040_v56 = vrot.slane %v2039_v55, 2 }
0x377d   : > { %vm2041_vm14 = vcmp.lt.s32.totalorder %v2039_v55, %v2040_v56 }
0x377e   : > { %v2042_v57 = vsel %vm2041_vm14, %v2039_v55, %v2040_v56 }
0x377f   : > { %v2043_v58 = vrot.slane %v2042_v57, 1 }
0x3781   : > { %vm2044_vm15 = vcmp.lt.s32.totalorder %v2042_v57, %v2043_v58 }
0x3782   : > { %v2045_v59 = vsel %vm2044_vm15, %v2042_v57, %v2043_v58 }
0x3783   : > { %3012 = vpush %v2045_v59 }
0x37b4   : > { %s3013_s20 = spop %3012 }
0x37b5   : > { %v2047_v62 = vstv %s3013_s20  ;;  %s2049_s21 = sand.u32 127, %s3013_s20 }
0x37b6   : > { %vm2048_vm0 = vcmp.eq.s32.totalorder %v2021_v42, %v2047_v62  ;;  %s2052_s22 = scalar_lea.vmem [#allocation2], %s2049_s21 }
0x37b7   : > { %v4110_v63 = vsel %vm2048_vm0, %v2017_v39, %v2013_v37  ;;  %v2053_v0 = vld [vmem:[%s2052_s22] sm:$0x1]  ;;  %vm4119_vm2 = vmor %vm2014_vm11, %vm2048_vm0 }
0x37b8   : > { %v4112_v1 = vmin.f32 %v2017_v39, %v2053_v0 }
0x37ba   : > { %v2055_v2 = vsel %vm4119_vm2, inf, %v4112_v1 }
0x37bb   : > { %v2057_v3 = vand.u32 4294967168, %v2055_v2 }
0x37bd   : > { %v2058_v4 = vor.u32 %v2057_v3, %v3236_v61 }
0x37bf   : > { %v2059_v6 = vsel %vm430_vm5, %v2058_v4, 2147483647 }
0x37c0   : > { %v2061_v10 = vshra.s32 %v2059_v6, 16  ;;  %v2060_v13 = vand.u32 65535, %v2059_v6 }
0x37c2   : > { %v2063_v11 = vcvt.s32.f32 %v2061_v10  ;;  %v2062_v8 = vcvt.s32.f32 %v2060_v13 }
0x37c4   : > { %2064 = vmin.xlane.f32.xlu0 %v2063_v11 }
0x3837   : > { %v2065_v14 = vpop.xlane.xlu0 %2064 }
0x3838   : > { %vm2066_vm3 = vcmp.eq.f32.partialorder %v2063_v11, %v2065_v14  ;;  %v2071_v16 = vcvt.f32.s32 %v2065_v14 }
0x3839   : > { %v2067_v15 = vsel %vm2066_vm3, %v2062_v8, inf }
0x383a   : > { %2068 = vmin.xlane.f32.xlu1 %v2067_v15  ;;  %v2072_v18 = vshll.u32 %v2071_v16, 16 }
0x38ad   : > { %v2069_v17 = vpop.xlane.xlu1 %2068 }
0x38ae   : > { %v2070_v19 = vcvt.f32.s32 %v2069_v17 }
0x38b0   : > { %v2073_v9 = vadd.s32 %v2072_v18, %v2070_v19 }
0x38b2   : > { %v2074_v60 = vrot.slane %v2073_v9, 4 }
0x38b4   : > { %vm2075_vm4 = vcmp.lt.s32.totalorder %v2073_v9, %v2074_v60 }
0x38b5   : > { %v2076_v20 = vsel %vm2075_vm4, %v2073_v9, %v2074_v60 }
0x38b6   : > { %v2077_v12 = vrot.slane %v2076_v20, 2 }
0x38b8   : > { %vm2078_vm6 = vcmp.lt.s32.totalorder %v2076_v20, %v2077_v12 }
0x38b9   : > { %v2079_v21 = vsel %vm2078_vm6, %v2076_v20, %v2077_v12 }
0x38ba   : > { %v2080_v22 = vrot.slane %v2079_v21, 1 }
0x38bc   : > { %vm2081_vm7 = vcmp.lt.s32.totalorder %v2079_v21, %v2080_v22 }
0x38bd   : > { %v2082_v23 = vsel %vm2081_vm7, %v2079_v21, %v2080_v22 }
0x38be   : > { %3014 = vpush %v2082_v23 }
0x38ef   : > { %s3015_s23 = spop %3014 }
0x38f0   : > { %v2084_v24 = vstv %s3015_s23  ;;  %s2086_s24 = sand.u32 127, %s3015_s23 }
0x38f1   : > { %vm4128_vm8 = vcmp.eq.s32.totalorder %v2058_v4, %v2084_v24  ;;  %s2089_s25 = scalar_lea.vmem [#allocation2], %s2086_s24 }
0x38f2   : > { %v2087_v26 = vsel %vm4128_vm8, %v4112_v1, %v4110_v63  ;;  %v2090_v27 = vld [vmem:[%s2089_s25] sm:$0x1]  ;;  %vm2088_vm9 = vmor %vm4119_vm2, %vm4128_vm8 }
0x38f3   : > { %v2091_v28 = vmin.f32 %v4112_v1, %v2090_v27 }
0x38f5   : > { %v2092_v29 = vsel %vm2088_vm9, inf, %v2091_v28 }
0x38f6   : > { %v2094_v30 = vand.u32 4294967168, %v2092_v29 }
0x38f8   : > { %v2095_v31 = vor.u32 %v2094_v30, %v3236_v61 }
0x38fa   : > { %v2096_v32 = vsel %vm430_vm5, %v2095_v31, 2147483647 }
0x38fb   : > { %v2098_v33 = vshra.s32 %v2096_v32, 16  ;;  %v2097_v35 = vand.u32 65535, %v2096_v32 }
0x38fd   : > { %v2100_v34 = vcvt.s32.f32 %v2098_v33  ;;  %v2099_v37 = vcvt.s32.f32 %v2097_v35 }
0x38ff   : > { %2101 = vmin.xlane.f32.xlu2 %v2100_v34 }
0x3972   : > { %v2102_v36 = vpop.xlane.xlu2 %2101 }
0x3973   : > { %vm2103_vm10 = vcmp.eq.f32.partialorder %v2100_v34, %v2102_v36  ;;  %v2108_v39 = vcvt.f32.s32 %v2102_v36 }
0x3974   : > { %v2104_v38 = vsel %vm2103_vm10, %v2099_v37, inf }
0x3975   : > { %2105 = vmin.xlane.f32.xlu0 %v2104_v38  ;;  %v2109_v41 = vshll.u32 %v2108_v39, 16 }
0x39e8   : > { %v2106_v40 = vpop.xlane.xlu0 %2105 }
0x39e9   : > { %v2107_v42 = vcvt.f32.s32 %v2106_v40 }
0x39eb   : > { %v2110_v43 = vadd.s32 %v2109_v41, %v2107_v42 }
0x39ed   : > { %v2111_v44 = vrot.slane %v2110_v43, 4 }
0x39ef   : > { %vm2112_vm11 = vcmp.lt.s32.totalorder %v2110_v43, %v2111_v44 }
0x39f0   : > { %v2113_v7 = vsel %vm2112_vm11, %v2110_v43, %v2111_v44 }
0x39f1   : > { %v2114_v45 = vrot.slane %v2113_v7, 2 }
0x39f3   : > { %vm2115_vm12 = vcmp.lt.s32.totalorder %v2113_v7, %v2114_v45 }
0x39f4   : > { %v2116_v46 = vsel %vm2115_vm12, %v2113_v7, %v2114_v45 }
0x39f5   : > { %v2117_v47 = vrot.slane %v2116_v46, 1 }
0x39f7   : > { %vm2118_vm13 = vcmp.lt.s32.totalorder %v2116_v46, %v2117_v47 }
0x39f8   : > { %v2119_v48 = vsel %vm2118_vm13, %v2116_v46, %v2117_v47 }
0x39f9   : > { %3016 = vpush %v2119_v48 }
0x3a2a   : > { %s3017_s26 = spop %3016 }
0x3a2b   : > { %v2121_v49 = vstv %s3017_s26  ;;  %s2123_s27 = sand.u32 127, %s3017_s26 }
0x3a2c   : > { %vm2122_vm14 = vcmp.eq.s32.totalorder %v2095_v31, %v2121_v49  ;;  %s2126_s28 = scalar_lea.vmem [#allocation2], %s2123_s27 }
0x3a2d   : > { %v4148_v5 = vsel %vm2122_vm14, %v2091_v28, %v2087_v26  ;;  %v2127_v50 = vld [vmem:[%s2126_s28] sm:$0x1]  ;;  %vm4157_vm15 = vmor %vm2088_vm9, %vm2122_vm14 }
0x3a2e   : > { %v4150_v51 = vmin.f32 %v2091_v28, %v2127_v50 }
0x3a30   : > { %v2129_v54 = vsel %vm4157_vm15, inf, %v4150_v51 }
0x3a31   : > { %v2131_v55 = vand.u32 4294967168, %v2129_v54 }
0x3a33   : > { %v2132_v56 = vor.u32 %v2131_v55, %v3236_v61 }
0x3a35   : > { %v2133_v57 = vsel %vm430_vm5, %v2132_v56, 2147483647 }
0x3a36   : > { %v2135_v58 = vshra.s32 %v2133_v57, 16  ;;  %v2134_v62 = vand.u32 65535, %v2133_v57 }
0x3a38   : > { %v2137_v59 = vcvt.s32.f32 %v2135_v58  ;;  %v2136_v0 = vcvt.s32.f32 %v2134_v62 }
0x3a3a   : > { %2138 = vmin.xlane.f32.xlu1 %v2137_v59 }
0x3aad   : > { %v2139_v63 = vpop.xlane.xlu1 %2138 }
0x3aae   : > { %vm2140_vm0 = vcmp.eq.f32.partialorder %v2137_v59, %v2139_v63  ;;  %v2145_v53 = vcvt.f32.s32 %v2139_v63 }
0x3aaf   : > { %v2141_v1 = vsel %vm2140_vm0, %v2136_v0, inf }
0x3ab0   : > { %2142 = vmin.xlane.f32.xlu2 %v2141_v1  ;;  %v2146_v3 = vshll.u32 %v2145_v53, 16 }
0x3b23   : > { %v2143_v2 = vpop.xlane.xlu2 %2142 }
0x3b24   : > { %v2144_v4 = vcvt.f32.s32 %v2143_v2 }
0x3b26   : > { %v2147_v6 = vadd.s32 %v2146_v3, %v2144_v4 }
0x3b28   : > { %v2148_v10 = vrot.slane %v2147_v6, 4 }
0x3b2a   : > { %vm2149_vm2 = vcmp.lt.s32.totalorder %v2147_v6, %v2148_v10 }
0x3b2b   : > { %v2150_v11 = vsel %vm2149_vm2, %v2147_v6, %v2148_v10 }
0x3b2c   : > { %v2151_v13 = vrot.slane %v2150_v11, 2 }
0x3b2e   : > { %vm2152_vm3 = vcmp.lt.s32.totalorder %v2150_v11, %v2151_v13 }
0x3b2f   : > { %v2153_v14 = vsel %vm2152_vm3, %v2150_v11, %v2151_v13 }
0x3b30   : > { %v2154_v8 = vrot.slane %v2153_v14, 1 }
0x3b32   : > { %vm2155_vm4 = vcmp.lt.s32.totalorder %v2153_v14, %v2154_v8 }
0x3b33   : > { %v2156_v15 = vsel %vm2155_vm4, %v2153_v14, %v2154_v8 }
0x3b34   : > { %3018 = vpush %v2156_v15 }
0x3b65   : > { %s3019_s29 = spop %3018 }
0x3b66   : > { %v2158_v16 = vstv %s3019_s29  ;;  %s2160_s30 = sand.u32 127, %s3019_s29 }
0x3b67   : > { %vm4166_vm6 = vcmp.eq.s32.totalorder %v2132_v56, %v2158_v16  ;;  %s2163_s3 = scalar_lea.vmem [#allocation2], %s2160_s30 }
0x3b68   : > { %v2161_v18 = vsel %vm4166_vm6, %v4150_v51, %v4148_v5  ;;  %v2164_v19 = vld [vmem:[%s2163_s3] sm:$0x1]  ;;  %vm2162_vm7 = vmor %vm4157_vm15, %vm4166_vm6 }
0x3b69   : > { %v2165_v9 = vmin.f32 %v4150_v51, %v2164_v19 }
0x3b6b   : > { %v2166_v60 = vsel %vm2162_vm7, inf, %v2165_v9 }
0x3b6c   : > { %v2168_v20 = vand.u32 4294967168, %v2166_v60 }
0x3b6e   : > { %v2169_v12 = vor.u32 %v2168_v20, %v3236_v61 }
0x3b70   : > { %v2170_v21 = vsel %vm430_vm5, %v2169_v12, 2147483647 }
0x3b71   : > { %v2172_v22 = vshra.s32 %v2170_v21, 16  ;;  %v2171_v24 = vand.u32 65535, %v2170_v21 }
0x3b73   : > { %v2174_v23 = vcvt.s32.f32 %v2172_v22  ;;  %v2173_v26 = vcvt.s32.f32 %v2171_v24 }
0x3b75   : > { %2175 = vmin.xlane.f32.xlu0 %v2174_v23 }
0x3be8   : > { %v2176_v25 = vpop.xlane.xlu0 %2175 }
0x3be9   : > { %vm2177_vm8 = vcmp.eq.f32.partialorder %v2174_v23, %v2176_v25  ;;  %v2182_v28 = vcvt.f32.s32 %v2176_v25 }
0x3bea   : > { %v2178_v27 = vsel %vm2177_vm8, %v2173_v26, inf }
0x3beb   : > { %2179 = vmin.xlane.f32.xlu1 %v2178_v27  ;;  %v2183_v30 = vshll.u32 %v2182_v28, 16 }
0x3c5e   : > { %v2180_v29 = vpop.xlane.xlu1 %2179 }
0x3c5f   : > { %v2181_v31 = vcvt.f32.s32 %v2180_v29 }
0x3c61   : > { %v2184_v32 = vadd.s32 %v2183_v30, %v2181_v31 }
0x3c63   : > { %v2185_v33 = vrot.slane %v2184_v32, 4 }
0x3c65   : > { %vm2186_vm9 = vcmp.lt.s32.totalorder %v2184_v32, %v2185_v33 }
0x3c66   : > { %v2187_v34 = vsel %vm2186_vm9, %v2184_v32, %v2185_v33 }
0x3c67   : > { %v2188_v35 = vrot.slane %v2187_v34, 2 }
0x3c69   : > { %vm2189_vm10 = vcmp.lt.s32.totalorder %v2187_v34, %v2188_v35 }
0x3c6a   : > { %v2190_v36 = vsel %vm2189_vm10, %v2187_v34, %v2188_v35 }
0x3c6b   : > { %v2191_v37 = vrot.slane %v2190_v36, 1 }
0x3c6d   : > { %vm2192_vm11 = vcmp.lt.s32.totalorder %v2190_v36, %v2191_v37 }
0x3c6e   : > { %v2193_v38 = vsel %vm2192_vm11, %v2190_v36, %v2191_v37 }
0x3c6f   : > { %3020 = vpush %v2193_v38 }
0x3ca0   : > { %s3021_s4 = spop %3020 }
0x3ca1   : > { %v2195_v39 = vstv %s3021_s4  ;;  %s2197_s5 = sand.u32 127, %s3021_s4 }
0x3ca2   : > { %vm2196_vm12 = vcmp.eq.s32.totalorder %v2169_v12, %v2195_v39  ;;  %s2200_s6 = scalar_lea.vmem [#allocation2], %s2197_s5 }
0x3ca3   : > { %v4186_v40 = vsel %vm2196_vm12, %v2165_v9, %v2161_v18  ;;  %v2201_v41 = vld [vmem:[%s2200_s6] sm:$0x1]  ;;  %vm4195_vm13 = vmor %vm2162_vm7, %vm2196_vm12 }
0x3ca4   : > { %v4188_v42 = vmin.f32 %v2165_v9, %v2201_v41 }
0x3ca6   : > { %v2203_v44 = vsel %vm4195_vm13, inf, %v4188_v42 }
0x3ca7   : > { %v2205_v7 = vand.u32 4294967168, %v2203_v44 }
0x3ca9   : > { %v2206_v45 = vor.u32 %v2205_v7, %v3236_v61 }
0x3cab   : > { %v2207_v46 = vsel %vm430_vm5, %v2206_v45, 2147483647 }
0x3cac   : > { %v2209_v47 = vshra.s32 %v2207_v46, 16  ;;  %v2208_v49 = vand.u32 65535, %v2207_v46 }
0x3cae   : > { %v2211_v48 = vcvt.s32.f32 %v2209_v47  ;;  %v2210_v50 = vcvt.s32.f32 %v2208_v49 }
0x3cb0   : > { %2212 = vmin.xlane.f32.xlu2 %v2211_v48 }
0x3d23   : > { %v2213_v5 = vpop.xlane.xlu2 %2212 }
0x3d24   : > { %vm2214_vm14 = vcmp.eq.f32.partialorder %v2211_v48, %v2213_v5  ;;  %v2219_v52 = vcvt.f32.s32 %v2213_v5 }
0x3d25   : > { %v2215_v51 = vsel %vm2214_vm14, %v2210_v50, inf }
0x3d26   : > { %2216 = vmin.xlane.f32.xlu0 %v2215_v51  ;;  %v2220_v55 = vshll.u32 %v2219_v52, 16 }
0x3d99   : > { %v2217_v54 = vpop.xlane.xlu0 %2216 }
0x3d9a   : > { %v2218_v56 = vcvt.f32.s32 %v2217_v54 }
0x3d9c   : > { %v2221_v57 = vadd.s32 %v2220_v55, %v2218_v56 }
0x3d9e   : > { %v2222_v58 = vrot.slane %v2221_v57, 4 }
0x3da0   : > { %vm2223_vm15 = vcmp.lt.s32.totalorder %v2221_v57, %v2222_v58 }
0x3da1   : > { %v2224_v59 = vsel %vm2223_vm15, %v2221_v57, %v2222_v58 }
0x3da2   : > { %v2225_v62 = vrot.slane %v2224_v59, 2 }
0x3da4   : > { %vm2226_vm0 = vcmp.lt.s32.totalorder %v2224_v59, %v2225_v62 }
0x3da5   : > { %v2227_v63 = vsel %vm2226_vm0, %v2224_v59, %v2225_v62 }
0x3da6   : > { %v2228_v0 = vrot.slane %v2227_v63, 1 }
0x3da8   : > { %vm2229_vm2 = vcmp.lt.s32.totalorder %v2227_v63, %v2228_v0 }
0x3da9   : > { %v2230_v1 = vsel %vm2229_vm2, %v2227_v63, %v2228_v0 }
0x3daa   : > { %3022 = vpush %v2230_v1 }
0x3ddb   : > { %s3023_s7 = spop %3022 }
0x3ddc   : > { %v2232_v53 = vstv %s3023_s7  ;;  %s2234_s8 = sand.u32 127, %s3023_s7 }
0x3ddd   : > { %vm4204_vm3 = vcmp.eq.s32.totalorder %v2206_v45, %v2232_v53  ;;  %s2237_s11 = scalar_lea.vmem [#allocation2], %s2234_s8 }
0x3dde   : > { %v2235_v3 = vsel %vm4204_vm3, %v4188_v42, %v4186_v40  ;;  %v2238_v4 = vld [vmem:[%s2237_s11] sm:$0x1]  ;;  %vm2236_vm4 = vmor %vm4195_vm13, %vm4204_vm3 }
0x3ddf   : > { %v2239_v6 = vmin.f32 %v4188_v42, %v2238_v4 }
0x3de1   : > { %v2240_v10 = vsel %vm2236_vm4, inf, %v2239_v6 }
0x3de2   : > { %v2242_v11 = vand.u32 4294967168, %v2240_v10 }
0x3de4   : > { %v2243_v13 = vor.u32 %v2242_v11, %v3236_v61 }
0x3de6   : > { %v2244_v14 = vsel %vm430_vm5, %v2243_v13, 2147483647 }
0x3de7   : > { %v2246_v8 = vshra.s32 %v2244_v14, 16  ;;  %v2245_v16 = vand.u32 65535, %v2244_v14 }
0x3de9   : > { %v2248_v15 = vcvt.s32.f32 %v2246_v8  ;;  %v2247_v18 = vcvt.s32.f32 %v2245_v16 }
0x3deb   : > { %2249 = vmin.xlane.f32.xlu1 %v2248_v15 }
0x3e5e   : > { %v2250_v17 = vpop.xlane.xlu1 %2249 }
0x3e5f   : > { %vm2251_vm6 = vcmp.eq.f32.partialorder %v2248_v15, %v2250_v17  ;;  %v2256_v9 = vcvt.f32.s32 %v2250_v17 }
0x3e60   : > { %v2252_v19 = vsel %vm2251_vm6, %v2247_v18, inf }
0x3e61   : > { %2253 = vmin.xlane.f32.xlu2 %v2252_v19  ;;  %v2257_v20 = vshll.u32 %v2256_v9, 16 }
0x3ed4   : > { %v2254_v60 = vpop.xlane.xlu2 %2253 }
0x3ed5   : > { %v2255_v12 = vcvt.f32.s32 %v2254_v60 }
0x3ed7   : > { %v2258_v21 = vadd.s32 %v2257_v20, %v2255_v12 }
0x3ed9   : > { %v2259_v22 = vrot.slane %v2258_v21, 4 }
0x3edb   : > { %vm2260_vm7 = vcmp.lt.s32.totalorder %v2258_v21, %v2259_v22 }
0x3edc   : > { %v2261_v23 = vsel %vm2260_vm7, %v2258_v21, %v2259_v22 }
0x3edd   : > { %v2262_v24 = vrot.slane %v2261_v23, 2 }
0x3edf   : > { %vm2263_vm8 = vcmp.lt.s32.totalorder %v2261_v23, %v2262_v24 }
0x3ee0   : > { %v2264_v25 = vsel %vm2263_vm8, %v2261_v23, %v2262_v24 }
0x3ee1   : > { %v2265_v26 = vrot.slane %v2264_v25, 1 }
0x3ee3   : > { %vm2266_vm9 = vcmp.lt.s32.totalorder %v2264_v25, %v2265_v26 }
0x3ee4   : > { %v2267_v27 = vsel %vm2266_vm9, %v2264_v25, %v2265_v26 }
0x3ee5   : > { %3024 = vpush %v2267_v27 }
0x3f16   : > { %s3025_s12 = spop %3024 }
0x3f17   : > { %v2269_v28 = vstv %s3025_s12  ;;  %s2271_s13 = sand.u32 127, %s3025_s12 }
0x3f18   : > { %vm2270_vm10 = vcmp.eq.s32.totalorder %v2243_v13, %v2269_v28  ;;  %s2274_s14 = scalar_lea.vmem [#allocation2], %s2271_s13 }
0x3f19   : > { %v4224_v29 = vsel %vm2270_vm10, %v2239_v6, %v2235_v3  ;;  %v2275_v30 = vld [vmem:[%s2274_s14] sm:$0x1]  ;;  %vm4233_vm11 = vmor %vm2236_vm4, %vm2270_vm10 }
0x3f1a   : > { %v4226_v31 = vmin.f32 %v2239_v6, %v2275_v30 }
0x3f1c   : > { %v2277_v33 = vsel %vm4233_vm11, inf, %v4226_v31 }
0x3f1d   : > { %v2279_v34 = vand.u32 4294967168, %v2277_v33 }
0x3f1f   : > { %v2280_v35 = vor.u32 %v2279_v34, %v3236_v61 }
0x3f21   : > { %v2281_v36 = vsel %vm430_vm5, %v2280_v35, 2147483647 }
0x3f22   : > { %v2283_v37 = vshra.s32 %v2281_v36, 16  ;;  %v2282_v39 = vand.u32 65535, %v2281_v36 }
0x3f24   : > { %v2285_v38 = vcvt.s32.f32 %v2283_v37  ;;  %v2284_v41 = vcvt.s32.f32 %v2282_v39 }
0x3f26   : > { %2286 = vmin.xlane.f32.xlu0 %v2285_v38 }
0x3f99   : > { %v2287_v40 = vpop.xlane.xlu0 %2286 }
0x3f9a   : > { %vm2288_vm12 = vcmp.eq.f32.partialorder %v2285_v38, %v2287_v40  ;;  %v2293_v43 = vcvt.f32.s32 %v2287_v40 }
0x3f9b   : > { %v2289_v42 = vsel %vm2288_vm12, %v2284_v41, inf }
0x3f9c   : > { %2290 = vmin.xlane.f32.xlu1 %v2289_v42  ;;  %v2294_v7 = vshll.u32 %v2293_v43, 16 }
0x400f   : > { %v2291_v44 = vpop.xlane.xlu1 %2290 }
0x4010   : > { %v2292_v45 = vcvt.f32.s32 %v2291_v44 }
0x4012   : > { %v2295_v46 = vadd.s32 %v2294_v7, %v2292_v45 }
0x4014   : > { %v2296_v47 = vrot.slane %v2295_v46, 4 }
0x4016   : > { %vm2297_vm13 = vcmp.lt.s32.totalorder %v2295_v46, %v2296_v47 }
0x4017   : > { %v2298_v48 = vsel %vm2297_vm13, %v2295_v46, %v2296_v47 }
0x4018   : > { %v2299_v49 = vrot.slane %v2298_v48, 2 }
0x401a   : > { %vm2300_vm14 = vcmp.lt.s32.totalorder %v2298_v48, %v2299_v49 }
0x401b   : > { %v2301_v5 = vsel %vm2300_vm14, %v2298_v48, %v2299_v49 }
0x401c   : > { %v2302_v50 = vrot.slane %v2301_v5, 1 }
0x401e   : > { %vm2303_vm15 = vcmp.lt.s32.totalorder %v2301_v5, %v2302_v50 }
0x401f   : > { %v2304_v51 = vsel %vm2303_vm15, %v2301_v5, %v2302_v50 }
0x4020   : > { %3026 = vpush %v2304_v51 }
0x4051   : > { %s3027_s15 = spop %3026 }
0x4052   : > { %v2306_v52 = vstv %s3027_s15  ;;  %s2308_s16 = sand.u32 127, %s3027_s15 }
0x4053   : > { %vm4242_vm0 = vcmp.eq.s32.totalorder %v2280_v35, %v2306_v52  ;;  %s2311_s17 = scalar_lea.vmem [#allocation2], %s2308_s16 }
0x4054   : > { %v2309_v55 = vsel %vm4242_vm0, %v4226_v31, %v4224_v29  ;;  %v2312_v56 = vld [vmem:[%s2311_s17] sm:$0x1]  ;;  %vm2310_vm2 = vmor %vm4233_vm11, %vm4242_vm0 }
0x4055   : > { %v2313_v57 = vmin.f32 %v4226_v31, %v2312_v56 }
0x4057   : > { %v2314_v58 = vsel %vm2310_vm2, inf, %v2313_v57 }
0x4058   : > { %v2316_v59 = vand.u32 4294967168, %v2314_v58 }
0x405a   : > { %v2317_v62 = vor.u32 %v2316_v59, %v3236_v61 }
0x405c   : > { %v2318_v63 = vsel %vm430_vm5, %v2317_v62, 2147483647 }
0x405d   : > { %v2320_v0 = vshra.s32 %v2318_v63, 16  ;;  %v2319_v53 = vand.u32 65535, %v2318_v63 }
0x405f   : > { %v2322_v1 = vcvt.s32.f32 %v2320_v0  ;;  %v2321_v3 = vcvt.s32.f32 %v2319_v53 }
0x4061   : > { %2323 = vmin.xlane.f32.xlu2 %v2322_v1 }
0x40d4   : > { %v2324_v2 = vpop.xlane.xlu2 %2323 }
0x40d5   : > { %vm2325_vm3 = vcmp.eq.f32.partialorder %v2322_v1, %v2324_v2  ;;  %v2330_v6 = vcvt.f32.s32 %v2324_v2 }
0x40d6   : > { %v2326_v4 = vsel %vm2325_vm3, %v2321_v3, inf }
0x40d7   : > { %2327 = vmin.xlane.f32.xlu0 %v2326_v4  ;;  %v2331_v11 = vshll.u32 %v2330_v6, 16 }
0x414a   : > { %v2328_v10 = vpop.xlane.xlu0 %2327 }
0x414b   : > { %v2329_v13 = vcvt.f32.s32 %v2328_v10 }
0x414d   : > { %v2332_v14 = vadd.s32 %v2331_v11, %v2329_v13 }
0x414f   : > { %v2333_v8 = vrot.slane %v2332_v14, 4 }
0x4151   : > { %vm2334_vm4 = vcmp.lt.s32.totalorder %v2332_v14, %v2333_v8 }
0x4152   : > { %v2335_v15 = vsel %vm2334_vm4, %v2332_v14, %v2333_v8 }
0x4153   : > { %v2336_v16 = vrot.slane %v2335_v15, 2 }
0x4155   : > { %vm2337_vm6 = vcmp.lt.s32.totalorder %v2335_v15, %v2336_v16 }
0x4156   : > { %v2338_v17 = vsel %vm2337_vm6, %v2335_v15, %v2336_v16 }
0x4157   : > { %v2339_v18 = vrot.slane %v2338_v17, 1 }
0x4159   : > { %vm2340_vm7 = vcmp.lt.s32.totalorder %v2338_v17, %v2339_v18 }
0x415a   : > { %v2341_v19 = vsel %vm2340_vm7, %v2338_v17, %v2339_v18 }
0x415b   : > { %3028 = vpush %v2341_v19 }
0x418c   : > { %s3029_s18 = spop %3028 }
0x418d   : > { %v2343_v9 = vstv %s3029_s18  ;;  %s2345_s19 = sand.u32 127, %s3029_s18 }
0x418e   : > { %vm2344_vm8 = vcmp.eq.s32.totalorder %v2317_v62, %v2343_v9  ;;  %s2348_s20 = scalar_lea.vmem [#allocation2], %s2345_s19 }
0x418f   : > { %v4262_v60 = vsel %vm2344_vm8, %v2313_v57, %v2309_v55  ;;  %v2349_v20 = vld [vmem:[%s2348_s20] sm:$0x1]  ;;  %vm4271_vm9 = vmor %vm2310_vm2, %vm2344_vm8 }
0x4190   : > { %v4264_v12 = vmin.f32 %v2313_v57, %v2349_v20 }
0x4192   : > { %v2351_v22 = vsel %vm4271_vm9, inf, %v4264_v12 }
0x4193   : > { %v2353_v23 = vand.u32 4294967168, %v2351_v22 }
0x4195   : > { %v2354_v24 = vor.u32 %v2353_v23, %v3236_v61 }
0x4197   : > { %v2355_v25 = vsel %vm430_vm5, %v2354_v24, 2147483647 }
0x4198   : > { %v2357_v26 = vshra.s32 %v2355_v25, 16  ;;  %v2356_v28 = vand.u32 65535, %v2355_v25 }
0x419a   : > { %v2359_v27 = vcvt.s32.f32 %v2357_v26  ;;  %v2358_v30 = vcvt.s32.f32 %v2356_v28 }
0x419c   : > { %2360 = vmin.xlane.f32.xlu1 %v2359_v27 }
0x420f   : > { %v2361_v29 = vpop.xlane.xlu1 %2360 }
0x4210   : > { %vm2362_vm10 = vcmp.eq.f32.partialorder %v2359_v27, %v2361_v29  ;;  %v2367_v32 = vcvt.f32.s32 %v2361_v29 }
0x4211   : > { %v2363_v31 = vsel %vm2362_vm10, %v2358_v30, inf }
0x4212   : > { %2364 = vmin.xlane.f32.xlu2 %v2363_v31  ;;  %v2368_v34 = vshll.u32 %v2367_v32, 16 }
0x4285   : > { %v2365_v33 = vpop.xlane.xlu2 %2364 }
0x4286   : > { %v2366_v35 = vcvt.f32.s32 %v2365_v33 }
0x4288   : > { %v2369_v36 = vadd.s32 %v2368_v34, %v2366_v35 }
0x428a   : > { %v2370_v37 = vrot.slane %v2369_v36, 4 }
0x428c   : > { %vm2371_vm11 = vcmp.lt.s32.totalorder %v2369_v36, %v2370_v37 }
0x428d   : > { %v2372_v38 = vsel %vm2371_vm11, %v2369_v36, %v2370_v37 }
0x428e   : > { %v2373_v39 = vrot.slane %v2372_v38, 2 }
0x4290   : > { %vm2374_vm12 = vcmp.lt.s32.totalorder %v2372_v38, %v2373_v39 }
0x4291   : > { %v2375_v40 = vsel %vm2374_vm12, %v2372_v38, %v2373_v39 }
0x4292   : > { %v2376_v41 = vrot.slane %v2375_v40, 1 }
0x4294   : > { %vm2377_vm13 = vcmp.lt.s32.totalorder %v2375_v40, %v2376_v41 }
0x4295   : > { %v2378_v42 = vsel %vm2377_vm13, %v2375_v40, %v2376_v41 }
0x4296   : > { %3030 = vpush %v2378_v42 }
0x42c7   : > { %s3031_s21 = spop %3030 }
0x42c8   : > { %v2380_v43 = vstv %s3031_s21  ;;  %s2382_s22 = sand.u32 127, %s3031_s21 }
0x42c9   : > { %vm4280_vm14 = vcmp.eq.s32.totalorder %v2354_v24, %v2380_v43  ;;  %s2385_s23 = scalar_lea.vmem [#allocation2], %s2382_s22 }
0x42ca   : > { %v2383_v7 = vsel %vm4280_vm14, %v4264_v12, %v4262_v60  ;;  %v2386_v45 = vld [vmem:[%s2385_s23] sm:$0x1]  ;;  %vm2384_vm15 = vmor %vm4271_vm9, %vm4280_vm14 }
0x42cb   : > { %v2387_v46 = vmin.f32 %v4264_v12, %v2386_v45 }
0x42cd   : > { %v2388_v47 = vsel %vm2384_vm15, inf, %v2387_v46 }
0x42ce   : > { %v2390_v48 = vand.u32 4294967168, %v2388_v47 }
0x42d0   : > { %v2391_v49 = vor.u32 %v2390_v48, %v3236_v61 }
0x42d2   : > { %v2392_v5 = vsel %vm430_vm5, %v2391_v49, 2147483647 }
0x42d3   : > { %v2394_v50 = vshra.s32 %v2392_v5, 16  ;;  %v2393_v52 = vand.u32 65535, %v2392_v5 }
0x42d5   : > { %v2396_v51 = vcvt.s32.f32 %v2394_v50  ;;  %v2395_v55 = vcvt.s32.f32 %v2393_v52 }
0x42d7   : > { %2397 = vmin.xlane.f32.xlu0 %v2396_v51 }
0x434a   : > { %v2398_v54 = vpop.xlane.xlu0 %2397 }
0x434b   : > { %vm2399_vm0 = vcmp.eq.f32.partialorder %v2396_v51, %v2398_v54  ;;  %v2404_v57 = vcvt.f32.s32 %v2398_v54 }
0x434c   : > { %v2400_v56 = vsel %vm2399_vm0, %v2395_v55, inf }
0x434d   : > { %2401 = vmin.xlane.f32.xlu1 %v2400_v56  ;;  %v2405_v59 = vshll.u32 %v2404_v57, 16 }
0x43c0   : > { %v2402_v58 = vpop.xlane.xlu1 %2401 }
0x43c1   : > { %v2403_v62 = vcvt.f32.s32 %v2402_v58 }
0x43c3   : > { %v2406_v63 = vadd.s32 %v2405_v59, %v2403_v62 }
0x43c5   : > { %v2407_v0 = vrot.slane %v2406_v63, 4 }
0x43c7   : > { %vm2408_vm2 = vcmp.lt.s32.totalorder %v2406_v63, %v2407_v0 }
0x43c8   : > { %v2409_v1 = vsel %vm2408_vm2, %v2406_v63, %v2407_v0 }
0x43c9   : > { %v2410_v53 = vrot.slane %v2409_v1, 2 }
0x43cb   : > { %vm2411_vm3 = vcmp.lt.s32.totalorder %v2409_v1, %v2410_v53 }
0x43cc   : > { %v2412_v2 = vsel %vm2411_vm3, %v2409_v1, %v2410_v53 }
0x43cd   : > { %v2413_v3 = vrot.slane %v2412_v2, 1 }
0x43cf   : > { %vm2414_vm4 = vcmp.lt.s32.totalorder %v2412_v2, %v2413_v3 }
0x43d0   : > { %v2415_v4 = vsel %vm2414_vm4, %v2412_v2, %v2413_v3 }
0x43d1   : > { %3032 = vpush %v2415_v4 }
0x4402   : > { %s3033_s24 = spop %3032 }
0x4403   : > { %v2417_v6 = vstv %s3033_s24  ;;  %s2419_s25 = sand.u32 127, %s3033_s24 }
0x4404   : > { %vm2418_vm6 = vcmp.eq.s32.totalorder %v2391_v49, %v2417_v6  ;;  %s2422_s26 = scalar_lea.vmem [#allocation2], %s2419_s25 }
0x4405   : > { %v4300_v10 = vsel %vm2418_vm6, %v2387_v46, %v2383_v7  ;;  %v2423_v11 = vld [vmem:[%s2422_s26] sm:$0x1]  ;;  %vm4309_vm7 = vmor %vm2384_vm15, %vm2418_vm6 }
0x4406   : > { %v4302_v13 = vmin.f32 %v2387_v46, %v2423_v11 }
0x4408   : > { %v2425_v8 = vsel %vm4309_vm7, inf, %v4302_v13 }
0x4409   : > { %v2427_v15 = vand.u32 4294967168, %v2425_v8 }
0x440b   : > { %v2428_v16 = vor.u32 %v2427_v15, %v3236_v61 }
0x440d   : > { %v2429_v17 = vsel %vm430_vm5, %v2428_v16, 2147483647 }
0x440e   : > { %v2431_v18 = vshra.s32 %v2429_v17, 16  ;;  %v2430_v9 = vand.u32 65535, %v2429_v17 }
0x4410   : > { %v2433_v19 = vcvt.s32.f32 %v2431_v18  ;;  %v2432_v20 = vcvt.s32.f32 %v2430_v9 }
0x4412   : > { %2434 = vmin.xlane.f32.xlu2 %v2433_v19 }
0x4485   : > { %v2435_v60 = vpop.xlane.xlu2 %2434 }
0x4486   : > { %vm2436_vm8 = vcmp.eq.f32.partialorder %v2433_v19, %v2435_v60  ;;  %v2441_v21 = vcvt.f32.s32 %v2435_v60 }
0x4487   : > { %v2437_v12 = vsel %vm2436_vm8, %v2432_v20, inf }
0x4488   : > { %2438 = vmin.xlane.f32.xlu0 %v2437_v12  ;;  %v2442_v23 = vshll.u32 %v2441_v21, 16 }
0x44fb   : > { %v2439_v22 = vpop.xlane.xlu0 %2438 }
0x44fc   : > { %v2440_v24 = vcvt.f32.s32 %v2439_v22 }
0x44fe   : > { %v2443_v25 = vadd.s32 %v2442_v23, %v2440_v24 }
0x4500   : > { %v2444_v26 = vrot.slane %v2443_v25, 4 }
0x4502   : > { %vm2445_vm9 = vcmp.lt.s32.totalorder %v2443_v25, %v2444_v26 }
0x4503   : > { %v2446_v27 = vsel %vm2445_vm9, %v2443_v25, %v2444_v26 }
0x4504   : > { %v2447_v28 = vrot.slane %v2446_v27, 2 }
0x4506   : > { %vm2448_vm10 = vcmp.lt.s32.totalorder %v2446_v27, %v2447_v28 }
0x4507   : > { %v2449_v29 = vsel %vm2448_vm10, %v2446_v27, %v2447_v28 }
0x4508   : > { %v2450_v30 = vrot.slane %v2449_v29, 1 }
0x450a   : > { %vm2451_vm11 = vcmp.lt.s32.totalorder %v2449_v29, %v2450_v30 }
0x450b   : > { %v2452_v31 = vsel %vm2451_vm11, %v2449_v29, %v2450_v30 }
0x450c   : > { %3034 = vpush %v2452_v31 }
0x453d   : > { %s3035_s27 = spop %3034 }
0x453e   : > { %v2454_v32 = vstv %s3035_s27  ;;  %s2456_s28 = sand.u32 127, %s3035_s27 }
0x453f   : > { %vm4318_vm12 = vcmp.eq.s32.totalorder %v2428_v16, %v2454_v32  ;;  %s2459_s29 = scalar_lea.vmem [#allocation2], %s2456_s28  ;;  %s139_s28 = scalar_lea.vmem %s4470_s2, %s4596_s10 }
0x4540   : > { %v2457_v34 = vsel %vm4318_vm12, %v4302_v13, %v4300_v10  ;;  %v2460_v35 = vld [vmem:[%s2459_s29] sm:$0x1]  ;;  %vm2458_vm13 = vmor %vm4309_vm7, %vm4318_vm12 }
0x4541   : > { %v2461_v36 = vmin.f32 %v4302_v13, %v2460_v35 }
0x4543   : > { %v2462_v37 = vsel %vm2458_vm13, inf, %v2461_v36 }
0x4544   : > { %v2464_v38 = vand.u32 4294967168, %v2462_v37 }
0x4546   : > { %v2465_v39 = vor.u32 %v2464_v38, %v3236_v61 }
0x4548   : > { %v2466_v40 = vsel %vm430_vm5, %v2465_v39, 2147483647 }
0x4549   : > { %v2468_v41 = vshra.s32 %v2466_v40, 16  ;;  %v2467_v43 = vand.u32 65535, %v2466_v40 }
0x454b   : > { %v2470_v42 = vcvt.s32.f32 %v2468_v41  ;;  %v2469_v7 = vcvt.s32.f32 %v2467_v43 }
0x454d   : > { %2471 = vmin.xlane.f32.xlu1 %v2470_v42 }
0x45c0   : > { %v2472_v44 = vpop.xlane.xlu1 %2471 }
0x45c1   : > { %vm2473_vm14 = vcmp.eq.f32.partialorder %v2470_v42, %v2472_v44  ;;  %v2478_v46 = vcvt.f32.s32 %v2472_v44 }
0x45c2   : > { %v2474_v45 = vsel %vm2473_vm14, %v2469_v7, inf }
0x45c3   : > { %2475 = vmin.xlane.f32.xlu2 %v2474_v45  ;;  %v2479_v48 = vshll.u32 %v2478_v46, 16 }
0x4636   : > { %v2476_v47 = vpop.xlane.xlu2 %2475 }
0x4637   : > { %v2477_v49 = vcvt.f32.s32 %v2476_v47 }
0x4639   : > { %v2480_v5 = vadd.s32 %v2479_v48, %v2477_v49 }
0x463b   : > { %v2481_v50 = vrot.slane %v2480_v5, 4 }
0x463d   : > { %vm2482_vm15 = vcmp.lt.s32.totalorder %v2480_v5, %v2481_v50 }
0x463e   : > { %v2483_v51 = vsel %vm2482_vm15, %v2480_v5, %v2481_v50 }
0x463f   : > { %v2484_v52 = vrot.slane %v2483_v51, 2 }
0x4641   : > { %vm2485_vm0 = vcmp.lt.s32.totalorder %v2483_v51, %v2484_v52 }
0x4642   : > { %v2486_v54 = vsel %vm2485_vm0, %v2483_v51, %v2484_v52 }
0x4643   : > { %v2487_v55 = vrot.slane %v2486_v54, 1 }
0x4645   : > { %vm2488_vm2 = vcmp.lt.s32.totalorder %v2486_v54, %v2487_v55 }
0x4646   : > { %v2489_v56 = vsel %vm2488_vm2, %v2486_v54, %v2487_v55 }
0x4647   : > { %3036 = vpush %v2489_v56 }
0x4678   : > { %s3037_s30 = spop %3036 }
0x4679   : > { %v2491_v57 = vstv %s3037_s30  ;;  %s2493_s3 = sand.u32 127, %s3037_s30 }
0x467a   : > { %vm2492_vm3 = vcmp.eq.s32.totalorder %v2465_v39, %v2491_v57  ;;  %s2496_s4 = scalar_lea.vmem [#allocation2], %s2493_s3 }
0x467b   : > { %v4338_v58 = vsel %vm2492_vm3, %v2461_v36, %v2457_v34  ;;  %v2497_v59 = vld [vmem:[%s2496_s4] sm:$0x1]  ;;  %vm4347_vm4 = vmor %vm2458_vm13, %vm2492_vm3 }
0x467c   : > { %v4340_v62 = vmin.f32 %v2461_v36, %v2497_v59 }
0x467e   : > { %v2499_v0 = vsel %vm4347_vm4, inf, %v4340_v62 }
0x467f   : > { %v2501_v1 = vand.u32 4294967168, %v2499_v0 }
0x4681   : > { %v2502_v53 = vor.u32 %v2501_v1, %v3236_v61 }
0x4683   : > { %v2503_v2 = vsel %vm430_vm5, %v2502_v53, 2147483647 }
0x4684   : > { %v2505_v3 = vshra.s32 %v2503_v2, 16  ;;  %v2504_v6 = vand.u32 65535, %v2503_v2 }
0x4686   : > { %v2507_v4 = vcvt.s32.f32 %v2505_v3  ;;  %v2506_v11 = vcvt.s32.f32 %v2504_v6 }
0x4688   : > { %2508 = vmin.xlane.f32.xlu0 %v2507_v4 }
0x46fb   : > { %v2509_v10 = vpop.xlane.xlu0 %2508 }
0x46fc   : > { %vm2510_vm6 = vcmp.eq.f32.partialorder %v2507_v4, %v2509_v10  ;;  %v2515_v14 = vcvt.f32.s32 %v2509_v10 }
0x46fd   : > { %v2511_v13 = vsel %vm2510_vm6, %v2506_v11, inf }
0x46fe   : > { %2512 = vmin.xlane.f32.xlu1 %v2511_v13  ;;  %v2516_v15 = vshll.u32 %v2515_v14, 16 }
0x4771   : > { %v2513_v8 = vpop.xlane.xlu1 %2512 }
0x4772   : > { %v2514_v16 = vcvt.f32.s32 %v2513_v8 }
0x4774   : > { %v2517_v17 = vadd.s32 %v2516_v15, %v2514_v16 }
0x4776   : > { %v2518_v18 = vrot.slane %v2517_v17, 4 }
0x4778   : > { %vm2519_vm7 = vcmp.lt.s32.totalorder %v2517_v17, %v2518_v18 }
0x4779   : > { %v2520_v19 = vsel %vm2519_vm7, %v2517_v17, %v2518_v18 }
0x477a   : > { %v2521_v9 = vrot.slane %v2520_v19, 2 }
0x477c   : > { %vm2522_vm8 = vcmp.lt.s32.totalorder %v2520_v19, %v2521_v9 }
0x477d   : > { %v2523_v60 = vsel %vm2522_vm8, %v2520_v19, %v2521_v9 }
0x477e   : > { %v2524_v20 = vrot.slane %v2523_v60, 1 }
0x4780   : > { %vm2525_vm9 = vcmp.lt.s32.totalorder %v2523_v60, %v2524_v20 }
0x4781   : > { %v2526_v12 = vsel %vm2525_vm9, %v2523_v60, %v2524_v20 }
0x4782   : > { %3038 = vpush %v2526_v12 }
0x47b3   : > { %s3039_s5 = spop %3038 }
0x47b4   : > { %v2528_v21 = vstv %s3039_s5  ;;  %s2530_s6 = sand.u32 127, %s3039_s5 }
0x47b5   : > { %vm4356_vm10 = vcmp.eq.s32.totalorder %v2502_v53, %v2528_v21  ;;  %s2533_s7 = scalar_lea.vmem [#allocation2], %s2530_s6 }
0x47b6   : > { %v2531_v23 = vsel %vm4356_vm10, %v4340_v62, %v4338_v58  ;;  %v2534_v24 = vld [vmem:[%s2533_s7] sm:$0x1]  ;;  %vm2532_vm11 = vmor %vm4347_vm4, %vm4356_vm10 }
0x47b7   : > { %v2535_v25 = vmin.f32 %v4340_v62, %v2534_v24 }
0x47b9   : > { %v2536_v26 = vsel %vm2532_vm11, inf, %v2535_v25 }
0x47ba   : > { %v2538_v27 = vand.u32 4294967168, %v2536_v26 }
0x47bc   : > { %v2539_v28 = vor.u32 %v2538_v27, %v3236_v61 }
0x47be   : > { %v2540_v29 = vsel %vm430_vm5, %v2539_v28, 2147483647 }
0x47bf   : > { %v2542_v30 = vshra.s32 %v2540_v29, 16  ;;  %v2541_v32 = vand.u32 65535, %v2540_v29 }
0x47c1   : > { %v2544_v31 = vcvt.s32.f32 %v2542_v30  ;;  %v2543_v34 = vcvt.s32.f32 %v2541_v32 }
0x47c3   : > { %2545 = vmin.xlane.f32.xlu2 %v2544_v31 }
0x4836   : > { %v2546_v33 = vpop.xlane.xlu2 %2545 }
0x4837   : > { %vm2547_vm12 = vcmp.eq.f32.partialorder %v2544_v31, %v2546_v33  ;;  %v2552_v36 = vcvt.f32.s32 %v2546_v33 }
0x4838   : > { %v2548_v35 = vsel %vm2547_vm12, %v2543_v34, inf }
0x4839   : > { %2549 = vmin.xlane.f32.xlu0 %v2548_v35  ;;  %v2553_v38 = vshll.u32 %v2552_v36, 16 }
0x48ac   : > { %v2550_v37 = vpop.xlane.xlu0 %2549 }
0x48ad   : > { %v2551_v39 = vcvt.f32.s32 %v2550_v37 }
0x48af   : > { %v2554_v40 = vadd.s32 %v2553_v38, %v2551_v39 }
0x48b1   : > { %v2555_v41 = vrot.slane %v2554_v40, 4 }
0x48b3   : > { %vm2556_vm13 = vcmp.lt.s32.totalorder %v2554_v40, %v2555_v41 }
0x48b4   : > { %v2557_v42 = vsel %vm2556_vm13, %v2554_v40, %v2555_v41 }
0x48b5   : > { %v2558_v43 = vrot.slane %v2557_v42, 2 }
0x48b7   : > { %vm2559_vm14 = vcmp.lt.s32.totalorder %v2557_v42, %v2558_v43 }
0x48b8   : > { %v2560_v44 = vsel %vm2559_vm14, %v2557_v42, %v2558_v43 }
0x48b9   : > { %v2561_v7 = vrot.slane %v2560_v44, 1 }
0x48bb   : > { %vm2562_vm15 = vcmp.lt.s32.totalorder %v2560_v44, %v2561_v7 }
0x48bc   : > { %v2563_v45 = vsel %vm2562_vm15, %v2560_v44, %v2561_v7 }
0x48bd   : > { %3040 = vpush %v2563_v45 }
0x48ee   : > { %s3041_s8 = spop %3040 }
0x48ef   : > { %v2565_v46 = vstv %s3041_s8  ;;  %s2567_s11 = sand.u32 127, %s3041_s8 }
0x48f0   : > { %vm2566_vm0 = vcmp.eq.s32.totalorder %v2539_v28, %v2565_v46  ;;  %s2570_s12 = scalar_lea.vmem [#allocation2], %s2567_s11 }
0x48f1   : > { %v4376_v47 = vsel %vm2566_vm0, %v2535_v25, %v2531_v23  ;;  %v2571_v48 = vld [vmem:[%s2570_s12] sm:$0x1]  ;;  %vm4385_vm2 = vmor %vm2532_vm11, %vm2566_vm0 }
0x48f2   : > { %v4378_v49 = vmin.f32 %v2535_v25, %v2571_v48 }
0x48f4   : > { %v2573_v50 = vsel %vm4385_vm2, inf, %v4378_v49 }
0x48f5   : > { %v2575_v51 = vand.u32 4294967168, %v2573_v50 }
0x48f7   : > { %v2576_v52 = vor.u32 %v2575_v51, %v3236_v61 }
0x48f9   : > { %v2577_v54 = vsel %vm430_vm5, %v2576_v52, 2147483647 }
0x48fa   : > { %v2579_v55 = vshra.s32 %v2577_v54, 16  ;;  %v2578_v57 = vand.u32 65535, %v2577_v54 }
0x48fc   : > { %v2581_v56 = vcvt.s32.f32 %v2579_v55  ;;  %v2580_v59 = vcvt.s32.f32 %v2578_v57 }
0x48fe   : > { %2582 = vmin.xlane.f32.xlu1 %v2581_v56 }
0x4971   : > { %v2583_v58 = vpop.xlane.xlu1 %2582 }
0x4972   : > { %vm2584_vm3 = vcmp.eq.f32.partialorder %v2581_v56, %v2583_v58  ;;  %v2589_v63 = vcvt.f32.s32 %v2583_v58 }
0x4973   : > { %v2585_v62 = vsel %vm2584_vm3, %v2580_v59, inf }
0x4974   : > { %2586 = vmin.xlane.f32.xlu2 %v2585_v62  ;;  %v2590_v1 = vshll.u32 %v2589_v63, 16 }
0x49e7   : > { %v2587_v0 = vpop.xlane.xlu2 %2586 }
0x49e8   : > { %v2588_v53 = vcvt.f32.s32 %v2587_v0 }
0x49ea   : > { %v2591_v2 = vadd.s32 %v2590_v1, %v2588_v53 }
0x49ec   : > { %v2592_v3 = vrot.slane %v2591_v2, 4 }
0x49ee   : > { %vm2593_vm4 = vcmp.lt.s32.totalorder %v2591_v2, %v2592_v3 }
0x49ef   : > { %v2594_v4 = vsel %vm2593_vm4, %v2591_v2, %v2592_v3 }
0x49f0   : > { %v2595_v6 = vrot.slane %v2594_v4, 2 }
0x49f2   : > { %vm2596_vm6 = vcmp.lt.s32.totalorder %v2594_v4, %v2595_v6 }
0x49f3   : > { %v2597_v10 = vsel %vm2596_vm6, %v2594_v4, %v2595_v6 }
0x49f4   : > { %v2598_v11 = vrot.slane %v2597_v10, 1 }
0x49f6   : > { %vm2599_vm7 = vcmp.lt.s32.totalorder %v2597_v10, %v2598_v11 }
0x49f7   : > { %v2600_v13 = vsel %vm2599_vm7, %v2597_v10, %v2598_v11 }
0x49f8   : > { %3042 = vpush %v2600_v13 }
0x4a29   : > { %s3043_s13 = spop %3042 }
0x4a2a   : > { %v2602_v14 = vstv %s3043_s13  ;;  %s2604_s14 = sand.u32 127, %s3043_s13 }
0x4a2b   : > { %vm4394_vm8 = vcmp.eq.s32.totalorder %v2576_v52, %v2602_v14  ;;  %s2607_s15 = scalar_lea.vmem [#allocation2], %s2604_s14 }
0x4a2c   : > { %v2605_v15 = vsel %vm4394_vm8, %v4378_v49, %v4376_v47  ;;  %v2608_v16 = vld [vmem:[%s2607_s15] sm:$0x1]  ;;  %vm2606_vm9 = vmor %vm4385_vm2, %vm4394_vm8 }
0x4a2d   : > { %v2609_v17 = vmin.f32 %v4378_v49, %v2608_v16 }
0x4a2f   : > { %v2610_v18 = vsel %vm2606_vm9, inf, %v2609_v17 }
0x4a30   : > { %v2612_v19 = vand.u32 4294967168, %v2610_v18 }
0x4a32   : > { %v2613_v9 = vor.u32 %v2612_v19, %v3236_v61 }
0x4a34   : > { %v2614_v60 = vsel %vm430_vm5, %v2613_v9, 2147483647 }
0x4a35   : > { %v2616_v20 = vshra.s32 %v2614_v60, 16  ;;  %v2615_v21 = vand.u32 65535, %v2614_v60 }
0x4a37   : > { %v2618_v12 = vcvt.s32.f32 %v2616_v20  ;;  %v2617_v23 = vcvt.s32.f32 %v2615_v21 }
0x4a39   : > { %2619 = vmin.xlane.f32.xlu0 %v2618_v12 }
0x4aac   : > { %v2620_v22 = vpop.xlane.xlu0 %2619 }
0x4aad   : > { %vm2621_vm10 = vcmp.eq.f32.partialorder %v2618_v12, %v2620_v22  ;;  %v2626_v25 = vcvt.f32.s32 %v2620_v22 }
0x4aae   : > { %v2622_v24 = vsel %vm2621_vm10, %v2617_v23, inf }
0x4aaf   : > { %2623 = vmin.xlane.f32.xlu1 %v2622_v24  ;;  %v2627_v27 = vshll.u32 %v2626_v25, 16 }
0x4b22   : > { %v2624_v26 = vpop.xlane.xlu1 %2623 }
0x4b23   : > { %v2625_v28 = vcvt.f32.s32 %v2624_v26 }
0x4b25   : > { %v2628_v29 = vadd.s32 %v2627_v27, %v2625_v28 }
0x4b27   : > { %v2629_v30 = vrot.slane %v2628_v29, 4 }
0x4b29   : > { %vm2630_vm11 = vcmp.lt.s32.totalorder %v2628_v29, %v2629_v30 }
0x4b2a   : > { %v2631_v31 = vsel %vm2630_vm11, %v2628_v29, %v2629_v30 }
0x4b2b   : > { %v2632_v32 = vrot.slane %v2631_v31, 2 }
0x4b2d   : > { %vm2633_vm12 = vcmp.lt.s32.totalorder %v2631_v31, %v2632_v32 }
0x4b2e   : > { %v2634_v33 = vsel %vm2633_vm12, %v2631_v31, %v2632_v32 }
0x4b2f   : > { %v2635_v34 = vrot.slane %v2634_v33, 1 }
0x4b31   : > { %vm2636_vm13 = vcmp.lt.s32.totalorder %v2634_v33, %v2635_v34 }
0x4b32   : > { %v2637_v35 = vsel %vm2636_vm13, %v2634_v33, %v2635_v34 }
0x4b33   : > { %3044 = vpush %v2637_v35 }
0x4b64   : > { %s3045_s16 = spop %3044 }
0x4b65   : > { %v2639_v36 = vstv %s3045_s16  ;;  %s2641_s17 = sand.u32 127, %s3045_s16 }
0x4b66   : > { %vm2640_vm14 = vcmp.eq.s32.totalorder %v2613_v9, %v2639_v36  ;;  %s2644_s18 = scalar_lea.vmem [#allocation2], %s2641_s17 }
0x4b67   : > { %v4414_v37 = vsel %vm2640_vm14, %v2609_v17, %v2605_v15  ;;  %v2645_v38 = vld [vmem:[%s2644_s18] sm:$0x1]  ;;  %vm4423_vm15 = vmor %vm2606_vm9, %vm2640_vm14 }
0x4b68   : > { %v4416_v39 = vmin.f32 %v2609_v17, %v2645_v38 }
0x4b6a   : > { %v2647_v41 = vsel %vm4423_vm15, inf, %v4416_v39 }
0x4b6b   : > { %v2649_v42 = vand.u32 4294967168, %v2647_v41 }
0x4b6d   : > { %v2650_v43 = vor.u32 %v2649_v42, %v3236_v61 }
0x4b6f   : > { %v2651_v44 = vsel %vm430_vm5, %v2650_v43, 2147483647 }
0x4b70   : > { %v2653_v7 = vshra.s32 %v2651_v44, 16  ;;  %v2652_v46 = vand.u32 65535, %v2651_v44 }
0x4b72   : > { %v2655_v45 = vcvt.s32.f32 %v2653_v7  ;;  %v2654_v48 = vcvt.s32.f32 %v2652_v46 }
0x4b74   : > { %2656 = vmin.xlane.f32.xlu2 %v2655_v45 }
0x4be7   : > { %v2657_v47 = vpop.xlane.xlu2 %2656 }
0x4be8   : > { %vm2658_vm0 = vcmp.eq.f32.partialorder %v2655_v45, %v2657_v47  ;;  %v2663_v5 = vcvt.f32.s32 %v2657_v47 }
0x4be9   : > { %v2659_v49 = vsel %vm2658_vm0, %v2654_v48, inf }
0x4bea   : > { %2660 = vmin.xlane.f32.xlu0 %v2659_v49  ;;  %v2664_v51 = vshll.u32 %v2663_v5, 16 }
0x4c5d   : > { %v2661_v50 = vpop.xlane.xlu0 %2660 }
0x4c5e   : > { %v2662_v52 = vcvt.f32.s32 %v2661_v50 }
0x4c60   : > { %v2665_v54 = vadd.s32 %v2664_v51, %v2662_v52 }
0x4c62   : > { %v2666_v55 = vrot.slane %v2665_v54, 4 }
0x4c64   : > { %vm2667_vm2 = vcmp.lt.s32.totalorder %v2665_v54, %v2666_v55 }
0x4c65   : > { %v2668_v56 = vsel %vm2667_vm2, %v2665_v54, %v2666_v55 }
0x4c66   : > { %v2669_v57 = vrot.slane %v2668_v56, 2 }
0x4c68   : > { %vm2670_vm3 = vcmp.lt.s32.totalorder %v2668_v56, %v2669_v57 }
0x4c69   : > { %v2671_v58 = vsel %vm2670_vm3, %v2668_v56, %v2669_v57 }
0x4c6a   : > { %v2672_v59 = vrot.slane %v2671_v58, 1 }
0x4c6c   : > { %vm2673_vm4 = vcmp.lt.s32.totalorder %v2671_v58, %v2672_v59 }
0x4c6d   : > { %v2674_v62 = vsel %vm2673_vm4, %v2671_v58, %v2672_v59 }
0x4c6e   : > { %3046 = vpush %v2674_v62 }
0x4c9f   : > { %s3047_s19 = spop %3046 }
0x4ca0   : > { %v2676_v63 = vstv %s3047_s19  ;;  %s2678_s20 = sand.u32 127, %s3047_s19 }
0x4ca1   : > { %vm4432_vm6 = vcmp.eq.s32.totalorder %v2650_v43, %v2676_v63  ;;  %s2681_s21 = scalar_lea.vmem [#allocation2], %s2678_s20 }
0x4ca2   : > { %v2679_v1 = vsel %vm4432_vm6, %v4416_v39, %v4414_v37  ;;  %v2682_v53 = vld [vmem:[%s2681_s21] sm:$0x1]  ;;  %vm2680_vm7 = vmor %vm4423_vm15, %vm4432_vm6 }
0x4ca3   : > { %v2683_v2 = vmin.f32 %v4416_v39, %v2682_v53 }
0x4ca5   : > { %v2684_v3 = vsel %vm2680_vm7, inf, %v2683_v2 }
0x4ca6   : > { %v2686_v4 = vand.u32 4294967168, %v2684_v3 }
0x4ca8   : > { %v2687_v6 = vor.u32 %v2686_v4, %v3236_v61 }
0x4caa   : > { %v2688_v10 = vsel %vm430_vm5, %v2687_v6, 2147483647 }
0x4cab   : > { %v2690_v11 = vshra.s32 %v2688_v10, 16  ;;  %v2689_v14 = vand.u32 65535, %v2688_v10 }
0x4cad   : > { %v2692_v13 = vcvt.s32.f32 %v2690_v11  ;;  %v2691_v15 = vcvt.s32.f32 %v2689_v14 }
0x4caf   : > { %2693 = vmin.xlane.f32.xlu1 %v2692_v13 }
0x4d22   : > { %v2694_v8 = vpop.xlane.xlu1 %2693 }
0x4d23   : > { %vm2695_vm8 = vcmp.eq.f32.partialorder %v2692_v13, %v2694_v8  ;;  %v2700_v17 = vcvt.f32.s32 %v2694_v8 }
0x4d24   : > { %v2696_v16 = vsel %vm2695_vm8, %v2691_v15, inf }
0x4d25   : > { %2697 = vmin.xlane.f32.xlu2 %v2696_v16  ;;  %v2701_v19 = vshll.u32 %v2700_v17, 16 }
0x4d98   : > { %v2698_v18 = vpop.xlane.xlu2 %2697 }
0x4d99   : > { %v2699_v9 = vcvt.f32.s32 %v2698_v18 }
0x4d9b   : > { %v2702_v60 = vadd.s32 %v2701_v19, %v2699_v9 }
0x4d9d   : > { %v2703_v20 = vrot.slane %v2702_v60, 4 }
0x4d9f   : > { %vm2704_vm9 = vcmp.lt.s32.totalorder %v2702_v60, %v2703_v20 }
0x4da0   : > { %v2705_v12 = vsel %vm2704_vm9, %v2702_v60, %v2703_v20 }
0x4da1   : > { %v2706_v21 = vrot.slane %v2705_v12, 2 }
0x4da3   : > { %vm2707_vm10 = vcmp.lt.s32.totalorder %v2705_v12, %v2706_v21 }
0x4da4   : > { %v2708_v22 = vsel %vm2707_vm10, %v2705_v12, %v2706_v21 }
0x4da5   : > { %v2709_v23 = vrot.slane %v2708_v22, 1 }
0x4da7   : > { %vm2710_vm11 = vcmp.lt.s32.totalorder %v2708_v22, %v2709_v23 }
0x4da8   : > { %v2711_v24 = vsel %vm2710_vm11, %v2708_v22, %v2709_v23 }
0x4da9   : > { %3048 = vpush %v2711_v24 }
0x4dda   : > { %s3049_s22 = spop %3048 }
0x4ddb   : > { %v2713_v25 = vstv %s3049_s22  ;;  %s2715_s23 = sand.u32 127, %s3049_s22 }
0x4ddc   : > { %vm2714_vm12 = vcmp.eq.s32.totalorder %v2687_v6, %v2713_v25  ;;  %s2718_s24 = scalar_lea.vmem [#allocation2], %s2715_s23 }
0x4ddd   : > { %v2716_v26 = vsel %vm2714_vm12, %v2683_v2, %v2679_v1  ;;  %v2719_v27 = vld [vmem:[%s2718_s24] sm:$0x1]  ;;  %vm2717_vm13 = vmor %vm2680_vm7, %vm2714_vm12 }
0x4dde   : > { %v2720_v28 = vmin.f32 %v2683_v2, %v2719_v27 }
0x4de0   : > { %v2721_v29 = vsel %vm2717_vm13, inf, %v2720_v28 }
0x4de1   : > { %v2723_v30 = vand.u32 4294967168, %v2721_v29 }
0x4de3   : > { %v2724_v31 = vor.u32 %v2723_v30, %v3236_v61 }
0x4de5   : > { %v2725_v32 = vsel %vm430_vm5, %v2724_v31, 2147483647 }
0x4de6   : > { %v2727_v33 = vshra.s32 %v2725_v32, 16  ;;  %v2726_v35 = vand.u32 65535, %v2725_v32 }
0x4de8   : > { %v2729_v34 = vcvt.s32.f32 %v2727_v33  ;;  %v2728_v37 = vcvt.s32.f32 %v2726_v35 }
0x4dea   : > { %2730 = vmin.xlane.f32.xlu0 %v2729_v34 }
0x4e5d   : > { %v2731_v36 = vpop.xlane.xlu0 %2730 }
0x4e5e   : > { %vm2732_vm14 = vcmp.eq.f32.partialorder %v2729_v34, %v2731_v36  ;;  %v2737_v39 = vcvt.f32.s32 %v2731_v36 }
0x4e5f   : > { %v2733_v38 = vsel %vm2732_vm14, %v2728_v37, inf }
0x4e60   : > { %2734 = vmin.xlane.f32.xlu1 %v2733_v38  ;;  %v2738_v41 = vshll.u32 %v2737_v39, 16 }
0x4ed3   : > { %v2735_v40 = vpop.xlane.xlu1 %2734 }
0x4ed4   : > { %v2736_v42 = vcvt.f32.s32 %v2735_v40 }
0x4ed6   : > { %v2739_v43 = vadd.s32 %v2738_v41, %v2736_v42 }
0x4ed8   : > { %v2740_v44 = vrot.slane %v2739_v43, 4 }
0x4eda   : > { %vm2741_vm15 = vcmp.lt.s32.totalorder %v2739_v43, %v2740_v44 }
0x4edb   : > { %v2742_v7 = vsel %vm2741_vm15, %v2739_v43, %v2740_v44 }
0x4edc   : > { %v2743_v45 = vrot.slane %v2742_v7, 2 }
0x4ede   : > { %vm2744_vm0 = vcmp.lt.s32.totalorder %v2742_v7, %v2743_v45 }
0x4edf   : > { %v2745_v46 = vsel %vm2744_vm0, %v2742_v7, %v2743_v45 }
0x4ee0   : > { %v2746_v47 = vrot.slane %v2745_v46, 1 }
0x4ee2   : > { %vm2747_vm5 = vcmp.lt.s32.totalorder %v2745_v46, %v2746_v47 }
0x4ee3   : > { %v2748_v48 = vsel %vm2747_vm5, %v2745_v46, %v2746_v47 }
0x4ee4   : > { %3050 = vpush %v2748_v48 }
0x4f15   : > { %s3051_s25 = spop %3050 }
0x4f16   : > { %v2750_v49 = vstv %s3051_s25 }
0x4f17   : > { %vm2751_vm2 = vcmp.eq.s32.totalorder %v2724_v31, %v2750_v49 }
0x4f18   : > { %v2752_v5 = vsel %vm2751_vm2, %v2720_v28, %v2716_v26 }
0x4f19   : > { %3061 = vrsqrt.f32 %v2752_v5  ;;  %vm2760_vm3 = vcmp.eq.f32.partialorder %v2752_v5, inf  ;;  %v2763_v58 = vand.u32 2147483648, %v2752_v5  ;;  %vm2762_vm4 = vcmp.eq.f32.partialorder %v2752_v5, 0.0 }
0x4f1f   : > { %v3062_v50 = vpop.eup %3061 }
0x4f20   : > { %v2754_v51 = vmul.f32 %v3062_v50, %v2752_v5 }
0x4f22   : > { %v2755_v52 = vmul.f32 %v3062_v50, %v2754_v51 }
0x4f24   : > { %v2756_v54 = vmul.f32 0.5, %v2755_v52 }
0x4f26   : > { %v2757_v55 = vsub.f32 1.5, %v2756_v54 }
0x4f28   : > { %v2758_v56 = vmul.f32 %v3062_v50, %v2757_v55 }
0x4f2a   : > { %v2759_v57 = vmul.f32 %v2758_v56, %v2752_v5 }
0x4f2c   : > { %v2761_v59 = vsel %vm2760_vm3, %v2752_v5, %v2759_v57 }
0x4f2d   : > { %v2764_v62 = vsel %vm2762_vm4, %v2763_v58, %v2761_v59 }
0x4f2e   : > { %v2765_v63 = vsel %vm423_vm1, inf, %v2764_v62 }
0x4f2f   : > { %2766 = vst [vmem:[%s139_s28] sm:$0x1] %v2765_v63 }
0x4f30 PF: > { %s12_s9 = sadd.s32 1, %s3069_s9  }
0x4f31   : > { %p9_p4 = scmp.ge.s32.totalorder %s12_s9, 4  }
0x4f33   :  { %11 = sbr.rel (!%p9_p4) target bundleno = 1 (0x1), region = 120 }

</bundles_post_ra>
